<compile_context>
chip_gen: v5e
topology: v5e:2x2
jax: 0.10.0
libtpu: 0.0.40
codegen_flags: <defaults>
</compile_context>

<pallas_src>
import functools

import jax
import jax.numpy as jnp
from jax.experimental import pallas as pl
from jax.experimental.pallas import tpu as pltpu

_EPS = 1e-8  # matches F.cosine_similarity eps


def _cosine_distance(x, y):
    """1 - cosine_similarity(x, y) along last axis, eps-clamped norms. (rows, 1)."""
    num = jnp.sum(x * y, axis=-1, keepdims=True)
    nx2 = jnp.sum(x * x, axis=-1, keepdims=True)
    ny2 = jnp.sum(y * y, axis=-1, keepdims=True)
    # max(sqrt(s), eps) == sqrt(max(s, eps^2)); rsqrt keeps the divide on the EUP.
    inv_den = jax.lax.rsqrt(jnp.maximum(nx2, _EPS * _EPS) *
                            jnp.maximum(ny2, _EPS * _EPS))
    return 1.0 - num * inv_den


# --------------------------------------------------------------------------
# fused kernel: expander MLP (streamed) + all five losses
# --------------------------------------------------------------------------
def _criterion_kernel(triplet_margin, focal_gamma, vicreg_gamma, total_b,
                      a_emb_ref, p_emb_ref, n_emb_ref,
                      a_log_ref, p_log_ref, n_log_ref,
                      a_id_ref, p_id_ref, n_id_ref,
                      w1_ref, b1_ref, w2_ref, b2_ref,
                      out_ref,
                      sum_ref, sumsq_ref, gram_ref,
                      trip_ref, focal_ref, inv_ref):
    i = pl.program_id(0)
    e_dim = gram_ref.shape[-1]

    # ---- init streaming accumulators on the first row tile ----
    @pl.when(i == 0)
    def _init():
        sum_ref[...] = jnp.zeros_like(sum_ref)
        sumsq_ref[...] = jnp.zeros_like(sumsq_ref)
        gram_ref[...] = jnp.zeros_like(gram_ref)
        trip_ref[...] = jnp.zeros_like(trip_ref)
        focal_ref[...] = jnp.zeros_like(focal_ref)
        inv_ref[...] = jnp.zeros_like(inv_ref)

    # ---- triplet partial sum (raw embeddings, read straight from the refs) ----
    a_emb = a_emb_ref[...]
    d_ap = _cosine_distance(a_emb, p_emb_ref[...])
    d_an = _cosine_distance(a_emb, n_emb_ref[...])
    hinge = jnp.maximum(d_ap - d_an + triplet_margin, 0.0)          # (tb, 1)
    trip_ref[...] += jnp.sum(hinge, axis=0, keepdims=True)          # (1, 1)

    # ---- per-branch: expander MLP + streaming stats + focal CE ----
    w1 = w1_ref[...]
    b1 = b1_ref[...]
    w2 = w2_ref[...]
    b2 = b2_ref[...]
    branches = ((a_emb_ref, a_log_ref, a_id_ref),
                (p_emb_ref, p_log_ref, p_id_ref),
                (n_emb_ref, n_log_ref, n_id_ref))

    focal_partial = jnp.zeros((1, 1), jnp.float32)
    ap_expanded = []                                                 # a_x, p_x
    for br, (e_ref, l_ref, id_ref) in enumerate(branches):
        emb = e_ref[...]                                             # (tb, D)
        h = jnp.maximum(
            jnp.dot(emb, w1, preferred_element_type=jnp.float32) + b1, 0.0)
        x = jnp.dot(h, w2, preferred_element_type=jnp.float32) + b2  # (tb, E)

        # streaming first/second moments + gram (X^T X), gram via MXU
        # transpose-LHS mode (contract dim 0 of both operands, no explicit .T).
        sum_ref[br] += jnp.sum(x, axis=0, keepdims=True)             # (1, E)
        sumsq_ref[br] += jnp.sum(x * x, axis=0, keepdims=True)       # (1, E)
        gram_ref[br] += jax.lax.dot_general(
            x, x, (((0,), (0,)), ((), ())),
            preferred_element_type=jnp.float32)                      # (E, E)
        if br < 2:
            ap_expanded.append(x)

        # focal cross-entropy, logsumexp form; target picked with iota==ids
        # (no one-hot operand, no (3B,C) HBM materialization).
        logits = l_ref[...]                                          # (tb, C)
        ids = id_ref[...]                                            # (tb, 1) i32
        m = jnp.max(logits, axis=-1, keepdims=True)
        lse = m + jnp.log(jnp.sum(jnp.exp(logits - m), axis=-1, keepdims=True))
        cls = jax.lax.broadcasted_iota(jnp.int32, logits.shape, 1)
        tgt = jnp.sum(jnp.where(cls == ids, logits, 0.0),
                      axis=-1, keepdims=True)
        ce = lse - tgt                                               # -log p_t
        if focal_gamma == 0.0:
            fw = ce
        else:
            p_t = jnp.exp(tgt - lse)
            g = float(focal_gamma)
            g = int(g) if g == int(g) else g
            fw = ((1.0 - p_t) ** g) * ce
        focal_partial += jnp.sum(fw, axis=0, keepdims=True)
    focal_ref[...] += focal_partial

    # ---- invariance (MSE of expanded anchor vs positive) partial sum ----
    diff = ap_expanded[0] - ap_expanded[1]
    inv_ref[...] += jnp.sum(jnp.sum(diff * diff, axis=-1, keepdims=True),
                            axis=0, keepdims=True)

    # ---- finalize all five losses on the last row tile ----
    @pl.when(i == pl.num_programs(0) - 1)
    def _finalize():
        nb = float(total_b)
        inv_nm1 = 1.0 / (nb - 1.0)
        var_tot = jnp.zeros((1, 1), jnp.float32)
        cov_tot = jnp.zeros((1, 1), jnp.float32)
        for br in range(3):
            s = sum_ref[br]                                          # (1, E)
            ss = sumsq_ref[br]                                       # (1, E)
            g = gram_ref[br]                                         # (E, E)
            # per-feature unbiased variance == diag of the centered covariance
            var_pf = jnp.maximum((ss - s * s / nb) * inv_nm1, 0.0)   # (1, E)
            std = jnp.sqrt(var_pf)
            var_tot += jnp.sum(jnp.maximum(vicreg_gamma - std, 0.0),
                               axis=-1, keepdims=True) / e_dim
            # centered covariance from gram + mean outer product (no iota mask):
            outer = jax.lax.dot_general(
                s, s, (((0,), (0,)), ((), ())),
                preferred_element_type=jnp.float32)                  # (E, E)
            covm = (g - outer / nb) * inv_nm1
            fro2 = jnp.sum(jnp.sum(covm * covm, axis=-1, keepdims=True),
                           axis=0, keepdims=True)                    # (1, 1)
            diag2 = jnp.sum(var_pf * var_pf, axis=-1, keepdims=True) # (1, 1)
            cov_tot += (fro2 - diag2) / e_dim
        var_loss = var_tot / 3.0
        cov_loss = cov_tot / 3.0
        trip = trip_ref[...] / nb
        idl = focal_ref[...] / (3.0 * nb)
        inv = inv_ref[...] / (nb * e_dim)

        # pack the 5 scalars into one lane-indexed (1, 128) output row
        lane = jax.lax.broadcasted_iota(jnp.int32, (1, 128), 1)
        row = jnp.where(lane == 0, trip, 0.0)
        row = jnp.where(lane == 1, idl, row)
        row = jnp.where(lane == 2, var_loss, row)
        row = jnp.where(lane == 3, inv, row)
        row = jnp.where(lane == 4, cov_loss, row)
        out_ref[...] = row


def criterion_losses(a_emb, p_emb, n_emb, a_log, p_log, n_log,
                     a_ids, p_ids, n_ids, w1, b1, w2, b2, *,
                     triplet_margin, focal_gamma, vicreg_gamma, row_block=128):
    batch, d = a_emb.shape
    c = a_log.shape[1]
    h = w1.shape[1]
    e = w2.shape[1]
    assert batch >= 2, "variance/covariance need batch >= 2 (divide by b-1)"

    # row tile size; TODO(synk): pad/mask ragged tails instead of falling back.
    tb = row_block if (row_block <= batch and batch % row_block == 0) else batch
    grid = (batch // tb,)

    row_spec = lambda last: pl.BlockSpec((tb, last), lambda i: (i, 0))
    full_spec = lambda shp: pl.BlockSpec(shp, lambda i: (0, 0))

    cost = pl.CostEstimate(
        flops=int(3 * batch * (2 * d * h + 2 * h * e + 2 * e * e) + 6 * e * e),
        transcendentals=int(3 * batch * c + 4 * batch + 8 * e),
        bytes_accessed=int(4 * (3 * batch * (d + c + 1)
                                + d * h + h + h * e + e) + 512),
    )

    out = pl.pallas_call(
        functools.partial(_criterion_kernel, triplet_margin, focal_gamma,
                          vicreg_gamma, batch),
        out_shape=jax.ShapeDtypeStruct((1, 128), jnp.float32),
        grid_spec=pltpu.PrefetchScalarGridSpec(
            num_scalar_prefetch=0,
            grid=grid,
            in_specs=[
                row_spec(d), row_spec(d), row_spec(d),       # embeddings
                row_spec(c), row_spec(c), row_spec(c),       # logits
                row_spec(1), row_spec(1), row_spec(1),       # int32 ids
                full_spec((d, h)), full_spec((1, h)),        # expander w1, b1
                full_spec((h, e)), full_spec((1, e)),        # expander w2, b2
            ],
            out_specs=pl.BlockSpec((1, 128), lambda i: (0, 0)),
            scratch_shapes=[
                pltpu.VMEM((3, 1, e), jnp.float32),          # per-branch sum_x
                pltpu.VMEM((3, 1, e), jnp.float32),          # per-branch sum_x^2
                pltpu.VMEM((3, e, e), jnp.float32),          # per-branch gram
                pltpu.VMEM((1, 1), jnp.float32),             # triplet partial
                pltpu.VMEM((1, 1), jnp.float32),             # focal partial
                pltpu.VMEM((1, 1), jnp.float32),             # invariance partial
            ]),
        compiler_params=pltpu.CompilerParams(
            dimension_semantics=("arbitrary",),               # reduction-carried
            vmem_limit_bytes=32 * 1024 * 1024),
        cost_estimate=cost,
    )(a_emb, p_emb, n_emb, a_log, p_log, n_log, a_ids, p_ids, n_ids,
      w1, b1, w2, b2)
    return out[0, 0], out[0, 1], out[0, 2], out[0, 3], out[0, 4]


# --------------------------------------------------------------------------
# EncoderCriterion wrapper (JAX glue)
# --------------------------------------------------------------------------
class EncoderCriterion:
    # TODO(synk): no custom_vjp is defined; jax.grad will not differentiate
    # through the fused pallas_call (forward-only, matching the module spec).

    def __init__(self, expander_params, num_classes, loss_weights=None,
                 triplet_margin=1.0, focal_gamma=0.0, vicreg_gamma=1.0,
                 row_block=128):
        self.expander_params = expander_params  # (w1 (D,H), b1 (1,H), w2 (H,E), b2 (1,E))
        self.num_classes = num_classes
        self.loss_weights = loss_weights or {}
        self.triplet_margin = float(triplet_margin)
        self.focal_gamma = float(focal_gamma)
        self.vicreg_gamma = float(vicreg_gamma)
        self.row_block = int(row_block)

    def __call__(self, anchor, positive, negative):
        a_emb, a_log, a_ids = anchor
        p_emb, p_log, p_ids = positive
        n_emb, n_log, n_ids = negative

        w1, b1, w2, b2 = self.expander_params
        f32 = jnp.float32
        trip, idl, var, inv, cov = criterion_losses(
            a_emb.astype(f32), p_emb.astype(f32), n_emb.astype(f32),
            a_log.astype(f32), p_log.astype(f32), n_log.astype(f32),
            a_ids.astype(jnp.int32).reshape(-1, 1),
            p_ids.astype(jnp.int32).reshape(-1, 1),
            n_ids.astype(jnp.int32).reshape(-1, 1),
            w1.astype(f32), b1.astype(f32), w2.astype(f32), b2.astype(f32),
            triplet_margin=self.triplet_margin,
            focal_gamma=self.focal_gamma,
            vicreg_gamma=self.vicreg_gamma,
            row_block=self.row_block)

        losses = {"triplet": trip, "id": idl, "variance": var,
                  "invariance": inv, "covariance": cov}
        losses["overall"] = sum(
            losses[name] * self.loss_weights.get(name, 1) for name in list(losses))
        return losses


# --------------------------------------------------------------------------
# Demo
# --------------------------------------------------------------------------
if __name__ == "__main__":
    # batch, embed dim, classes, expander hidden, expanded dim (lane-dense E)
    B, D, C, H, E = 16, 32, 16, 64, 128

    key = jax.random.PRNGKey(0)
    keys = jax.random.split(key, 13)

    # deterministic expander params (MultiLayerPerceptron: D -> H -> E)
    w1 = 0.1 * jax.random.normal(keys[0], (D, H), dtype=jnp.float32)
    b1 = 0.1 * jax.random.normal(keys[1], (1, H), dtype=jnp.float32)
    w2 = 0.1 * jax.random.normal(keys[2], (H, E), dtype=jnp.float32)
    b2 = 0.1 * jax.random.normal(keys[3], (1, E), dtype=jnp.float32)

    def make_branch(k_emb, k_log, k_id):
        emb = jax.random.normal(k_emb, (B, D), dtype=jnp.float32)
        log = 2.0 * jax.random.normal(k_log, (B, C), dtype=jnp.float32)
        ids = jax.random.randint(k_id, (B,), 0, C, dtype=jnp.int32)
        return emb, log, ids

    anchor = make_branch(keys[4], keys[5], keys[6])
    positive = make_branch(keys[7], keys[8], keys[9])
    negative = make_branch(keys[10], keys[11], keys[12])

    criterion = EncoderCriterion(
        expander_params=(w1, b1, w2, b2),
        num_classes=C,
        loss_weights={},            # all weights default to 1
        triplet_margin=1.0,
        focal_gamma=0.0,
        vicreg_gamma=1.0,
        row_block=8,                # exercises a 2-step batch grid in the demo
    )

    losses = criterion(anchor, positive, negative)
    losses = jax.tree_util.tree_map(jax.block_until_ready, losses)
    print("KERNEL_OK")
</pallas_src>

<mosaic_0001>
module attributes {stable_mosaic.version = 11 : i64} {
  func.func @_criterion_kernel(%arg0: i32, %arg1: memref<8x32xf32, #tpu.memory_space<vmem>>, %arg2: memref<8x32xf32, #tpu.memory_space<vmem>>, %arg3: memref<8x32xf32, #tpu.memory_space<vmem>>, %arg4: memref<8x16xf32, #tpu.memory_space<vmem>>, %arg5: memref<8x16xf32, #tpu.memory_space<vmem>>, %arg6: memref<8x16xf32, #tpu.memory_space<vmem>>, %arg7: memref<8x1xi32, #tpu.memory_space<vmem>>, %arg8: memref<8x1xi32, #tpu.memory_space<vmem>>, %arg9: memref<8x1xi32, #tpu.memory_space<vmem>>, %arg10: memref<32x64xf32, #tpu.memory_space<vmem>>, %arg11: memref<1x64xf32, #tpu.memory_space<vmem>>, %arg12: memref<64x128xf32, #tpu.memory_space<vmem>>, %arg13: memref<1x128xf32, #tpu.memory_space<vmem>>, %arg14: memref<1x128xf32, #tpu.memory_space<vmem>>, %arg15: memref<3x1x128xf32, #tpu.memory_space<vmem>>, %arg16: memref<3x1x128xf32, #tpu.memory_space<vmem>>, %arg17: memref<3x128x128xf32, #tpu.memory_space<vmem>>, %arg18: memref<1x1xf32, #tpu.memory_space<vmem>>, %arg19: memref<1x1xf32, #tpu.memory_space<vmem>>, %arg20: memref<1x1xf32, #tpu.memory_space<vmem>>) attributes {dimension_semantics = [#tpu.dimension_semantics<arbitrary>], iteration_bounds = array<i64: 2>, scalar_prefetch = 0 : i64, scratch_operands = 6 : i64, tpu.core_type = #tpu.core_type<tc>, window_params = [{transform_indices = @transform_0, window_bounds = array<i64: 8, 32>}, {transform_indices = @transform_1, window_bounds = array<i64: 8, 32>}, {transform_indices = @transform_2, window_bounds = array<i64: 8, 32>}, {transform_indices = @transform_3, window_bounds = array<i64: 8, 16>}, {transform_indices = @transform_4, window_bounds = array<i64: 8, 16>}, {transform_indices = @transform_5, window_bounds = array<i64: 8, 16>}, {transform_indices = @transform_6, window_bounds = array<i64: 8, 1>}, {transform_indices = @transform_7, window_bounds = array<i64: 8, 1>}, {transform_indices = @transform_8, window_bounds = array<i64: 8, 1>}, {pipeline_mode = #tpu.pipeline_mode<synchronous>, transform_indices = @transform_9, window_bounds = array<i64: 32, 64>}, {pipeline_mode = #tpu.pipeline_mode<synchronous>, transform_indices = @transform_10, window_bounds = array<i64: 1, 64>}, {pipeline_mode = #tpu.pipeline_mode<synchronous>, transform_indices = @transform_11, window_bounds = array<i64: 64, 128>}, {pipeline_mode = #tpu.pipeline_mode<synchronous>, transform_indices = @transform_12, window_bounds = array<i64: 1, 128>}, {pipeline_mode = #tpu.pipeline_mode<synchronous>, transform_indices = @transform_13, window_bounds = array<i64: 1, 128>}]} {
    %c0_i32 = arith.constant 0 : i32
    %0 = arith.cmpi eq, %arg0, %c0_i32 : i32
    %1 = arith.extui %0 : i1 to i32
    %c0_i32_0 = arith.constant 0 : i32
    %2 = arith.cmpi ne, %1, %c0_i32_0 : i32
    scf.if %2 {
      %cst_147 = arith.constant 0.000000e+00 : f32
      %237 = vector.broadcast %cst_147 : f32 to vector<3x1x128xf32>
      %c0_148 = arith.constant 0 : index
      %c0_149 = arith.constant 0 : index
      %c0_150 = arith.constant 0 : index
      %238 = vector.load %arg15[%c0_148, %c0_149, %c0_150] : memref<3x1x128xf32, #tpu.memory_space<vmem>>, vector<3x1x128xf32>
      tpu.vector_store %arg15[%c0_148, %c0_149, %c0_150], %237 {strides = array<i32>} : memref<3x1x128xf32, #tpu.memory_space<vmem>>, vector<3x1x128xf32>,
      %cst_151 = arith.constant 0.000000e+00 : f32
      %239 = vector.broadcast %cst_151 : f32 to vector<3x1x128xf32>
      %c0_152 = arith.constant 0 : index
      %c0_153 = arith.constant 0 : index
      %c0_154 = arith.constant 0 : index
      %240 = vector.load %arg16[%c0_152, %c0_153, %c0_154] : memref<3x1x128xf32, #tpu.memory_space<vmem>>, vector<3x1x128xf32>
      tpu.vector_store %arg16[%c0_152, %c0_153, %c0_154], %239 {strides = array<i32>} : memref<3x1x128xf32, #tpu.memory_space<vmem>>, vector<3x1x128xf32>,
      %cst_155 = arith.constant 0.000000e+00 : f32
      %241 = vector.broadcast %cst_155 : f32 to vector<3x128x128xf32>
      %c0_156 = arith.constant 0 : index
      %c0_157 = arith.constant 0 : index
      %c0_158 = arith.constant 0 : index
      %242 = vector.load %arg17[%c0_156, %c0_157, %c0_158] : memref<3x128x128xf32, #tpu.memory_space<vmem>>, vector<3x128x128xf32>
      tpu.vector_store %arg17[%c0_156, %c0_157, %c0_158], %241 {strides = array<i32>} : memref<3x128x128xf32, #tpu.memory_space<vmem>>, vector<3x128x128xf32>,
      %cst_159 = arith.constant 0.000000e+00 : f32
      %243 = vector.broadcast %cst_159 : f32 to vector<1x1xf32>
      %c0_160 = arith.constant 0 : index
      %c0_161 = arith.constant 0 : index
      %244 = vector.load %arg18[%c0_160, %c0_161] : memref<1x1xf32, #tpu.memory_space<vmem>>, vector<1x1xf32>
      tpu.vector_store %arg18[%c0_160, %c0_161], %243 {strides = array<i32>} : memref<1x1xf32, #tpu.memory_space<vmem>>, vector<1x1xf32>,
      %cst_162 = arith.constant 0.000000e+00 : f32
      %245 = vector.broadcast %cst_162 : f32 to vector<1x1xf32>
      %c0_163 = arith.constant 0 : index
      %c0_164 = arith.constant 0 : index
      %246 = vector.load %arg19[%c0_163, %c0_164] : memref<1x1xf32, #tpu.memory_space<vmem>>, vector<1x1xf32>
      tpu.vector_store %arg19[%c0_163, %c0_164], %245 {strides = array<i32>} : memref<1x1xf32, #tpu.memory_space<vmem>>, vector<1x1xf32>,
      %cst_165 = arith.constant 0.000000e+00 : f32
      %247 = vector.broadcast %cst_165 : f32 to vector<1x1xf32>
      %c0_166 = arith.constant 0 : index
      %c0_167 = arith.constant 0 : index
      %248 = vector.load %arg20[%c0_166, %c0_167] : memref<1x1xf32, #tpu.memory_space<vmem>>, vector<1x1xf32>
      tpu.vector_store %arg20[%c0_166, %c0_167], %247 {strides = array<i32>} : memref<1x1xf32, #tpu.memory_space<vmem>>, vector<1x1xf32>,
    } else {
    }
    %c0 = arith.constant 0 : index
    %c0_1 = arith.constant 0 : index
    %3 = vector.load %arg1[%c0, %c0_1] : memref<8x32xf32, #tpu.memory_space<vmem>>, vector<8x32xf32>
    %c0_2 = arith.constant 0 : index
    %c0_3 = arith.constant 0 : index
    %4 = vector.load %arg2[%c0_2, %c0_3] : memref<8x32xf32, #tpu.memory_space<vmem>>, vector<8x32xf32>
    %5 = arith.mulf %3, %4 : vector<8x32xf32>
    %cst = arith.constant dense<0.000000e+00> : vector<8xf32>
    %6 = vector.multi_reduction <add>, %5, %cst [1] : vector<8x32xf32> to vector<8xf32>
    %7 = vector.shape_cast %6 : vector<8xf32> to vector<8x1xf32>
    %8 = arith.mulf %3, %3 : vector<8x32xf32>
    %cst_4 = arith.constant dense<0.000000e+00> : vector<8xf32>
    %9 = vector.multi_reduction <add>, %8, %cst_4 [1] : vector<8x32xf32> to vector<8xf32>
    %10 = vector.shape_cast %9 : vector<8xf32> to vector<8x1xf32>
    %11 = arith.mulf %4, %4 : vector<8x32xf32>
    %cst_5 = arith.constant dense<0.000000e+00> : vector<8xf32>
    %12 = vector.multi_reduction <add>, %11, %cst_5 [1] : vector<8x32xf32> to vector<8xf32>
    %13 = vector.shape_cast %12 : vector<8xf32> to vector<8x1xf32>
    %cst_6 = arith.constant 1.000000e-16 : f32
    %14 = vector.broadcast %cst_6 : f32 to vector<8x1xf32>
    %15 = arith.maximumf %10, %14 : vector<8x1xf32>
    %cst_7 = arith.constant 1.000000e-16 : f32
    %16 = vector.broadcast %cst_7 : f32 to vector<8x1xf32>
    %17 = arith.maximumf %13, %16 : vector<8x1xf32>
    %18 = arith.mulf %15, %17 : vector<8x1xf32>
    %19 = math.rsqrt %18 : vector<8x1xf32>
    %20 = arith.mulf %7, %19 : vector<8x1xf32>
    %cst_8 = arith.constant 1.000000e+00 : f32
    %21 = vector.broadcast %cst_8 : f32 to vector<8x1xf32>
    %22 = arith.subf %21, %20 : vector<8x1xf32>
    %c0_9 = arith.constant 0 : index
    %c0_10 = arith.constant 0 : index
    %23 = vector.load %arg3[%c0_9, %c0_10] : memref<8x32xf32, #tpu.memory_space<vmem>>, vector<8x32xf32>
    %24 = arith.mulf %3, %23 : vector<8x32xf32>
    %cst_11 = arith.constant dense<0.000000e+00> : vector<8xf32>
    %25 = vector.multi_reduction <add>, %24, %cst_11 [1] : vector<8x32xf32> to vector<8xf32>
    %26 = vector.shape_cast %25 : vector<8xf32> to vector<8x1xf32>
    %27 = arith.mulf %3, %3 : vector<8x32xf32>
    %cst_12 = arith.constant dense<0.000000e+00> : vector<8xf32>
    %28 = vector.multi_reduction <add>, %27, %cst_12 [1] : vector<8x32xf32> to vector<8xf32>
    %29 = vector.shape_cast %28 : vector<8xf32> to vector<8x1xf32>
    %30 = arith.mulf %23, %23 : vector<8x32xf32>
    %cst_13 = arith.constant dense<0.000000e+00> : vector<8xf32>
    %31 = vector.multi_reduction <add>, %30, %cst_13 [1] : vector<8x32xf32> to vector<8xf32>
    %32 = vector.shape_cast %31 : vector<8xf32> to vector<8x1xf32>
    %cst_14 = arith.constant 1.000000e-16 : f32
    %33 = vector.broadcast %cst_14 : f32 to vector<8x1xf32>
    %34 = arith.maximumf %29, %33 : vector<8x1xf32>
    %cst_15 = arith.constant 1.000000e-16 : f32
    %35 = vector.broadcast %cst_15 : f32 to vector<8x1xf32>
    %36 = arith.maximumf %32, %35 : vector<8x1xf32>
    %37 = arith.mulf %34, %36 : vector<8x1xf32>
    %38 = math.rsqrt %37 : vector<8x1xf32>
    %39 = arith.mulf %26, %38 : vector<8x1xf32>
    %cst_16 = arith.constant 1.000000e+00 : f32
    %40 = vector.broadcast %cst_16 : f32 to vector<8x1xf32>
    %41 = arith.subf %40, %39 : vector<8x1xf32>
    %42 = arith.subf %22, %41 : vector<8x1xf32>
    %cst_17 = arith.constant 1.000000e+00 : f32
    %43 = vector.broadcast %cst_17 : f32 to vector<8x1xf32>
    %44 = arith.addf %42, %43 : vector<8x1xf32>
    %cst_18 = arith.constant 0.000000e+00 : f32
    %45 = vector.broadcast %cst_18 : f32 to vector<8x1xf32>
    %46 = arith.maximumf %44, %45 : vector<8x1xf32>
    %c0_19 = arith.constant 0 : index
    %c0_20 = arith.constant 0 : index
    %47 = vector.load %arg18[%c0_19, %c0_20] : memref<1x1xf32, #tpu.memory_space<vmem>>, vector<1x1xf32>
    %cst_21 = arith.constant dense<0.000000e+00> : vector<1xf32>
    %48 = vector.multi_reduction <add>, %46, %cst_21 [0] : vector<8x1xf32> to vector<1xf32>
    %49 = vector.shape_cast %48 : vector<1xf32> to vector<1x1xf32>
    %50 = arith.addf %47, %49 : vector<1x1xf32>
    %c0_22 = arith.constant 0 : index
    %c0_23 = arith.constant 0 : index
    %51 = vector.load %arg18[%c0_22, %c0_23] : memref<1x1xf32, #tpu.memory_space<vmem>>, vector<1x1xf32>
    tpu.vector_store %arg18[%c0_22, %c0_23], %50 {strides = array<i32>} : memref<1x1xf32, #tpu.memory_space<vmem>>, vector<1x1xf32>,
    %c0_24 = arith.constant 0 : index
    %c0_25 = arith.constant 0 : index
    %52 = vector.load %arg10[%c0_24, %c0_25] : memref<32x64xf32, #tpu.memory_space<vmem>>, vector<32x64xf32>
    %c0_26 = arith.constant 0 : index
    %c0_27 = arith.constant 0 : index
    %53 = vector.load %arg11[%c0_26, %c0_27] : memref<1x64xf32, #tpu.memory_space<vmem>>, vector<1x64xf32>
    %c0_28 = arith.constant 0 : index
    %c0_29 = arith.constant 0 : index
    %54 = vector.load %arg12[%c0_28, %c0_29] : memref<64x128xf32, #tpu.memory_space<vmem>>, vector<64x128xf32>
    %c0_30 = arith.constant 0 : index
    %c0_31 = arith.constant 0 : index
    %55 = vector.load %arg13[%c0_30, %c0_31] : memref<1x128xf32, #tpu.memory_space<vmem>>, vector<1x128xf32>
    %cst_32 = arith.constant 0.000000e+00 : f32
    %56 = vector.broadcast %cst_32 : f32 to vector<1x1xf32>
    %c0_33 = arith.constant 0 : index
    %c0_34 = arith.constant 0 : index
    %57 = vector.load %arg1[%c0_33, %c0_34] : memref<8x32xf32, #tpu.memory_space<vmem>>, vector<8x32xf32>
    %cst_35 = arith.constant dense<0.000000e+00> : vector<8x64xf32>
    %58 = tpu.matmul %57, %52, %cst_35 {dimension_numbers = #tpu.dot_dimension_numbers<[1], [0], [0], [1], [0, 0, 1, 1], [], []>} : vector<8x32xf32>, vector<32x64xf32>, vector<8x64xf32> -> vector<8x64xf32>
    %59 = vector.broadcast %53 : vector<1x64xf32> to vector<8x64xf32>
    %60 = arith.addf %58, %59 : vector<8x64xf32>
    %cst_36 = arith.constant 0.000000e+00 : f32
    %61 = vector.broadcast %cst_36 : f32 to vector<8x64xf32>
    %62 = arith.maximumf %60, %61 : vector<8x64xf32>
    %cst_37 = arith.constant dense<0.000000e+00> : vector<8x128xf32>
    %63 = tpu.matmul %62, %54, %cst_37 {dimension_numbers = #tpu.dot_dimension_numbers<[1], [0], [0], [1], [0, 0, 1, 1], [], []>} : vector<8x64xf32>, vector<64x128xf32>, vector<8x128xf32> -> vector<8x128xf32>
    %64 = vector.broadcast %55 : vector<1x128xf32> to vector<8x128xf32>
    %65 = arith.addf %63, %64 : vector<8x128xf32>
    %c0_38 = arith.constant 0 : index
    %c0_39 = arith.constant 0 : index
    %c0_40 = arith.constant 0 : index
    %66 = vector.load %arg15[%c0_38, %c0_39, %c0_40] : memref<3x1x128xf32, #tpu.memory_space<vmem>>, vector<1x1x128xf32>
    %67 = vector.shape_cast %66 : vector<1x1x128xf32> to vector<1x128xf32>
    %cst_41 = arith.constant dense<0.000000e+00> : vector<128xf32>
    %68 = vector.multi_reduction <add>, %65, %cst_41 [0] : vector<8x128xf32> to vector<128xf32>
    %69 = vector.shape_cast %68 : vector<128xf32> to vector<1x128xf32>
    %70 = arith.addf %67, %69 : vector<1x128xf32>
    %c0_42 = arith.constant 0 : index
    %c0_43 = arith.constant 0 : index
    %c0_44 = arith.constant 0 : index
    %71 = vector.load %arg15[%c0_42, %c0_43, %c0_44] : memref<3x1x128xf32, #tpu.memory_space<vmem>>, vector<1x1x128xf32>
    %72 = vector.shape_cast %71 : vector<1x1x128xf32> to vector<1x128xf32>
    %73 = vector.shape_cast %70 : vector<1x128xf32> to vector<1x1x128xf32>
    tpu.vector_store %arg15[%c0_42, %c0_43, %c0_44], %73 {strides = array<i32>} : memref<3x1x128xf32, #tpu.memory_space<vmem>>, vector<1x1x128xf32>,
    %c0_45 = arith.constant 0 : index
    %c0_46 = arith.constant 0 : index
    %c0_47 = arith.constant 0 : index
    %74 = vector.load %arg16[%c0_45, %c0_46, %c0_47] : memref<3x1x128xf32, #tpu.memory_space<vmem>>, vector<1x1x128xf32>
    %75 = vector.shape_cast %74 : vector<1x1x128xf32> to vector<1x128xf32>
    %76 = arith.mulf %65, %65 : vector<8x128xf32>
    %cst_48 = arith.constant dense<0.000000e+00> : vector<128xf32>
    %77 = vector.multi_reduction <add>, %76, %cst_48 [0] : vector<8x128xf32> to vector<128xf32>
    %78 = vector.shape_cast %77 : vector<128xf32> to vector<1x128xf32>
    %79 = arith.addf %75, %78 : vector<1x128xf32>
    %c0_49 = arith.constant 0 : index
    %c0_50 = arith.constant 0 : index
    %c0_51 = arith.constant 0 : index
    %80 = vector.load %arg16[%c0_49, %c0_50, %c0_51] : memref<3x1x128xf32, #tpu.memory_space<vmem>>, vector<1x1x128xf32>
    %81 = vector.shape_cast %80 : vector<1x1x128xf32> to vector<1x128xf32>
    %82 = vector.shape_cast %79 : vector<1x128xf32> to vector<1x1x128xf32>
    tpu.vector_store %arg16[%c0_49, %c0_50, %c0_51], %82 {strides = array<i32>} : memref<3x1x128xf32, #tpu.memory_space<vmem>>, vector<1x1x128xf32>,
    %c0_52 = arith.constant 0 : index
    %c0_53 = arith.constant 0 : index
    %c0_54 = arith.constant 0 : index
    %83 = vector.load %arg17[%c0_52, %c0_53, %c0_54] : memref<3x128x128xf32, #tpu.memory_space<vmem>>, vector<1x128x128xf32>
    %84 = vector.shape_cast %83 : vector<1x128x128xf32> to vector<128x128xf32>
    %cst_55 = arith.constant dense<0.000000e+00> : vector<128x128xf32>
    %85 = tpu.matmul %65, %65, %cst_55 {dimension_numbers = #tpu.dot_dimension_numbers<[0], [0], [1], [1], [0, 1, 1, 1], [], []>} : vector<8x128xf32>, vector<8x128xf32>, vector<128x128xf32> -> vector<128x128xf32>
    %86 = arith.addf %84, %85 : vector<128x128xf32>
    %c0_56 = arith.constant 0 : index
    %c0_57 = arith.constant 0 : index
    %c0_58 = arith.constant 0 : index
    %87 = vector.load %arg17[%c0_56, %c0_57, %c0_58] : memref<3x128x128xf32, #tpu.memory_space<vmem>>, vector<1x128x128xf32>
    %88 = vector.shape_cast %87 : vector<1x128x128xf32> to vector<128x128xf32>
    %89 = vector.shape_cast %86 : vector<128x128xf32> to vector<1x128x128xf32>
    tpu.vector_store %arg17[%c0_56, %c0_57, %c0_58], %89 {strides = array<i32>} : memref<3x128x128xf32, #tpu.memory_space<vmem>>, vector<1x128x128xf32>,
    %c0_59 = arith.constant 0 : index
    %c0_60 = arith.constant 0 : index
    %90 = vector.load %arg4[%c0_59, %c0_60] : memref<8x16xf32, #tpu.memory_space<vmem>>, vector<8x16xf32>
    %c0_61 = arith.constant 0 : index
    %c0_62 = arith.constant 0 : index
    %91 = vector.load %arg7[%c0_61, %c0_62] : memref<8x1xi32, #tpu.memory_space<vmem>>, vector<8x1xi32>
    %cst_63 = arith.constant dense<0xFF800000> : vector<8xf32>
    %92 = vector.multi_reduction <maximumf>, %90, %cst_63 [1] : vector<8x16xf32> to vector<8xf32>
    %93 = vector.shape_cast %92 : vector<8xf32> to vector<8x1xf32>
    %94 = vector.broadcast %93 : vector<8x1xf32> to vector<8x16xf32>
    %95 = arith.subf %90, %94 : vector<8x16xf32>
    %96 = math.exp %95 : vector<8x16xf32>
    %cst_64 = arith.constant dense<0.000000e+00> : vector<8xf32>
    %97 = vector.multi_reduction <add>, %96, %cst_64 [1] : vector<8x16xf32> to vector<8xf32>
    %98 = vector.shape_cast %97 : vector<8xf32> to vector<8x1xf32>
    %99 = math.log %98 : vector<8x1xf32>
    %100 = arith.addf %93, %99 : vector<8x1xf32>
    %101 = tpu.iota {dimensions = array<i32: 1>} : vector<8x16xi32>
    %102 = vector.broadcast %91 : vector<8x1xi32> to vector<8x16xi32>
    %103 = arith.cmpi eq, %101, %102 : vector<8x16xi32>
    %cst_65 = arith.constant 0.000000e+00 : f32
    %104 = vector.broadcast %cst_65 : f32 to vector<8x16xf32>
    %105 = arith.select %103, %90, %104 : vector<8x16xi1>, vector<8x16xf32>
    %cst_66 = arith.constant dense<0.000000e+00> : vector<8xf32>
    %106 = vector.multi_reduction <add>, %105, %cst_66 [1] : vector<8x16xf32> to vector<8xf32>
    %107 = vector.shape_cast %106 : vector<8xf32> to vector<8x1xf32>
    %108 = arith.subf %100, %107 : vector<8x1xf32>
    %cst_67 = arith.constant dense<0.000000e+00> : vector<1xf32>
    %109 = vector.multi_reduction <add>, %108, %cst_67 [0] : vector<8x1xf32> to vector<1xf32>
    %110 = vector.shape_cast %109 : vector<1xf32> to vector<1x1xf32>
    %111 = arith.addf %56, %110 : vector<1x1xf32>
    %c0_68 = arith.constant 0 : index
    %c0_69 = arith.constant 0 : index
    %112 = vector.load %arg2[%c0_68, %c0_69] : memref<8x32xf32, #tpu.memory_space<vmem>>, vector<8x32xf32>
    %cst_70 = arith.constant dense<0.000000e+00> : vector<8x64xf32>
    %113 = tpu.matmul %112, %52, %cst_70 {dimension_numbers = #tpu.dot_dimension_numbers<[1], [0], [0], [1], [0, 0, 1, 1], [], []>} : vector<8x32xf32>, vector<32x64xf32>, vector<8x64xf32> -> vector<8x64xf32>
    %114 = vector.broadcast %53 : vector<1x64xf32> to vector<8x64xf32>
    %115 = arith.addf %113, %114 : vector<8x64xf32>
    %cst_71 = arith.constant 0.000000e+00 : f32
    %116 = vector.broadcast %cst_71 : f32 to vector<8x64xf32>
    %117 = arith.maximumf %115, %116 : vector<8x64xf32>
    %cst_72 = arith.constant dense<0.000000e+00> : vector<8x128xf32>
    %118 = tpu.matmul %117, %54, %cst_72 {dimension_numbers = #tpu.dot_dimension_numbers<[1], [0], [0], [1], [0, 0, 1, 1], [], []>} : vector<8x64xf32>, vector<64x128xf32>, vector<8x128xf32> -> vector<8x128xf32>
    %119 = vector.broadcast %55 : vector<1x128xf32> to vector<8x128xf32>
    %120 = arith.addf %118, %119 : vector<8x128xf32>
    %c1 = arith.constant 1 : index
    %c0_73 = arith.constant 0 : index
    %c0_74 = arith.constant 0 : index
    %121 = vector.load %arg15[%c1, %c0_73, %c0_74] : memref<3x1x128xf32, #tpu.memory_space<vmem>>, vector<1x1x128xf32>
    %122 = vector.shape_cast %121 : vector<1x1x128xf32> to vector<1x128xf32>
    %cst_75 = arith.constant dense<0.000000e+00> : vector<128xf32>
    %123 = vector.multi_reduction <add>, %120, %cst_75 [0] : vector<8x128xf32> to vector<128xf32>
    %124 = vector.shape_cast %123 : vector<128xf32> to vector<1x128xf32>
    %125 = arith.addf %122, %124 : vector<1x128xf32>
    %c1_76 = arith.constant 1 : index
    %c0_77 = arith.constant 0 : index
    %c0_78 = arith.constant 0 : index
    %126 = vector.load %arg15[%c1_76, %c0_77, %c0_78] : memref<3x1x128xf32, #tpu.memory_space<vmem>>, vector<1x1x128xf32>
    %127 = vector.shape_cast %126 : vector<1x1x128xf32> to vector<1x128xf32>
    %128 = vector.shape_cast %125 : vector<1x128xf32> to vector<1x1x128xf32>
    tpu.vector_store %arg15[%c1_76, %c0_77, %c0_78], %128 {strides = array<i32>} : memref<3x1x128xf32, #tpu.memory_space<vmem>>, vector<1x1x128xf32>,
    %c1_79 = arith.constant 1 : index
    %c0_80 = arith.constant 0 : index
    %c0_81 = arith.constant 0 : index
    %129 = vector.load %arg16[%c1_79, %c0_80, %c0_81] : memref<3x1x128xf32, #tpu.memory_space<vmem>>, vector<1x1x128xf32>
    %130 = vector.shape_cast %129 : vector<1x1x128xf32> to vector<1x128xf32>
    %131 = arith.mulf %120, %120 : vector<8x128xf32>
    %cst_82 = arith.constant dense<0.000000e+00> : vector<128xf32>
    %132 = vector.multi_reduction <add>, %131, %cst_82 [0] : vector<8x128xf32> to vector<128xf32>
    %133 = vector.shape_cast %132 : vector<128xf32> to vector<1x128xf32>
    %134 = arith.addf %130, %133 : vector<1x128xf32>
    %c1_83 = arith.constant 1 : index
    %c0_84 = arith.constant 0 : index
    %c0_85 = arith.constant 0 : index
    %135 = vector.load %arg16[%c1_83, %c0_84, %c0_85] : memref<3x1x128xf32, #tpu.memory_space<vmem>>, vector<1x1x128xf32>
    %136 = vector.shape_cast %135 : vector<1x1x128xf32> to vector<1x128xf32>
    %137 = vector.shape_cast %134 : vector<1x128xf32> to vector<1x1x128xf32>
    tpu.vector_store %arg16[%c1_83, %c0_84, %c0_85], %137 {strides = array<i32>} : memref<3x1x128xf32, #tpu.memory_space<vmem>>, vector<1x1x128xf32>,
    %c1_86 = arith.constant 1 : index
    %c0_87 = arith.constant 0 : index
    %c0_88 = arith.constant 0 : index
    %138 = vector.load %arg17[%c1_86, %c0_87, %c0_88] : memref<3x128x128xf32, #tpu.memory_space<vmem>>, vector<1x128x128xf32>
    %139 = vector.shape_cast %138 : vector<1x128x128xf32> to vector<128x128xf32>
    %cst_89 = arith.constant dense<0.000000e+00> : vector<128x128xf32>
    %140 = tpu.matmul %120, %120, %cst_89 {dimension_numbers = #tpu.dot_dimension_numbers<[0], [0], [1], [1], [0, 1, 1, 1], [], []>} : vector<8x128xf32>, vector<8x128xf32>, vector<128x128xf32> -> vector<128x128xf32>
    %141 = arith.addf %139, %140 : vector<128x128xf32>
    %c1_90 = arith.constant 1 : index
    %c0_91 = arith.constant 0 : index
    %c0_92 = arith.constant 0 : index
    %142 = vector.load %arg17[%c1_90, %c0_91, %c0_92] : memref<3x128x128xf32, #tpu.memory_space<vmem>>, vector<1x128x128xf32>
    %143 = vector.shape_cast %142 : vector<1x128x128xf32> to vector<128x128xf32>
    %144 = vector.shape_cast %141 : vector<128x128xf32> to vector<1x128x128xf32>
    tpu.vector_store %arg17[%c1_90, %c0_91, %c0_92], %144 {strides = array<i32>} : memref<3x128x128xf32, #tpu.memory_space<vmem>>, vector<1x128x128xf32>,
    %c0_93 = arith.constant 0 : index
    %c0_94 = arith.constant 0 : index
    %145 = vector.load %arg5[%c0_93, %c0_94] : memref<8x16xf32, #tpu.memory_space<vmem>>, vector<8x16xf32>
    %c0_95 = arith.constant 0 : index
    %c0_96 = arith.constant 0 : index
    %146 = vector.load %arg8[%c0_95, %c0_96] : memref<8x1xi32, #tpu.memory_space<vmem>>, vector<8x1xi32>
    %cst_97 = arith.constant dense<0xFF800000> : vector<8xf32>
    %147 = vector.multi_reduction <maximumf>, %145, %cst_97 [1] : vector<8x16xf32> to vector<8xf32>
    %148 = vector.shape_cast %147 : vector<8xf32> to vector<8x1xf32>
    %149 = vector.broadcast %148 : vector<8x1xf32> to vector<8x16xf32>
    %150 = arith.subf %145, %149 : vector<8x16xf32>
    %151 = math.exp %150 : vector<8x16xf32>
    %cst_98 = arith.constant dense<0.000000e+00> : vector<8xf32>
    %152 = vector.multi_reduction <add>, %151, %cst_98 [1] : vector<8x16xf32> to vector<8xf32>
    %153 = vector.shape_cast %152 : vector<8xf32> to vector<8x1xf32>
    %154 = math.log %153 : vector<8x1xf32>
    %155 = arith.addf %148, %154 : vector<8x1xf32>
    %156 = tpu.iota {dimensions = array<i32: 1>} : vector<8x16xi32>
    %157 = vector.broadcast %146 : vector<8x1xi32> to vector<8x16xi32>
    %158 = arith.cmpi eq, %156, %157 : vector<8x16xi32>
    %cst_99 = arith.constant 0.000000e+00 : f32
    %159 = vector.broadcast %cst_99 : f32 to vector<8x16xf32>
    %160 = arith.select %158, %145, %159 : vector<8x16xi1>, vector<8x16xf32>
    %cst_100 = arith.constant dense<0.000000e+00> : vector<8xf32>
    %161 = vector.multi_reduction <add>, %160, %cst_100 [1] : vector<8x16xf32> to vector<8xf32>
    %162 = vector.shape_cast %161 : vector<8xf32> to vector<8x1xf32>
    %163 = arith.subf %155, %162 : vector<8x1xf32>
    %cst_101 = arith.constant dense<0.000000e+00> : vector<1xf32>
    %164 = vector.multi_reduction <add>, %163, %cst_101 [0] : vector<8x1xf32> to vector<1xf32>
    %165 = vector.shape_cast %164 : vector<1xf32> to vector<1x1xf32>
    %166 = arith.addf %111, %165 : vector<1x1xf32>
    %c0_102 = arith.constant 0 : index
    %c0_103 = arith.constant 0 : index
    %167 = vector.load %arg3[%c0_102, %c0_103] : memref<8x32xf32, #tpu.memory_space<vmem>>, vector<8x32xf32>
    %cst_104 = arith.constant dense<0.000000e+00> : vector<8x64xf32>
    %168 = tpu.matmul %167, %52, %cst_104 {dimension_numbers = #tpu.dot_dimension_numbers<[1], [0], [0], [1], [0, 0, 1, 1], [], []>} : vector<8x32xf32>, vector<32x64xf32>, vector<8x64xf32> -> vector<8x64xf32>
    %169 = vector.broadcast %53 : vector<1x64xf32> to vector<8x64xf32>
    %170 = arith.addf %168, %169 : vector<8x64xf32>
    %cst_105 = arith.constant 0.000000e+00 : f32
    %171 = vector.broadcast %cst_105 : f32 to vector<8x64xf32>
    %172 = arith.maximumf %170, %171 : vector<8x64xf32>
    %cst_106 = arith.constant dense<0.000000e+00> : vector<8x128xf32>
    %173 = tpu.matmul %172, %54, %cst_106 {dimension_numbers = #tpu.dot_dimension_numbers<[1], [0], [0], [1], [0, 0, 1, 1], [], []>} : vector<8x64xf32>, vector<64x128xf32>, vector<8x128xf32> -> vector<8x128xf32>
    %174 = vector.broadcast %55 : vector<1x128xf32> to vector<8x128xf32>
    %175 = arith.addf %173, %174 : vector<8x128xf32>
    %c2 = arith.constant 2 : index
    %c0_107 = arith.constant 0 : index
    %c0_108 = arith.constant 0 : index
    %176 = vector.load %arg15[%c2, %c0_107, %c0_108] : memref<3x1x128xf32, #tpu.memory_space<vmem>>, vector<1x1x128xf32>
    %177 = vector.shape_cast %176 : vector<1x1x128xf32> to vector<1x128xf32>
    %cst_109 = arith.constant dense<0.000000e+00> : vector<128xf32>
    %178 = vector.multi_reduction <add>, %175, %cst_109 [0] : vector<8x128xf32> to vector<128xf32>
    %179 = vector.shape_cast %178 : vector<128xf32> to vector<1x128xf32>
    %180 = arith.addf %177, %179 : vector<1x128xf32>
    %c2_110 = arith.constant 2 : index
    %c0_111 = arith.constant 0 : index
    %c0_112 = arith.constant 0 : index
    %181 = vector.load %arg15[%c2_110, %c0_111, %c0_112] : memref<3x1x128xf32, #tpu.memory_space<vmem>>, vector<1x1x128xf32>
    %182 = vector.shape_cast %181 : vector<1x1x128xf32> to vector<1x128xf32>
    %183 = vector.shape_cast %180 : vector<1x128xf32> to vector<1x1x128xf32>
    tpu.vector_store %arg15[%c2_110, %c0_111, %c0_112], %183 {strides = array<i32>} : memref<3x1x128xf32, #tpu.memory_space<vmem>>, vector<1x1x128xf32>,
    %c2_113 = arith.constant 2 : index
    %c0_114 = arith.constant 0 : index
    %c0_115 = arith.constant 0 : index
    %184 = vector.load %arg16[%c2_113, %c0_114, %c0_115] : memref<3x1x128xf32, #tpu.memory_space<vmem>>, vector<1x1x128xf32>
    %185 = vector.shape_cast %184 : vector<1x1x128xf32> to vector<1x128xf32>
    %186 = arith.mulf %175, %175 : vector<8x128xf32>
    %cst_116 = arith.constant dense<0.000000e+00> : vector<128xf32>
    %187 = vector.multi_reduction <add>, %186, %cst_116 [0] : vector<8x128xf32> to vector<128xf32>
    %188 = vector.shape_cast %187 : vector<128xf32> to vector<1x128xf32>
    %189 = arith.addf %185, %188 : vector<1x128xf32>
    %c2_117 = arith.constant 2 : index
    %c0_118 = arith.constant 0 : index
    %c0_119 = arith.constant 0 : index
    %190 = vector.load %arg16[%c2_117, %c0_118, %c0_119] : memref<3x1x128xf32, #tpu.memory_space<vmem>>, vector<1x1x128xf32>
    %191 = vector.shape_cast %190 : vector<1x1x128xf32> to vector<1x128xf32>
    %192 = vector.shape_cast %189 : vector<1x128xf32> to vector<1x1x128xf32>
    tpu.vector_store %arg16[%c2_117, %c0_118, %c0_119], %192 {strides = array<i32>} : memref<3x1x128xf32, #tpu.memory_space<vmem>>, vector<1x1x128xf32>,
    %c2_120 = arith.constant 2 : index
    %c0_121 = arith.constant 0 : index
    %c0_122 = arith.constant 0 : index
    %193 = vector.load %arg17[%c2_120, %c0_121, %c0_122] : memref<3x128x128xf32, #tpu.memory_space<vmem>>, vector<1x128x128xf32>
    %194 = vector.shape_cast %193 : vector<1x128x128xf32> to vector<128x128xf32>
    %cst_123 = arith.constant dense<0.000000e+00> : vector<128x128xf32>
    %195 = tpu.matmul %175, %175, %cst_123 {dimension_numbers = #tpu.dot_dimension_numbers<[0], [0], [1], [1], [0, 1, 1, 1], [], []>} : vector<8x128xf32>, vector<8x128xf32>, vector<128x128xf32> -> vector<128x128xf32>
    %196 = arith.addf %194, %195 : vector<128x128xf32>
    %c2_124 = arith.constant 2 : index
    %c0_125 = arith.constant 0 : index
    %c0_126 = arith.constant 0 : index
    %197 = vector.load %arg17[%c2_124, %c0_125, %c0_126] : memref<3x128x128xf32, #tpu.memory_space<vmem>>, vector<1x128x128xf32>
    %198 = vector.shape_cast %197 : vector<1x128x128xf32> to vector<128x128xf32>
    %199 = vector.shape_cast %196 : vector<128x128xf32> to vector<1x128x128xf32>
    tpu.vector_store %arg17[%c2_124, %c0_125, %c0_126], %199 {strides = array<i32>} : memref<3x128x128xf32, #tpu.memory_space<vmem>>, vector<1x128x128xf32>,
    %c0_127 = arith.constant 0 : index
    %c0_128 = arith.constant 0 : index
    %200 = vector.load %arg6[%c0_127, %c0_128] : memref<8x16xf32, #tpu.memory_space<vmem>>, vector<8x16xf32>
    %c0_129 = arith.constant 0 : index
    %c0_130 = arith.constant 0 : index
    %201 = vector.load %arg9[%c0_129, %c0_130] : memref<8x1xi32, #tpu.memory_space<vmem>>, vector<8x1xi32>
    %cst_131 = arith.constant dense<0xFF800000> : vector<8xf32>
    %202 = vector.multi_reduction <maximumf>, %200, %cst_131 [1] : vector<8x16xf32> to vector<8xf32>
    %203 = vector.shape_cast %202 : vector<8xf32> to vector<8x1xf32>
    %204 = vector.broadcast %203 : vector<8x1xf32> to vector<8x16xf32>
    %205 = arith.subf %200, %204 : vector<8x16xf32>
    %206 = math.exp %205 : vector<8x16xf32>
    %cst_132 = arith.constant dense<0.000000e+00> : vector<8xf32>
    %207 = vector.multi_reduction <add>, %206, %cst_132 [1] : vector<8x16xf32> to vector<8xf32>
    %208 = vector.shape_cast %207 : vector<8xf32> to vector<8x1xf32>
    %209 = math.log %208 : vector<8x1xf32>
    %210 = arith.addf %203, %209 : vector<8x1xf32>
    %211 = tpu.iota {dimensions = array<i32: 1>} : vector<8x16xi32>
    %212 = vector.broadcast %201 : vector<8x1xi32> to vector<8x16xi32>
    %213 = arith.cmpi eq, %211, %212 : vector<8x16xi32>
    %cst_133 = arith.constant 0.000000e+00 : f32
    %214 = vector.broadcast %cst_133 : f32 to vector<8x16xf32>
    %215 = arith.select %213, %200, %214 : vector<8x16xi1>, vector<8x16xf32>
    %cst_134 = arith.constant dense<0.000000e+00> : vector<8xf32>
    %216 = vector.multi_reduction <add>, %215, %cst_134 [1] : vector<8x16xf32> to vector<8xf32>
    %217 = vector.shape_cast %216 : vector<8xf32> to vector<8x1xf32>
    %218 = arith.subf %210, %217 : vector<8x1xf32>
    %cst_135 = arith.constant dense<0.000000e+00> : vector<1xf32>
    %219 = vector.multi_reduction <add>, %218, %cst_135 [0] : vector<8x1xf32> to vector<1xf32>
    %220 = vector.shape_cast %219 : vector<1xf32> to vector<1x1xf32>
    %221 = arith.addf %166, %220 : vector<1x1xf32>
    %c0_136 = arith.constant 0 : index
    %c0_137 = arith.constant 0 : index
    %222 = vector.load %arg19[%c0_136, %c0_137] : memref<1x1xf32, #tpu.memory_space<vmem>>, vector<1x1xf32>
    %223 = arith.addf %222, %221 : vector<1x1xf32>
    %c0_138 = arith.constant 0 : index
    %c0_139 = arith.constant 0 : index
    %224 = vector.load %arg19[%c0_138, %c0_139] : memref<1x1xf32, #tpu.memory_space<vmem>>, vector<1x1xf32>
    tpu.vector_store %arg19[%c0_138, %c0_139], %223 {strides = array<i32>} : memref<1x1xf32, #tpu.memory_space<vmem>>, vector<1x1xf32>,
    %225 = arith.subf %65, %120 : vector<8x128xf32>
    %c0_140 = arith.constant 0 : index
    %c0_141 = arith.constant 0 : index
    %226 = vector.load %arg20[%c0_140, %c0_141] : memref<1x1xf32, #tpu.memory_space<vmem>>, vector<1x1xf32>
    %227 = arith.mulf %225, %225 : vector<8x128xf32>
    %cst_142 = arith.constant dense<0.000000e+00> : vector<8xf32>
    %228 = vector.multi_reduction <add>, %227, %cst_142 [1] : vector<8x128xf32> to vector<8xf32>
    %229 = vector.shape_cast %228 : vector<8xf32> to vector<8x1xf32>
    %cst_143 = arith.constant dense<0.000000e+00> : vector<1xf32>
    %230 = vector.multi_reduction <add>, %229, %cst_143 [0] : vector<8x1xf32> to vector<1xf32>
    %231 = vector.shape_cast %230 : vector<1xf32> to vector<1x1xf32>
    %232 = arith.addf %226, %231 : vector<1x1xf32>
    %c0_144 = arith.constant 0 : index
    %c0_145 = arith.constant 0 : index
    %233 = vector.load %arg20[%c0_144, %c0_145] : memref<1x1xf32, #tpu.memory_space<vmem>>, vector<1x1xf32>
    tpu.vector_store %arg20[%c0_144, %c0_145], %232 {strides = array<i32>} : memref<1x1xf32, #tpu.memory_space<vmem>>, vector<1x1xf32>,
    %c1_i32 = arith.constant 1 : i32
    %234 = arith.cmpi eq, %arg0, %c1_i32 : i32
    %235 = arith.extui %234 : i1 to i32
    %c0_i32_146 = arith.constant 0 : i32
    %236 = arith.cmpi ne, %235, %c0_i32_146 : i32
    scf.if %236 {
      %cst_147 = arith.constant 0.000000e+00 : f32
      %237 = vector.broadcast %cst_147 : f32 to vector<1x1xf32>
      %cst_148 = arith.constant 0.000000e+00 : f32
      %238 = vector.broadcast %cst_148 : f32 to vector<1x1xf32>
      %c0_149 = arith.constant 0 : index
      %c0_150 = arith.constant 0 : index
      %c0_151 = arith.constant 0 : index
      %239 = vector.load %arg15[%c0_149, %c0_150, %c0_151] : memref<3x1x128xf32, #tpu.memory_space<vmem>>, vector<1x1x128xf32>
      %240 = vector.shape_cast %239 : vector<1x1x128xf32> to vector<1x128xf32>
      %c0_152 = arith.constant 0 : index
      %c0_153 = arith.constant 0 : index
      %c0_154 = arith.constant 0 : index
      %241 = vector.load %arg16[%c0_152, %c0_153, %c0_154] : memref<3x1x128xf32, #tpu.memory_space<vmem>>, vector<1x1x128xf32>
      %242 = vector.shape_cast %241 : vector<1x1x128xf32> to vector<1x128xf32>
      %c0_155 = arith.constant 0 : index
      %c0_156 = arith.constant 0 : index
      %c0_157 = arith.constant 0 : index
      %243 = vector.load %arg17[%c0_155, %c0_156, %c0_157] : memref<3x128x128xf32, #tpu.memory_space<vmem>>, vector<1x128x128xf32>
      %244 = vector.shape_cast %243 : vector<1x128x128xf32> to vector<128x128xf32>
      %245 = arith.mulf %240, %240 : vector<1x128xf32>
      %cst_158 = arith.constant 1.600000e+01 : f32
      %246 = vector.broadcast %cst_158 : f32 to vector<1x128xf32>
      %247 = arith.divf %245, %246 : vector<1x128xf32>
      %248 = arith.subf %242, %247 : vector<1x128xf32>
      %cst_159 = arith.constant 0.0666666701 : f32
      %249 = vector.broadcast %cst_159 : f32 to vector<1x128xf32>
      %250 = arith.mulf %248, %249 : vector<1x128xf32>
      %cst_160 = arith.constant 0.000000e+00 : f32
      %251 = vector.broadcast %cst_160 : f32 to vector<1x128xf32>
      %252 = arith.maximumf %250, %251 : vector<1x128xf32>
      %253 = math.sqrt %252 : vector<1x128xf32>
      %cst_161 = arith.constant 1.000000e+00 : f32
      %254 = vector.broadcast %cst_161 : f32 to vector<1x128xf32>
      %255 = arith.subf %254, %253 : vector<1x128xf32>
      %cst_162 = arith.constant 0.000000e+00 : f32
      %256 = vector.broadcast %cst_162 : f32 to vector<1x128xf32>
      %257 = arith.maximumf %255, %256 : vector<1x128xf32>
      %cst_163 = arith.constant dense<0.000000e+00> : vector<1xf32>
      %258 = vector.multi_reduction <add>, %257, %cst_163 [1] : vector<1x128xf32> to vector<1xf32>
      %259 = vector.shape_cast %258 : vector<1xf32> to vector<1x1xf32>
      %cst_164 = arith.constant 1.280000e+02 : f32
      %260 = vector.broadcast %cst_164 : f32 to vector<1x1xf32>
      %261 = arith.divf %259, %260 : vector<1x1xf32>
      %262 = arith.addf %237, %261 : vector<1x1xf32>
      %cst_165 = arith.constant dense<0.000000e+00> : vector<128x128xf32>
      %263 = tpu.matmul %240, %240, %cst_165 {dimension_numbers = #tpu.dot_dimension_numbers<[0], [0], [1], [1], [0, 1, 1, 1], [], []>} : vector<1x128xf32>, vector<1x128xf32>, vector<128x128xf32> -> vector<128x128xf32>
      %cst_166 = arith.constant 1.600000e+01 : f32
      %264 = vector.broadcast %cst_166 : f32 to vector<128x128xf32>
      %265 = arith.divf %263, %264 : vector<128x128xf32>
      %266 = arith.subf %244, %265 : vector<128x128xf32>
      %cst_167 = arith.constant 0.0666666701 : f32
      %267 = vector.broadcast %cst_167 : f32 to vector<128x128xf32>
      %268 = arith.mulf %266, %267 : vector<128x128xf32>
      %269 = arith.mulf %268, %268 : vector<128x128xf32>
      %cst_168 = arith.constant dense<0.000000e+00> : vector<128xf32>
      %270 = vector.multi_reduction <add>, %269, %cst_168 [1] : vector<128x128xf32> to vector<128xf32>
      %271 = vector.shape_cast %270 : vector<128xf32> to vector<128x1xf32>
      %cst_169 = arith.constant dense<0.000000e+00> : vector<1xf32>
      %272 = vector.multi_reduction <add>, %271, %cst_169 [0] : vector<128x1xf32> to vector<1xf32>
      %273 = vector.shape_cast %272 : vector<1xf32> to vector<1x1xf32>
      %274 = arith.mulf %252, %252 : vector<1x128xf32>
      %cst_170 = arith.constant dense<0.000000e+00> : vector<1xf32>
      %275 = vector.multi_reduction <add>, %274, %cst_170 [1] : vector<1x128xf32> to vector<1xf32>
      %276 = vector.shape_cast %275 : vector<1xf32> to vector<1x1xf32>
      %277 = arith.subf %273, %276 : vector<1x1xf32>
      %cst_171 = arith.constant 1.280000e+02 : f32
      %278 = vector.broadcast %cst_171 : f32 to vector<1x1xf32>
      %279 = arith.divf %277, %278 : vector<1x1xf32>
      %280 = arith.addf %238, %279 : vector<1x1xf32>
      %c1_172 = arith.constant 1 : index
      %c0_173 = arith.constant 0 : index
      %c0_174 = arith.constant 0 : index
      %281 = vector.load %arg15[%c1_172, %c0_173, %c0_174] : memref<3x1x128xf32, #tpu.memory_space<vmem>>, vector<1x1x128xf32>
      %282 = vector.shape_cast %281 : vector<1x1x128xf32> to vector<1x128xf32>
      %c1_175 = arith.constant 1 : index
      %c0_176 = arith.constant 0 : index
      %c0_177 = arith.constant 0 : index
      %283 = vector.load %arg16[%c1_175, %c0_176, %c0_177] : memref<3x1x128xf32, #tpu.memory_space<vmem>>, vector<1x1x128xf32>
      %284 = vector.shape_cast %283 : vector<1x1x128xf32> to vector<1x128xf32>
      %c1_178 = arith.constant 1 : index
      %c0_179 = arith.constant 0 : index
      %c0_180 = arith.constant 0 : index
      %285 = vector.load %arg17[%c1_178, %c0_179, %c0_180] : memref<3x128x128xf32, #tpu.memory_space<vmem>>, vector<1x128x128xf32>
      %286 = vector.shape_cast %285 : vector<1x128x128xf32> to vector<128x128xf32>
      %287 = arith.mulf %282, %282 : vector<1x128xf32>
      %cst_181 = arith.constant 1.600000e+01 : f32
      %288 = vector.broadcast %cst_181 : f32 to vector<1x128xf32>
      %289 = arith.divf %287, %288 : vector<1x128xf32>
      %290 = arith.subf %284, %289 : vector<1x128xf32>
      %cst_182 = arith.constant 0.0666666701 : f32
      %291 = vector.broadcast %cst_182 : f32 to vector<1x128xf32>
      %292 = arith.mulf %290, %291 : vector<1x128xf32>
      %cst_183 = arith.constant 0.000000e+00 : f32
      %293 = vector.broadcast %cst_183 : f32 to vector<1x128xf32>
      %294 = arith.maximumf %292, %293 : vector<1x128xf32>
      %295 = math.sqrt %294 : vector<1x128xf32>
      %cst_184 = arith.constant 1.000000e+00 : f32
      %296 = vector.broadcast %cst_184 : f32 to vector<1x128xf32>
      %297 = arith.subf %296, %295 : vector<1x128xf32>
      %cst_185 = arith.constant 0.000000e+00 : f32
      %298 = vector.broadcast %cst_185 : f32 to vector<1x128xf32>
      %299 = arith.maximumf %297, %298 : vector<1x128xf32>
      %cst_186 = arith.constant dense<0.000000e+00> : vector<1xf32>
      %300 = vector.multi_reduction <add>, %299, %cst_186 [1] : vector<1x128xf32> to vector<1xf32>
      %301 = vector.shape_cast %300 : vector<1xf32> to vector<1x1xf32>
      %cst_187 = arith.constant 1.280000e+02 : f32
      %302 = vector.broadcast %cst_187 : f32 to vector<1x1xf32>
      %303 = arith.divf %301, %302 : vector<1x1xf32>
      %304 = arith.addf %262, %303 : vector<1x1xf32>
      %cst_188 = arith.constant dense<0.000000e+00> : vector<128x128xf32>
      %305 = tpu.matmul %282, %282, %cst_188 {dimension_numbers = #tpu.dot_dimension_numbers<[0], [0], [1], [1], [0, 1, 1, 1], [], []>} : vector<1x128xf32>, vector<1x128xf32>, vector<128x128xf32> -> vector<128x128xf32>
      %cst_189 = arith.constant 1.600000e+01 : f32
      %306 = vector.broadcast %cst_189 : f32 to vector<128x128xf32>
      %307 = arith.divf %305, %306 : vector<128x128xf32>
      %308 = arith.subf %286, %307 : vector<128x128xf32>
      %cst_190 = arith.constant 0.0666666701 : f32
      %309 = vector.broadcast %cst_190 : f32 to vector<128x128xf32>
      %310 = arith.mulf %308, %309 : vector<128x128xf32>
      %311 = arith.mulf %310, %310 : vector<128x128xf32>
      %cst_191 = arith.constant dense<0.000000e+00> : vector<128xf32>
      %312 = vector.multi_reduction <add>, %311, %cst_191 [1] : vector<128x128xf32> to vector<128xf32>
      %313 = vector.shape_cast %312 : vector<128xf32> to vector<128x1xf32>
      %cst_192 = arith.constant dense<0.000000e+00> : vector<1xf32>
      %314 = vector.multi_reduction <add>, %313, %cst_192 [0] : vector<128x1xf32> to vector<1xf32>
      %315 = vector.shape_cast %314 : vector<1xf32> to vector<1x1xf32>
      %316 = arith.mulf %294, %294 : vector<1x128xf32>
      %cst_193 = arith.constant dense<0.000000e+00> : vector<1xf32>
      %317 = vector.multi_reduction <add>, %316, %cst_193 [1] : vector<1x128xf32> to vector<1xf32>
      %318 = vector.shape_cast %317 : vector<1xf32> to vector<1x1xf32>
      %319 = arith.subf %315, %318 : vector<1x1xf32>
      %cst_194 = arith.constant 1.280000e+02 : f32
      %320 = vector.broadcast %cst_194 : f32 to vector<1x1xf32>
      %321 = arith.divf %319, %320 : vector<1x1xf32>
      %322 = arith.addf %280, %321 : vector<1x1xf32>
      %c2_195 = arith.constant 2 : index
      %c0_196 = arith.constant 0 : index
      %c0_197 = arith.constant 0 : index
      %323 = vector.load %arg15[%c2_195, %c0_196, %c0_197] : memref<3x1x128xf32, #tpu.memory_space<vmem>>, vector<1x1x128xf32>
      %324 = vector.shape_cast %323 : vector<1x1x128xf32> to vector<1x128xf32>
      %c2_198 = arith.constant 2 : index
      %c0_199 = arith.constant 0 : index
      %c0_200 = arith.constant 0 : index
      %325 = vector.load %arg16[%c2_198, %c0_199, %c0_200] : memref<3x1x128xf32, #tpu.memory_space<vmem>>, vector<1x1x128xf32>
      %326 = vector.shape_cast %325 : vector<1x1x128xf32> to vector<1x128xf32>
      %c2_201 = arith.constant 2 : index
      %c0_202 = arith.constant 0 : index
      %c0_203 = arith.constant 0 : index
      %327 = vector.load %arg17[%c2_201, %c0_202, %c0_203] : memref<3x128x128xf32, #tpu.memory_space<vmem>>, vector<1x128x128xf32>
      %328 = vector.shape_cast %327 : vector<1x128x128xf32> to vector<128x128xf32>
      %329 = arith.mulf %324, %324 : vector<1x128xf32>
      %cst_204 = arith.constant 1.600000e+01 : f32
      %330 = vector.broadcast %cst_204 : f32 to vector<1x128xf32>
      %331 = arith.divf %329, %330 : vector<1x128xf32>
      %332 = arith.subf %326, %331 : vector<1x128xf32>
      %cst_205 = arith.constant 0.0666666701 : f32
      %333 = vector.broadcast %cst_205 : f32 to vector<1x128xf32>
      %334 = arith.mulf %332, %333 : vector<1x128xf32>
      %cst_206 = arith.constant 0.000000e+00 : f32
      %335 = vector.broadcast %cst_206 : f32 to vector<1x128xf32>
      %336 = arith.maximumf %334, %335 : vector<1x128xf32>
      %337 = math.sqrt %336 : vector<1x128xf32>
      %cst_207 = arith.constant 1.000000e+00 : f32
      %338 = vector.broadcast %cst_207 : f32 to vector<1x128xf32>
      %339 = arith.subf %338, %337 : vector<1x128xf32>
      %cst_208 = arith.constant 0.000000e+00 : f32
      %340 = vector.broadcast %cst_208 : f32 to vector<1x128xf32>
      %341 = arith.maximumf %339, %340 : vector<1x128xf32>
      %cst_209 = arith.constant dense<0.000000e+00> : vector<1xf32>
      %342 = vector.multi_reduction <add>, %341, %cst_209 [1] : vector<1x128xf32> to vector<1xf32>
      %343 = vector.shape_cast %342 : vector<1xf32> to vector<1x1xf32>
      %cst_210 = arith.constant 1.280000e+02 : f32
      %344 = vector.broadcast %cst_210 : f32 to vector<1x1xf32>
      %345 = arith.divf %343, %344 : vector<1x1xf32>
      %346 = arith.addf %304, %345 : vector<1x1xf32>
      %cst_211 = arith.constant dense<0.000000e+00> : vector<128x128xf32>
      %347 = tpu.matmul %324, %324, %cst_211 {dimension_numbers = #tpu.dot_dimension_numbers<[0], [0], [1], [1], [0, 1, 1, 1], [], []>} : vector<1x128xf32>, vector<1x128xf32>, vector<128x128xf32> -> vector<128x128xf32>
      %cst_212 = arith.constant 1.600000e+01 : f32
      %348 = vector.broadcast %cst_212 : f32 to vector<128x128xf32>
      %349 = arith.divf %347, %348 : vector<128x128xf32>
      %350 = arith.subf %328, %349 : vector<128x128xf32>
      %cst_213 = arith.constant 0.0666666701 : f32
      %351 = vector.broadcast %cst_213 : f32 to vector<128x128xf32>
      %352 = arith.mulf %350, %351 : vector<128x128xf32>
      %353 = arith.mulf %352, %352 : vector<128x128xf32>
      %cst_214 = arith.constant dense<0.000000e+00> : vector<128xf32>
      %354 = vector.multi_reduction <add>, %353, %cst_214 [1] : vector<128x128xf32> to vector<128xf32>
      %355 = vector.shape_cast %354 : vector<128xf32> to vector<128x1xf32>
      %cst_215 = arith.constant dense<0.000000e+00> : vector<1xf32>
      %356 = vector.multi_reduction <add>, %355, %cst_215 [0] : vector<128x1xf32> to vector<1xf32>
      %357 = vector.shape_cast %356 : vector<1xf32> to vector<1x1xf32>
      %358 = arith.mulf %336, %336 : vector<1x128xf32>
      %cst_216 = arith.constant dense<0.000000e+00> : vector<1xf32>
      %359 = vector.multi_reduction <add>, %358, %cst_216 [1] : vector<1x128xf32> to vector<1xf32>
      %360 = vector.shape_cast %359 : vector<1xf32> to vector<1x1xf32>
      %361 = arith.subf %357, %360 : vector<1x1xf32>
      %cst_217 = arith.constant 1.280000e+02 : f32
      %362 = vector.broadcast %cst_217 : f32 to vector<1x1xf32>
      %363 = arith.divf %361, %362 : vector<1x1xf32>
      %364 = arith.addf %322, %363 : vector<1x1xf32>
      %cst_218 = arith.constant 3.000000e+00 : f32
      %365 = vector.broadcast %cst_218 : f32 to vector<1x1xf32>
      %366 = arith.divf %346, %365 : vector<1x1xf32>
      %cst_219 = arith.constant 3.000000e+00 : f32
      %367 = vector.broadcast %cst_219 : f32 to vector<1x1xf32>
      %368 = arith.divf %364, %367 : vector<1x1xf32>
      %c0_220 = arith.constant 0 : index
      %c0_221 = arith.constant 0 : index
      %369 = vector.load %arg18[%c0_220, %c0_221] : memref<1x1xf32, #tpu.memory_space<vmem>>, vector<1x1xf32>
      %cst_222 = arith.constant 1.600000e+01 : f32
      %370 = vector.broadcast %cst_222 : f32 to vector<1x1xf32>
      %371 = arith.divf %369, %370 : vector<1x1xf32>
      %c0_223 = arith.constant 0 : index
      %c0_224 = arith.constant 0 : index
      %372 = vector.load %arg19[%c0_223, %c0_224] : memref<1x1xf32, #tpu.memory_space<vmem>>, vector<1x1xf32>
      %cst_225 = arith.constant 4.800000e+01 : f32
      %373 = vector.broadcast %cst_225 : f32 to vector<1x1xf32>
      %374 = arith.divf %372, %373 : vector<1x1xf32>
      %c0_226 = arith.constant 0 : index
      %c0_227 = arith.constant 0 : index
      %375 = vector.load %arg20[%c0_226, %c0_227] : memref<1x1xf32, #tpu.memory_space<vmem>>, vector<1x1xf32>
      %cst_228 = arith.constant 2.048000e+03 : f32
      %376 = vector.broadcast %cst_228 : f32 to vector<1x1xf32>
      %377 = arith.divf %375, %376 : vector<1x1xf32>
      %378 = tpu.iota {dimensions = array<i32: 1>} : vector<1x128xi32>
      %c0_i32_229 = arith.constant 0 : i32
      %379 = vector.broadcast %c0_i32_229 : i32 to vector<1x128xi32>
      %380 = arith.cmpi eq, %378, %379 : vector<1x128xi32>
      %cst_230 = arith.constant 0.000000e+00 : f32
      %381 = vector.shape_cast %371 : vector<1x1xf32> to vector<1x1xf32>
      %382 = vector.broadcast %381 : vector<1x1xf32> to vector<1x128xf32>
      %383 = vector.broadcast %cst_230 : f32 to vector<1x128xf32>
      %384 = arith.select %380, %382, %383 : vector<1x128xi1>, vector<1x128xf32>
      %c1_i32_231 = arith.constant 1 : i32
      %385 = vector.broadcast %c1_i32_231 : i32 to vector<1x128xi32>
      %386 = arith.cmpi eq, %378, %385 : vector<1x128xi32>
      %387 = vector.shape_cast %374 : vector<1x1xf32> to vector<1x1xf32>
      %388 = vector.broadcast %387 : vector<1x1xf32> to vector<1x128xf32>
      %389 = arith.select %386, %388, %384 : vector<1x128xi1>, vector<1x128xf32>
      %c2_i32 = arith.constant 2 : i32
      %390 = vector.broadcast %c2_i32 : i32 to vector<1x128xi32>
      %391 = arith.cmpi eq, %378, %390 : vector<1x128xi32>
      %392 = vector.shape_cast %366 : vector<1x1xf32> to vector<1x1xf32>
      %393 = vector.broadcast %392 : vector<1x1xf32> to vector<1x128xf32>
      %394 = arith.select %391, %393, %389 : vector<1x128xi1>, vector<1x128xf32>
      %c3_i32 = arith.constant 3 : i32
      %395 = vector.broadcast %c3_i32 : i32 to vector<1x128xi32>
      %396 = arith.cmpi eq, %378, %395 : vector<1x128xi32>
      %397 = vector.shape_cast %377 : vector<1x1xf32> to vector<1x1xf32>
      %398 = vector.broadcast %397 : vector<1x1xf32> to vector<1x128xf32>
      %399 = arith.select %396, %398, %394 : vector<1x128xi1>, vector<1x128xf32>
      %c4_i32 = arith.constant 4 : i32
      %400 = vector.broadcast %c4_i32 : i32 to vector<1x128xi32>
      %401 = arith.cmpi eq, %378, %400 : vector<1x128xi32>
      %402 = vector.shape_cast %368 : vector<1x1xf32> to vector<1x1xf32>
      %403 = vector.broadcast %402 : vector<1x1xf32> to vector<1x128xf32>
      %404 = arith.select %401, %403, %399 : vector<1x128xi1>, vector<1x128xf32>
      %c0_232 = arith.constant 0 : index
      %c0_233 = arith.constant 0 : index
      %405 = vector.load %arg14[%c0_232, %c0_233] : memref<1x128xf32, #tpu.memory_space<vmem>>, vector<1x128xf32>
      tpu.vector_store %arg14[%c0_232, %c0_233], %404 {strides = array<i32>} : memref<1x128xf32, #tpu.memory_space<vmem>>, vector<1x128xf32>,
    } else {
    }
    return
  }
  func.func @transform_0(%arg0: i32) -> (i32, i32) {
    %c0_i32 = arith.constant 0 : i32
    %c0_i32_0 = arith.constant 0 : i32
    return %arg0, %c0_i32 : i32, i32
  }
  func.func @transform_1(%arg0: i32) -> (i32, i32) {
    %c0_i32 = arith.constant 0 : i32
    %c0_i32_0 = arith.constant 0 : i32
    return %arg0, %c0_i32 : i32, i32
  }
  func.func @transform_2(%arg0: i32) -> (i32, i32) {
    %c0_i32 = arith.constant 0 : i32
    %c0_i32_0 = arith.constant 0 : i32
    return %arg0, %c0_i32 : i32, i32
  }
  func.func @transform_3(%arg0: i32) -> (i32, i32) {
    %c0_i32 = arith.constant 0 : i32
    %c0_i32_0 = arith.constant 0 : i32
    return %arg0, %c0_i32 : i32, i32
  }
  func.func @transform_4(%arg0: i32) -> (i32, i32) {
    %c0_i32 = arith.constant 0 : i32
    %c0_i32_0 = arith.constant 0 : i32
    return %arg0, %c0_i32 : i32, i32
  }
  func.func @transform_5(%arg0: i32) -> (i32, i32) {
    %c0_i32 = arith.constant 0 : i32
    %c0_i32_0 = arith.constant 0 : i32
    return %arg0, %c0_i32 : i32, i32
  }
  func.func @transform_6(%arg0: i32) -> (i32, i32) {
    %c0_i32 = arith.constant 0 : i32
    %c0_i32_0 = arith.constant 0 : i32
    return %arg0, %c0_i32 : i32, i32
  }
  func.func @transform_7(%arg0: i32) -> (i32, i32) {
    %c0_i32 = arith.constant 0 : i32
    %c0_i32_0 = arith.constant 0 : i32
    return %arg0, %c0_i32 : i32, i32
  }
  func.func @transform_8(%arg0: i32) -> (i32, i32) {
    %c0_i32 = arith.constant 0 : i32
    %c0_i32_0 = arith.constant 0 : i32
    return %arg0, %c0_i32 : i32, i32
  }
  func.func @transform_9(%arg0: i32) -> (i32, i32) {
    %c0_i32 = arith.constant 0 : i32
    %c0_i32_0 = arith.constant 0 : i32
    %c0_i32_1 = arith.constant 0 : i32
    return %c0_i32, %c0_i32_0 : i32, i32
  }
  func.func @transform_10(%arg0: i32) -> (i32, i32) {
    %c0_i32 = arith.constant 0 : i32
    %c0_i32_0 = arith.constant 0 : i32
    %c0_i32_1 = arith.constant 0 : i32
    return %c0_i32, %c0_i32_0 : i32, i32
  }
  func.func @transform_11(%arg0: i32) -> (i32, i32) {
    %c0_i32 = arith.constant 0 : i32
    %c0_i32_0 = arith.constant 0 : i32
    %c0_i32_1 = arith.constant 0 : i32
    return %c0_i32, %c0_i32_0 : i32, i32
  }
  func.func @transform_12(%arg0: i32) -> (i32, i32) {
    %c0_i32 = arith.constant 0 : i32
    %c0_i32_0 = arith.constant 0 : i32
    %c0_i32_1 = arith.constant 0 : i32
    return %c0_i32, %c0_i32_0 : i32, i32
  }
  func.func @transform_13(%arg0: i32) -> (i32, i32) {
    %c0_i32 = arith.constant 0 : i32
    %c0_i32_0 = arith.constant 0 : i32
    %c0_i32_1 = arith.constant 0 : i32
    return %c0_i32, %c0_i32_0 : i32, i32
  }
}

</mosaic_0001>

<bundles_post_ra>
// kernel: tpu_custom_call.1
= control target key start
LH: loop header
LB: loop body
LE: loop exit
PB: predicated region body
PF: predicated region fallthrough
CT: control target
= control target key end

     0   :  { %s4270_s0 = inlined_call_operand.vmem [shape: f32[16,32], index: 0, kind: input, shape index: {}]   ;;  %s4271_s1 = inlined_call_operand.hbm [shape: f32[16,32], index: 1, kind: input, shape index: {}]   ;;  %s4272_s2 = inlined_call_operand.hbm [shape: f32[16,32], index: 2, kind: input, shape index: {}]   ;;  %s4273_s3 = inlined_call_operand.hbm [shape: f32[16,16], index: 3, kind: input, shape index: {}]   ;;  %s4274_s4 = inlined_call_operand.hbm [shape: f32[16,16], index: 4, kind: input, shape index: {}]   ;;  %s4275_s5 = inlined_call_operand.hbm [shape: f32[16,16], index: 5, kind: input, shape index: {}]   ;;  %s4276_s6 = inlined_call_operand.vmem [shape: s32[16,1], index: 6, kind: input, shape index: {}]   ;;  %s4277_s7 = inlined_call_operand.vmem [shape: s32[16,1], index: 7, kind: input, shape index: {}]   ;;  %s4278_s8 = inlined_call_operand.vmem [shape: s32[16,1], index: 8, kind: input, shape index: {}]   ;;  %s4279_s9 = inlined_call_operand.vmem [shape: f32[32,64], index: 9, kind: input, shape index: {}]   ;;  %s4280_s10 = inlined_call_operand.vmem [shape: f32[1,64], index: 10, kind: input, shape index: {}]   ;;  %s4281_s11 = inlined_call_operand.hbm [shape: f32[64,128], index: 11, kind: input, shape index: {}]   ;;  %s4282_s12 = inlined_call_operand.vmem [shape: f32[1,128], index: 12, kind: input, shape index: {}]   ;;  %s4283_s13 = inlined_call_operand.hbm [shape: f32[1,128], index: 13, kind: output, shape index: {}]  }
   0x1   :  { %4288 = sst [smem:[#allocation27_spill]] %s4272_s2 }
   0x2   :  { %4289 = sst [smem:[#allocation28_spill]] %s4274_s4 }
   0x3   :  { %4290 = sst [smem:[#allocation29_spill]] %s4276_s6 }
   0x4   :  { %4291 = sst [smem:[#allocation30_spill]] %s4277_s7 }
   0x5   :  { %4292 = sst [smem:[#allocation31_spill]] %s4278_s8 }
   0x6   :  { %4293 = sst [smem:[#allocation32_spill]] %s4279_s9 }
   0x7   :  { %4294 = sst [smem:[#allocation33_spill]] %s4280_s10 }
   0x8   :  { %4295 = sst [smem:[#allocation34_spill]] %s4281_s11 }
   0x9   :  { %4296 = sst [smem:[#allocation35_spill]] %s4282_s12 }
   0xa   :  { %4297 = sst [smem:[#allocation36_spill]] %s4283_s13 }
   0xb   :  { %18 = vsyncpa [#allocation9], 0 }
   0xc   :  { %20 = vsyncpa [#allocation9 + $0x1], 0 }
   0xd   :  { %21 = vsyncpa [#allocation12], 0 }
   0xe   :  { %23 = vsyncpa [#allocation12 + $0x1], 0 }
   0xf   :  { %24 = vsyncpa [#allocation15], 0 }
  0x10   :  { %26 = vsyncpa [#allocation15 + $0x1], 0 }
  0x11   :  { %27 = vsyncpa [#allocation18], 0 }
  0x12   :  { %28 = vsyncpa [#allocation10], 0  ;;  %s3560_s25 = smov 0   ;;  %s3562_s26 = smov 0  }
  0x13   :  { %s3564_s27 = smov 0   ;;  %s3566_s28 = smov 0  }
  0x14 LB: > { %s3581_s29 = sadd.s32 1, %s3476_s28   ;;  %s67_s30 = sadd.s32 1, %s3472_s27  ;;  %s3476_s28 = sphi %s3566_s28, %s4321_s28   ;;  %s3472_s27 = sphi %s3564_s27, %s4325_s27   ;;  %s3468_s26 = sphi %s3562_s26, %s4324_s26   ;;  %s3464_s25 = sphi %s3560_s25, %s4323_s25  }
  0x15   : > { %4298 = sst [smem:[#allocation25_spill]] %s3581_s29  ;;  %s64_s14 = ssub.s32 %s3476_s28, %s3581_s29 }
  0x16   : > { %p74_p0 = scmp.ne.s32.totalorder %s3472_s27, %s3468_s26  ;;  %p65_p1 = scmp.eq.s32.totalorder %s64_s14, 0 }
  0x17   : > { %p75_p2 = scmp.eq.s32.totalorder %s3476_s28, 0  ;;  %p3129_p3 = scmp.lt.s32.totalorder %s3476_s28, 2 }
  0x18   : > { %s3591_s15 = scalar_select %p65_p1, %s3472_s27, %s67_s30  }
  0x19   : > { %p76_p4 = por %p75_p2, %p74_p0  ;;  %s4284_s16 = sand.u32 1, %s3472_s27  }
  0x1a   : > { %4299 = sst [smem:[#allocation26_spill]] %s3591_s15  ;;  %s3596_s17 = sshll.u32 %s4284_s16, 3 }
  0x1b   : > { %s3599_s18 = sshll.u32 %s3476_s28, 3  ;;  %p3601_p5 = pnand %p3129_p3, %p76_p4 }
  0x1c   : > { %s440_s20 = sand.u32 1, %s3476_s28   ;;  %s4301_s2 = sld [smem:[#allocation27_spill]] }
  0x1d   : > { %s444_s30 = scalar_lea.vmem [#allocation11], %s3596_s17  ;;  %s3611_s16 = scalar_lea.sflag [#allocation12], %s440_s20 }
  0x1e   : > { %s452_s14 = sshll.u32 %s444_s30, 4  ;;  %p3615_p7 = pneg %p3601_p5  ;;  %s453_s14 = int_to_ptr.vmem [resolvable:$true] %s452_s14 }
  0x22   : > { %s448_s23 = scalar_lea.hbm %s4301_s2, %s3599_s18 }
  0x23   : > { %s450_s24 = sshll.u32 %s448_s23, 4  ;;  %s3225_s23 = scalar_lea.hbm %s4301_s2, 16  ;;  %s451_s24 = int_to_ptr.hbm [resolvable:$true] %s450_s24 }
  0x24   : > { %s3218_s15 = sshra.s32 %s451_s24, 4  ;;  %s3219_s15 = int_to_ptr.hbm [resolvable:$true] %s3218_s15 }
  0x25   : > { %s3220_s29 = scalar_lea.hbm %s3219_s15, 8  ;;  %p3226_p10 = scmp.lt.s32.totalorder %s3219_s15, %s4301_s2 }
  0x26   : > { %p3221_p6 = scmp.ne.s32.totalorder %s3219_s15, %s3220_s29  ;;  %p3227_p11 = scmp.lt.s32.totalorder %s3225_s23, %s3220_s29 }
  0x28   : > { %p3223_p8 = pnand %p3615_p7, %p3221_p6  ;;  %p3228_p12 = por %p3227_p11, %p3226_p10 }
  0x2a   : > { %p3224_p9 = pneg %p3223_p8 }
  0x2c   : > { %p3229_p13 = pnand %p3228_p12, %p3224_p9 }
  0x2e   : > { %3232 = shalt.err (!%p3229_p13)
}
  0x2f   : > { %3118 = dma.hbm_to_vmem [thread:$0]  (!%p3601_p5), %s451_s24, 128, %s453_s14, %s3611_s16  }
  0x30   : > { %s4303_s4 = sld [smem:[#allocation28_spill]]  ;;  %s482_s22 = scalar_lea.vmem [#allocation14], %s3596_s17 }
  0x31   : > { %s490_s8 = sshll.u32 %s482_s22, 4  ;;  %s3635_s12 = scalar_lea.sflag [#allocation15], %s440_s20  ;;  %s491_s8 = int_to_ptr.vmem [resolvable:$true] %s490_s8 }
  0x36   : > { %s486_s21 = scalar_lea.hbm %s4303_s4, %s3599_s18  ;;  %s3255_s14 = scalar_lea.hbm %s4303_s4, 16 }
  0x37   : > { %s488_s7 = sshll.u32 %s486_s21, 4  ;;  %s489_s7 = int_to_ptr.hbm [resolvable:$true] %s488_s7 }
  0x38   : > { %s3248_s29 = sshra.s32 %s489_s7, 4  ;;  %s3249_s29 = int_to_ptr.hbm [resolvable:$true] %s3248_s29 }
  0x39   : > { %s3250_s15 = scalar_lea.hbm %s3249_s29, 8  ;;  %p3256_p3 = scmp.lt.s32.totalorder %s3249_s29, %s4303_s4 }
  0x3a   : > { %p3251_p0 = scmp.ne.s32.totalorder %s3249_s29, %s3250_s15  ;;  %p3257_p4 = scmp.lt.s32.totalorder %s3255_s14, %s3250_s15 }
  0x3c   : > { %p3253_p1 = pnand %p3251_p0, %p3615_p7  ;;  %p3258_p6 = por %p3257_p4, %p3256_p3 }
  0x3e   : > { %p3254_p2 = pneg %p3253_p1 }
  0x40   : > { %p3259_p8 = pnand %p3258_p6, %p3254_p2 }
  0x42   : > { %3262 = shalt.err (!%p3259_p8)
}
  0x43   : > { %3124 = dma.hbm_to_vmem [thread:$0]  (!%p3601_p5), %s489_s7, 128, %s491_s8, %s3635_s12  }
  0x44   : > { %s3649_s20 = sadd.s32 4294967295, %s3476_s28   ;;  %p80_p9 = scmp.ne.s32.totalorder %s3468_s26, %s3464_s25 }
  0x45   : > { %p81_p10 = scmp.eq.s32.totalorder %s3649_s20, 0  ;;  %p2950_p11 = scmp.ge.s32.totalorder %s3476_s28, 1 }
  0x46   : > { %p378_p12 = scmp.lt.s32.totalorder %s3476_s28, 3  ;;  %p2951_p0 = scmp.ne.s32.totalorder %s3649_s20, 0 }
  0x47   : > { %p3658_p13 = por %p81_p10, %p80_p9  ;;  %s4306_s11 = sld [smem:[#allocation34_spill]] }
  0x48   : > { %p3663_p1 = pnand %p2950_p11, %p378_p12  ;;  %s3478_s25 = smov [#allocation17]  }
  0x49   : > { %s397_s28 = sshll.u32 %s3478_s25, 4  ;;  %s429_s23 = scalar_lea.hbm %s4271_s1, %s3599_s18  ;;  %s398_s28 = int_to_ptr.vmem [resolvable:$true] %s397_s28 }
  0x4a   : > { %p3108_p2 = pneg %p3663_p1  ;;  %s3479_s24 = smov 128  }
  0x4b   : > { %s3480_s14 = smov 8   ;;  %s431_s9 = sshll.u32 %s429_s23, 4  ;;  %s432_s9 = int_to_ptr.hbm [resolvable:$true] %s431_s9 }
  0x4c   : > { %p3109_p3 = pnand %p3108_p2, %p81_p10  ;;  %s425_s10 = scalar_lea.vmem [#allocation8], %s3596_s17 }
  0x4d   : > { %s395_s22 = sshll.u32 %s4306_s11, 4  ;;  %s433_s8 = sshll.u32 %s425_s10, 4  ;;  %s396_s22 = int_to_ptr.hbm [resolvable:$true] %s395_s22  ;;  %s434_s8 = int_to_ptr.vmem [resolvable:$true] %s433_s8 }
  0x4e   : > { %3111 = dma.hbm_to_vmem [thread:$0]  (!%p3109_p3), %s396_s22, 1024, %s398_s28, [#allocation18], %s3479_s24, %s3479_s24, %s3480_s14  }
  0x4f   : > { %s4307_s21 = sand.u32 1, %s3472_s27   ;;  %s3308_s4 = sshra.s32 %s432_s9, 4  ;;  %s3309_s4 = int_to_ptr.hbm [resolvable:$true] %s3308_s4 }
  0x50   : > { %s422_s2 = scalar_lea.sflag [#allocation9], %s4307_s21  ;;  %s3310_s25 = scalar_lea.hbm %s3309_s4, 8 }
  0x51   : > { %p3311_p4 = scmp.ne.s32.totalorder %s3309_s4, %s3310_s25  ;;  %s3315_s15 = scalar_lea.hbm %s4271_s1, 16 }
  0x52   : > { %p3316_p9 = scmp.lt.s32.totalorder %s3309_s4, %s4271_s1  ;;  %p3317_p11 = scmp.lt.s32.totalorder %s3315_s15, %s3310_s25 }
  0x53   : > { %p3313_p6 = pnand %p3311_p4, %p3615_p7 }
  0x54   : > { %p3318_p12 = por %p3317_p11, %p3316_p9 }
  0x55   : > { %p3314_p8 = pneg %p3313_p6 }
  0x57   : > { %p3319_p2 = pnand %p3318_p12, %p3314_p8 }
  0x59   : > { %3322 = shalt.err (!%p3319_p2)
}
  0x5a   : > { %3115 = dma.hbm_to_vmem [thread:$0]  (!%p3601_p5), %s432_s9, 128, %s434_s8, %s422_s2  }
  0x5b   : > { %s467_s24 = scalar_lea.hbm %s4273_s3, %s3599_s18  ;;  %s463_s14 = scalar_lea.vmem [#allocation13], %s3596_s17 }
  0x5c   : > { %s469_s11 = sshll.u32 %s467_s24, 4  ;;  %s471_s10 = sshll.u32 %s463_s14, 4  ;;  %s470_s11 = int_to_ptr.hbm [resolvable:$true] %s469_s11  ;;  %s472_s10 = int_to_ptr.vmem [resolvable:$true] %s471_s10 }
  0x5d   : > { %s3338_s4 = sshra.s32 %s470_s11, 4  ;;  %s3345_s2 = scalar_lea.hbm %s4273_s3, 16  ;;  %s3339_s4 = int_to_ptr.hbm [resolvable:$true] %s3338_s4 }
  0x5e   : > { %s3340_s6 = scalar_lea.hbm %s3339_s4, 8  ;;  %p3346_p8 = scmp.lt.s32.totalorder %s3339_s4, %s4273_s3 }
  0x5f   : > { %p3341_p3 = scmp.ne.s32.totalorder %s3339_s4, %s3340_s6  ;;  %p3347_p9 = scmp.lt.s32.totalorder %s3345_s2, %s3340_s6 }
  0x61   : > { %p3343_p4 = pnand %p3341_p3, %p3615_p7  ;;  %p3348_p11 = por %p3347_p9, %p3346_p8 }
  0x63   : > { %p3344_p6 = pneg %p3343_p4 }
  0x65   : > { %p3349_p12 = pnand %p3348_p11, %p3344_p6 }
  0x67   : > { %3352 = shalt.err (!%p3349_p12)
}
  0x68   : > { %3121 = dma.hbm_to_vmem [thread:$0]  (!%p3601_p5), %s470_s11, 128, %s472_s10, %s3611_s16  }
  0x69   : > { %s505_s22 = scalar_lea.hbm %s4275_s5, %s3599_s18  ;;  %s501_s23 = scalar_lea.vmem [#allocation16], %s3596_s17 }
  0x6a   : > { %s507_s28 = sshll.u32 %s505_s22, 4  ;;  %s509_s24 = sshll.u32 %s501_s23, 4  ;;  %s508_s28 = int_to_ptr.hbm [resolvable:$true] %s507_s28  ;;  %s510_s24 = int_to_ptr.vmem [resolvable:$true] %s509_s24 }
  0x6b   : > { %s3368_s14 = sshra.s32 %s508_s28, 4  ;;  %s3375_s16 = scalar_lea.hbm %s4275_s5, 16  ;;  %s3369_s14 = int_to_ptr.hbm [resolvable:$true] %s3368_s14 }
  0x6c   : > { %s3370_s4 = scalar_lea.hbm %s3369_s14, 8  ;;  %p3376_p6 = scmp.lt.s32.totalorder %s3369_s14, %s4275_s5 }
  0x6d   : > { %p3371_p2 = scmp.ne.s32.totalorder %s3369_s14, %s3370_s4  ;;  %p3377_p8 = scmp.lt.s32.totalorder %s3375_s16, %s3370_s4 }
  0x6f   : > { %p3373_p3 = pnand %p3371_p2, %p3615_p7  ;;  %p3378_p9 = por %p3377_p8, %p3376_p6 }
  0x71   : > { %p3374_p4 = pneg %p3373_p3 }
  0x73   : > { %p3379_p11 = pnand %p3378_p9, %p3374_p4 }
  0x75   : > { %3382 = shalt.err (!%p3379_p11)
}
  0x76   : > { %3127 = dma.hbm_to_vmem [thread:$0]  (!%p3601_p5), %s508_s28, 128, %s510_s24, %s3635_s12  }
  0x77   : > { %539 = sbr.rel (%p3663_p1) target bundleno = 2011 (0x7db), region = 72  ;;  %s541_s13 = sand.u32 (!%p3663_p1), 1, %s3468_s26  }
  0x78   : > { %s3726_s17 = sshll.u32 (!%p3663_p1), %s541_s13, 3  ;;  %s542_s18 = scalar_lea.sflag (!%p3663_p1), [#allocation9], %s541_s13 }
  0x79   : > { %s545_s25 = scalar_lea.vmem (!%p3663_p1), [#allocation8], %s3726_s17 }
  0x7c   : > { %3443 = dma.done.wait (%p3658_p13), %s542_s18, 128  }
  0x7d   : > { %3445 = vsyncadd (%p3658_p13), %s542_s18, 4294967168  ;;  %s551_s19 = sand.u32 1, %s3649_s20   ;;  %s555_s7 = scalar_lea.vmem [#allocation11], %s3726_s17 }
  0x7e   : > { %s552_s12 = scalar_lea.sflag [#allocation12], %s551_s19 }
  0x7f   : > { %3447 = dma.done.wait (%p3658_p13), %s552_s12, 256  }
  0x80   : > { %3449 = vsyncadd (%p3658_p13), %s552_s12, 4294967040  ;;  %s565_s2 = scalar_lea.vmem [#allocation13], %s3726_s17  ;;  %s572_s9 = scalar_lea.sflag [#allocation15], %s551_s19 }
  0x81   : > { %s575_s8 = scalar_lea.vmem [#allocation14], %s3726_s17 }
  0x82   : > { %3451 = dma.done.wait (%p3658_p13), %s572_s9, 256  }
  0x83   : > { %3453 = vsyncadd (%p3658_p13), %s572_s9, 4294967040  ;;  %s585_s29 = scalar_lea.vmem [#allocation16], %s3726_s17 }
  0x84   : > { %3455 = dma.done.wait (%p81_p10), [#allocation18], 1024  }
  0x85   : > { %3457 = vsyncadd (%p81_p10), [#allocation18], 4294966272  ;;  %p665_p5 = scmp.lt.s32.totalorder %s3649_s20, 1  ;;  %s4308_s4 = sld [smem:[#allocation29_spill]] }
  0x86   : > { %s4309_s11 = sld [smem:[#allocation30_spill]] }
  0x87   : > { %s666_s15 = scalar_select %p665_p5, %s3649_s20, 1 }
  0x88   : > { %s4310_s19 = sld [smem:[#allocation31_spill]] }
  0x89   : > { %s3752_s22 = sshll.u32 %s666_s15, 3 }
  0x8a   : > { %s668_s30 = scalar_lea.vmem %s4270_s0, %s3752_s22  ;;  %684 = sbr.rel (%p2951_p0) target bundleno = 201 (0xc9), region = 100 }
  0x8b   : > { %s672_s6 = scalar_lea.vmem %s4308_s4, %s3752_s22 }
  0x8c   : > { %s676_s10 = scalar_lea.vmem %s4309_s11, %s3752_s22 }
  0x8e   : > { %s680_s12 = scalar_lea.vmem %s4310_s19, %s3752_s22 }
  0x8f   : > { %v3481_v0 = vmov 0.0   ;;  %vm739_vm0 = vcmask 0  }
  0x90   : > { %685 = vst [vmem:[#allocation2] sm:$0x1] %v3481_v0 }
  0x91   : > { %686 = vst [vmem:[#allocation2 + $0x1] sm:$0x1] %v3481_v0 }
  0x92   : > { %687 = vst [vmem:[#allocation2 + $0x2] sm:$0x1] %v3481_v0 }
  0x93   : > { %688 = vst [vmem:[#allocation3] sm:$0x1] %v3481_v0 }
  0x94   : > { %689 = vst [vmem:[#allocation3 + $0x1] sm:$0x1] %v3481_v0 }
  0x95   : > { %690 = vst [vmem:[#allocation3 + $0x2] sm:$0x1] %v3481_v0 }
  0x96   : > { %691 = vst [vmem:[#allocation4 + $0xb0] sm:$0xff] %v3481_v0 }
  0x97   : > { %692 = vst [vmem:[#allocation4 + $0xd0] sm:$0xff] %v3481_v0 }
  0x98   : > { %693 = vst [vmem:[#allocation4 + $0x10] sm:$0xff] %v3481_v0 }
  0x99   : > { %694 = vst [vmem:[#allocation4 + $0x48] sm:$0xff] %v3481_v0 }
  0x9a   : > { %695 = vst [vmem:[#allocation4 + $0x160] sm:$0xff] %v3481_v0 }
  0x9b   : > { %696 = vst [vmem:[#allocation4 + $0x128] sm:$0xff] %v3481_v0 }
  0x9c   : > { %697 = vst [vmem:[#allocation4 + $0x40] sm:$0xff] %v3481_v0 }
  0x9d   : > { %698 = vst [vmem:[#allocation4 + $0x178] sm:$0xff] %v3481_v0 }
  0x9e   : > { %699 = vst [vmem:[#allocation4 + $0x108] sm:$0xff] %v3481_v0 }
  0x9f   : > { %700 = vst [vmem:[#allocation4 + $0x110] sm:$0xff] %v3481_v0 }
  0xa0   : > { %701 = vst [vmem:[#allocation4 + $0x90] sm:$0xff] %v3481_v0 }
  0xa1   : > { %702 = vst [vmem:[#allocation4 + $0x118] sm:$0xff] %v3481_v0 }
  0xa2   : > { %703 = vst [vmem:[#allocation4 + $0x148] sm:$0xff] %v3481_v0 }
  0xa3   : > { %704 = vst [vmem:[#allocation4 + $0x100] sm:$0xff] %v3481_v0 }
  0xa4   : > { %705 = vst [vmem:[#allocation4 + $0x58] sm:$0xff] %v3481_v0 }
  0xa5   : > { %706 = vst [vmem:[#allocation4 + $0xd8] sm:$0xff] %v3481_v0 }
  0xa6   : > { %707 = vst [vmem:[#allocation4 + $0x80] sm:$0xff] %v3481_v0 }
  0xa7   : > { %708 = vst [vmem:[#allocation4 + $0x130] sm:$0xff] %v3481_v0 }
  0xa8   : > { %709 = vst [vmem:[#allocation4 + $0x138] sm:$0xff] %v3481_v0 }
  0xa9   : > { %710 = vst [vmem:[#allocation4 + $0x120] sm:$0xff] %v3481_v0 }
  0xaa   : > { %711 = vst [vmem:[#allocation4 + $0xe0] sm:$0xff] %v3481_v0 }
  0xab   : > { %712 = vst [vmem:[#allocation4 + $0xa8] sm:$0xff] %v3481_v0 }
  0xac   : > { %713 = vst [vmem:[#allocation4 + $0xb8] sm:$0xff] %v3481_v0 }
  0xad   : > { %714 = vst [vmem:[#allocation4 + $0x168] sm:$0xff] %v3481_v0 }
  0xae   : > { %715 = vst [vmem:[#allocation4 + $0xe8] sm:$0xff] %v3481_v0 }
  0xaf   : > { %716 = vst [vmem:[#allocation4 + $0xf8] sm:$0xff] %v3481_v0 }
  0xb0   : > { %717 = vst [vmem:[#allocation4 + $0x20] sm:$0xff] %v3481_v0 }
  0xb1   : > { %718 = vst [vmem:[#allocation4 + $0x88] sm:$0xff] %v3481_v0 }
  0xb2   : > { %719 = vst [vmem:[#allocation4 + $0xa0] sm:$0xff] %v3481_v0 }
  0xb3   : > { %720 = vst [vmem:[#allocation4 + $0x170] sm:$0xff] %v3481_v0 }
  0xb4   : > { %721 = vst [vmem:[#allocation4 + $0xf0] sm:$0xff] %v3481_v0 }
  0xb5   : > { %722 = vst [vmem:[#allocation4 + $0x140] sm:$0xff] %v3481_v0 }
  0xb6   : > { %723 = vst [vmem:[#allocation4 + $0x60] sm:$0xff] %v3481_v0 }
  0xb7   : > { %724 = vst [vmem:[#allocation4 + $0xc8] sm:$0xff] %v3481_v0 }
  0xb8   : > { %725 = vst [vmem:[#allocation4 + $0x28] sm:$0xff] %v3481_v0 }
  0xb9   : > { %726 = vst [vmem:[#allocation4 + $0x38] sm:$0xff] %v3481_v0 }
  0xba   : > { %727 = vst [vmem:[#allocation4 + $0xc0] sm:$0xff] %v3481_v0 }
  0xbb   : > { %728 = vst [vmem:[#allocation4 + $0x18] sm:$0xff] %v3481_v0 }
  0xbc   : > { %729 = vst [vmem:[#allocation4 + $0x98] sm:$0xff] %v3481_v0 }
  0xbd   : > { %730 = vst [vmem:[#allocation4 + $0x8] sm:$0xff] %v3481_v0 }
  0xbe   : > { %731 = vst [vmem:[#allocation4] sm:$0xff] %v3481_v0 }
  0xbf   : > { %732 = vst [vmem:[#allocation4 + $0x78] sm:$0xff] %v3481_v0 }
  0xc0   : > { %733 = vst [vmem:[#allocation4 + $0x50] sm:$0xff] %v3481_v0 }
  0xc1   : > { %734 = vst [vmem:[#allocation4 + $0x68] sm:$0xff] %v3481_v0 }
  0xc2   : > { %735 = vst [vmem:[#allocation4 + $0x70] sm:$0xff] %v3481_v0 }
  0xc3   : > { %736 = vst [vmem:[#allocation4 + $0x30] sm:$0xff] %v3481_v0 }
  0xc4   : > { %737 = vst [vmem:[#allocation4 + $0x158] sm:$0xff] %v3481_v0 }
  0xc5   : > { %738 = vst [vmem:[#allocation4 + $0x150] sm:$0xff] %v3481_v0 }
  0xc6   : > { %740 = vst.msk [vmem:[#allocation5] sm:$0x1] %vm739_vm0, %v3481_v0 }
  0xc7   : > { %741 = vst.msk [vmem:[#allocation6] sm:$0x1] %vm739_vm0, %v3481_v0 }
  0xc8   : > { %742 = vst.msk [vmem:[#allocation7] sm:$0x1] %vm739_vm0, %v3481_v0 }
  0xc9 PF: > { %s4311_s28 = sld [smem:[#allocation32_spill]]  ;;  %v3781_v4 = vld [vmem:[#allocation17 + $0x38] sm:$0xff]  ;;  %v3783_v5 = vld [vmem:[#allocation17 + $0x30] sm:$0xff]  ;;  %vm746_vm1 = vcmask 261120   ;;  %v3794_v7 = vld [vmem:[%s668_s30] sm:$0xff]  ;;  %vm854_vm2 = vcmask 523264  }
  0xca   : > { %866 = vmatpush.msra.mxu1 %v3781_v4  ;;  %v3798_v8 = vld [vmem:[%s545_s25] sm:$0xff]  ;;  %v3801_v9 = vld [vmem:[#allocation17 + $0x28] sm:$0xff]  ;;  %v3807_v10 = vld [vmem:[#allocation17 + $0x20] sm:$0xff]  ;;  %s4313_s19 = sld [smem:[#allocation33_spill]]  ;;  %vm1093_vm3 = vcmask 130048   ;;  %vm945_vm4 = vcmask 64512  }
  0xcb   : > { %v3811_v11 = vld [vmem:[#allocation17 + $0x18] sm:$0xff]  ;;  %v3819_v12 = vld [vmem:[#allocation17 + $0x10] sm:$0xff]  ;;  %v3823_v13 = vld [vmem:[#allocation17 + $0x8] sm:$0xff]  ;;  %vm807_vm13 = vcmask 0   ;;  %p3029_p7 = scmp.ne.s32.totalorder %s3649_s20, 1 }
  0xcc   : > { %867 = vmatpush.msra.mxu1 %v3783_v5  ;;  %v3827_v14 = vld [vmem:[#allocation17] sm:$0xff]  ;;  %v3855_v38 = vld [vmem:[%s565_s2] sm:$0xff]  ;;  %v887_v54 = vld [vmem:[#allocation3] sm:$0x1] }
  0xcd   : > { %v773_v22 = vld [vmem:[%s555_s7] sm:$0xff]  ;;  %v1094_v43 = vsel %vm1093_vm3, %v3855_v38, -inf }
  0xce   : > { %868 = vmatpush.msra.mxu1 %v3801_v9  ;;  %v774_v23 = vmul.f32 %v3794_v7, %v773_v22  ;;  %v778_v26 = vmul.f32 %v773_v22, %v773_v22  ;;  %v878_v49 = vld [vmem:[#allocation2] sm:$0x1]  ;;  %v1173_v62 = vld [vmem:[#allocation2 + $0x1] sm:$0x1] }
  0xcf   : > { %s4312_s23 = smov %s4311_s28  ;;  %v812_v1 = vld [vmem:[%s4311_s28 + $0x18] sm:$0xff]  ;;  %s4314_s28 = sld [smem:[#allocation35_spill]] }
  0xd0   : > { %v811_v2 = vld [vmem:[%s4312_s23 + $0x10] sm:$0xff]  ;;  %842 = vmatpush.msra.mxu0 %v812_v1  ;;  %1140 = vmatpush.msra.mxu3 %v812_v1  ;;  %v810_v3 = vld [vmem:[%s4312_s23 + $0x8] sm:$0xff]  ;;  %v809_v6 = vld [vmem:[%s4312_s23] sm:$0xff]  ;;  %v775_v24 = vsel %vm746_vm1, %v774_v23, 0.0  ;;  %v779_v29 = vsel %vm746_vm1, %v778_v26, 0.0 }
  0xd1   : > { %869 = vmatpush.msra.mxu1 %v3807_v10  ;;  %v3834_v15 = vld [vmem:[%s4313_s19] ss:$0 sm:$0xff]  ;;  %776 = vadd.xlane.f32.xlu2 %v775_v24  ;;  %v750_v24 = vmul.f32 %v3794_v7, %v3794_v7 }
  0xd2   : > { %843 = vmatpush.msra.mxu0 %v811_v2  ;;  %1141 = vmatpush.msra.mxu3 %v811_v2 }
  0xd3   : > { %870 = vmatpush.msra.mxu1 %v3811_v11  ;;  %v751_v26 = vsel %vm746_vm1, %v750_v24, 0.0 }
  0xd4   : > { %844 = vmatpush.msra.mxu0 %v810_v3  ;;  %1142 = vmatpush.msra.mxu3 %v810_v3 }
  0xd5   : > { %871 = vmatpush.msra.mxu1 %v3819_v12  ;;  %v3848_v25 = vld [vmem:[%s4314_s28] ss:$0 sm:$0xff] }
  0xd6   : > { %845 = vmatpush.msra.mxu0 %v809_v6  ;;  %1143 = vmatpush.msra.mxu3 %v809_v6 }
  0xd7   : > { %2975 = vmatmul.msk.f32.vlgmr.msra.gmra.mxu0 %vm746_vm1, %v3794_v7  ;;  %2993 = vmatmul.msk.f32.vlgmr.msra.gmra.mxu3 %vm746_vm1, %v3798_v8 }
  0xd8   : > { %1160 = vmatpush.msrb.mxu0 %v3781_v4  ;;  %872 = vmatpush.msra.mxu1 %v3823_v13 }
  0xd9   : > { %780 = vadd.xlane.f32.xlu2 %v779_v29  ;;  %v3482_v29 = vmov 0  }
  0xda   : > { %1161 = vmatpush.msrb.mxu0 %v3783_v5  ;;  %873 = vmatpush.msra.mxu1 %v3827_v14 }
  0xdc   : > { %1162 = vmatpush.msrb.mxu0 %v3801_v9  ;;  %1433 = vmatpush.msrb.mxu1 %v812_v1  ;;  %v1183_v1 = vld [vmem:[#allocation3 + $0x1] sm:$0x1] }
  0xde   : > { %1163 = vmatpush.msrb.mxu0 %v3807_v10  ;;  %1434 = vmatpush.msrb.mxu1 %v811_v2 }
  0xe0   : > { %1164 = vmatpush.msrb.mxu0 %v3811_v11  ;;  %1435 = vmatpush.msrb.mxu1 %v810_v3 }
  0xe1   : > { %1095 = vmax.xlane.f32.xlu2 %v1094_v43 }
  0xe2   : > { %1165 = vmatpush.msrb.mxu0 %v3819_v12  ;;  %1436 = vmatpush.msrb.mxu1 %v809_v6 }
  0xe4   : > { %1166 = vmatpush.msrb.mxu0 %v3823_v13 }
  0xe6   : > { %1167 = vmatpush.msrb.mxu0 %v3827_v14 }
 0x144   : > { %v3869_v6 = vpop.xlane.xlu2 %776 }
 0x154   : > { %v847_v16 = vpop.f32.mrf.mxu0 }
 0x155   : > { %v848_v17 = vadd.f32 %v3834_v15, %v847_v16 }
 0x157   : > { %v850_v18 = vmax.f32 %v848_v17, 0.0 }
 0x159   : > { %2976 = vmatmul.msk.f32.vlgmr.msra.gmra.mxu1 %vm854_vm2, %v850_v18 }
 0x15a   : > { %v1145_v19 = vpop.f32.mrf.mxu3 }
 0x15b   : > { %v1146_v20 = vadd.f32 %v3834_v15, %v1145_v19 }
 0x15d   : > { %v1148_v21 = vmax.f32 %v1146_v20, 0.0 }
 0x15f   : > { %2994 = vmatmul.msk.f32.vlgmr.msrb.gmra.mxu0 %vm854_vm2, %v1148_v21 }
 0x161   : > { %3011 = vmatmul.msk.f32.vlgmr.msrb.gmra.mxu1 %vm746_vm1, %v773_v22 }
 0x1d6   : > { %v875_v27 = vpop.f32.mrf.mxu1 }
 0x1d7   : > { %v876_v28 = vadd.f32 %v3848_v25, %v875_v27 }
 0x1d9   : > { %v879_v30 = vrot.slane %v876_v28, 4  ;;  %v888_v31 = vmul.f32 %v876_v28, %v876_v28  ;;  %913 = vxpose.xlu1.b32.start.end [1/1] (short) %v876_v28, 128  ;;  %1009 = vmatpush.msra.mxu2 %v876_v28 }
 0x1db   : > { %v880_v32 = vadd.f32 %v879_v30, %v876_v28  ;;  %v889_v33 = vrot.slane %v888_v31, 4  ;;  %v754_v30 = vmul.f32 %v3798_v8, %v3798_v8 }
 0x1dc   : > { %v1169_v34 = vpop.f32.mrf.mxu0 }
 0x1dd   : > { %v881_v35 = vrot.slane %v880_v32, 2  ;;  %v890_v36 = vadd.f32 %v889_v33, %v888_v31  ;;  %v1170_v37 = vadd.f32 %v3848_v25, %v1169_v34  ;;  %v755_v31 = vsel %vm746_vm1, %v754_v30, 0.0  ;;  %v3897_v34 = vld [vmem:[%s575_s8] sm:$0xff] }
 0x1de   : > { %v1438_v43 = vpop.f32.mrf.mxu1 }
 0x1df   : > { %v882_v39 = vadd.f32 %v881_v35, %v880_v32  ;;  %v891_v40 = vrot.slane %v890_v36, 2  ;;  %v1174_v41 = vrot.slane %v1170_v37, 4  ;;  %v1184_v42 = vmul.f32 %v1170_v37, %v1170_v37  ;;  %1210 = vxpose.xlu0.b32.start.end [1/1] (short) %v1170_v37, 128  ;;  %1305 = vmatpush.msra.mxu0 %v1170_v37 }
 0x1e0   : > { %3085 = vmatpush.msrb.mxu3 %v1170_v37  ;;  %v3860_v44 = vsub.f32 %v876_v28, %v1170_v37  ;;  %v1389_v35 = vsel %vm1093_vm3, %v3897_v34, -inf }
 0x1e1   : > { %1453 = vmatpush.msrb.mxu0 %v3781_v4  ;;  %v883_v45 = vrot.slane %v882_v39, 1  ;;  %v892_v46 = vadd.f32 %v891_v40, %v890_v36  ;;  %v1175_v47 = vadd.f32 %v1174_v41, %v1170_v37  ;;  %v1185_v48 = vrot.slane %v1184_v42, 4 }
 0x1e2   : > { %v745_v36 = vmul.f32 %v3798_v8, %v3794_v7 }
 0x1e3   : > { %1454 = vmatpush.msrb.mxu0 %v3783_v5  ;;  %v884_v50 = vadd.f32 %v883_v45, %v882_v39  ;;  %v893_v51 = vrot.slane %v892_v46, 1  ;;  %v1176_v52 = vrot.slane %v1175_v47, 2  ;;  %v1186_v53 = vadd.f32 %v1185_v48, %v1184_v42  ;;  %v3908_v42 = vld [vmem:[%s585_s29] sm:$0xff]  ;;  %v1681_v48 = vld [vmem:[%s680_s12] sm:$0xff] }
 0x1e4   : > { %v747_v40 = vsel %vm746_vm1, %v745_v36, 0.0  ;;  %v1682_v7 = vsel %vm1093_vm3, %v3908_v42, -inf  ;;  %v1439_v45 = vadd.f32 %v3834_v15, %v1438_v43  ;;  %v1092_v15 = vld [vmem:[%s672_s6] sm:$0xff] }
 0x1e5   : > { %1455 = vmatpush.msrb.mxu0 %v3801_v9  ;;  %v885_v55 = vadd.f32 %v884_v50, %v878_v49  ;;  %v894_v56 = vadd.f32 %v893_v51, %v892_v46  ;;  %v1177_v57 = vadd.f32 %v1176_v52, %v1175_v47  ;;  %v1187_v58 = vrot.slane %v1186_v53, 2 }
 0x1e6   : > { %v1441_v46 = vmax.f32 %v1439_v45, 0.0 }
 0x1e7   : > { %1456 = vmatpush.msrb.mxu0 %v3807_v10  ;;  %886 = vst [vmem:[#allocation2] sm:$0x1] %v885_v55  ;;  %v895_v59 = vadd.f32 %v894_v56, %v887_v54  ;;  %v1178_v60 = vrot.slane %v1177_v57, 1  ;;  %v1188_v61 = vadd.f32 %v1187_v58, %v1186_v53  ;;  %v3871_v10 = vpop.xlane.xlu2 %780  ;;  %v1388_v53 = vld [vmem:[%s676_s10] sm:$0xff] }
 0x1e9   : > { %1457 = vmatpush.msrb.mxu0 %v3811_v11  ;;  %896 = vst [vmem:[#allocation3] sm:$0x1] %v895_v59  ;;  %v1179_v63 = vadd.f32 %v1178_v60, %v1177_v57  ;;  %v1189_v0 = vrot.slane %v1188_v61, 1 }
 0x1eb   : > { %1458 = vmatpush.msrb.mxu0 %v3819_v12  ;;  %v1180_v2 = vadd.f32 %v1179_v63, %v1173_v62  ;;  %v1190_v3 = vadd.f32 %v1189_v0, %v1188_v61  ;;  %v897_v0 = vld [vmem:[#allocation4 + $0xb0] sm:$0xff] }
 0x1ed   : > { %1459 = vmatpush.msrb.mxu0 %v3823_v13  ;;  %1181 = vst [vmem:[#allocation2 + $0x1] sm:$0x1] %v1180_v2  ;;  %v1191_v4 = vadd.f32 %v1190_v3, %v1183_v1  ;;  %v898_v3 = vld [vmem:[#allocation4 + $0xd0] sm:$0xff] }
 0x1ef   : > { %1460 = vmatpush.msrb.mxu0 %v3827_v14  ;;  %1192 = vst [vmem:[#allocation3 + $0x1] sm:$0x1] %v1191_v4  ;;  %v3873_v16 = vpop.xlane.xlu2 %1095 }
 0x1f0   : > { %v1097_v12 = vsub.f32 %v3855_v38, %v3873_v16 }
 0x1f2   : > { %v1098_v13 = vmul.f32 1.442695, %v1097_v12  ;;  %v1194_v12 = vld [vmem:[#allocation4 + $0x80] sm:$0xff] }
 0x1f4   : > { %3183 = vpow2.f32 %v1098_v13 }
 0x1fa   : > { %v3184_v18 = vpop.eup %3183 }
 0x1fb   : > { %v1100_v19 = vsel %vm1093_vm3, %v3184_v18, 0.0 }
 0x1fc   : > { %1101 = vadd.xlane.f32.xlu2 %v1100_v19  ;;  %v899_v19 = vld [vmem:[#allocation4 + $0x10] sm:$0xff] }
 0x22c   : > { %3180 = vset.pattern.permute.xlu1 %v3482_v29 }
 0x246   : > { %3179 = vset.pattern.permute.xlu0 %v3482_v29 }
 0x27d   : > { %v929_v5 = vpop.trf.xlu1 }
 0x27e   : > { %2977 = vmatmul.msk.f32.vlgmr.msra.gmra.mxu2 %vm945_vm4, %v929_v5  ;;  %v782_v5 = vmax.f32 %v3871_v10, 1e-16 }
 0x283   : > { %v1226_v17 = vpop.trf.xlu0 }
 0x284   : > { %2995 = vmatmul.msk.f32.vlgmr.msra.gmra.mxu0 %vm945_vm4, %v1226_v17 }
 0x285   : > { %v930_v9 = vpop.trf.xlu1 }
 0x286   : > { %2978 = vmatmul.msk.f32.gmra.mxu2 %vm945_vm4, %v930_v9 }
 0x28b   : > { %v1227_v20 = vpop.trf.xlu0 }
 0x28c   : > { %2996 = vmatmul.msk.f32.gmra.mxu0 %vm945_vm4, %v1227_v20 }
 0x28d   : > { %v931_v11 = vpop.trf.xlu1 }
 0x28e   : > { %2979 = vmatmul.msk.f32.gmra.mxu2 %vm945_vm4, %v931_v11 }
 0x293   : > { %v1228_v22 = vpop.trf.xlu0 }
 0x294   : > { %2997 = vmatmul.msk.f32.gmra.mxu0 %vm945_vm4, %v1228_v22 }
 0x295   : > { %v932_v14 = vpop.trf.xlu1 }
 0x296   : > { %2980 = vmatmul.msk.f32.gmra.mxu2 %vm945_vm4, %v932_v14 }
 0x29b   : > { %v1229_v27 = vpop.trf.xlu0 }
 0x29c   : > { %2998 = vmatmul.msk.f32.vlgmr.msrb.gmra.mxu3 %vm945_vm4, %v1229_v27  ;;  %3012 = vmatmul.msk.f32.vlgmr.msrb.gmra.mxu0 %vm854_vm2, %v1441_v46  ;;  %v901_v46 = vld [vmem:[#allocation4 + $0x160] sm:$0xff] }
 0x29d   : > { %v933_v21 = vpop.trf.xlu1 }
 0x29e   : > { %2981 = vmatmul.msk.f32.gmra.mxu2 %vm945_vm4, %v933_v21 }
 0x2a3   : > { %v1230_v32 = vpop.trf.xlu0 }
 0x2a4   : > { %2999 = vmatmul.msk.f32.gmra.mxu3 %vm945_vm4, %v1230_v32 }
 0x2a5   : > { %v934_v23 = vpop.trf.xlu1 }
 0x2a6   : > { %2982 = vmatmul.msk.f32.gmra.mxu2 %vm945_vm4, %v934_v23  ;;  %v1195_v23 = vld [vmem:[#allocation4 + $0x130] sm:$0xff] }
 0x2ab   : > { %v1231_v37 = vpop.trf.xlu0 }
 0x2ac   : > { %3000 = vmatmul.msk.f32.gmra.mxu3 %vm945_vm4, %v1231_v37  ;;  %v1196_v37 = vld [vmem:[#allocation4 + $0x138] sm:$0xff] }
 0x2ad   : > { %v935_v28 = vpop.trf.xlu1 }
 0x2ae   : > { %2983 = vmatmul.msk.f32.gmra.mxu2 %vm945_vm4, %v935_v28 }
 0x2b1   : > { %752 = vadd.xlane.f32.xlu1 %v751_v26 }
 0x2b3   : > { %v1232_v41 = vpop.trf.xlu0 }
 0x2b4   : > { %3001 = vmatmul.msk.f32.gmra.mxu3 %vm945_vm4, %v1232_v41 }
 0x2b5   : > { %v936_v33 = vpop.trf.xlu1 }
 0x2b6   : > { %2984 = vmatmul.msk.f32.gmra.mxu2 %vm945_vm4, %v936_v33 }
 0x2b9   : > { %756 = vadd.xlane.f32.xlu1 %v755_v31  ;;  %v900_v31 = vld [vmem:[#allocation4 + $0x48] sm:$0xff] }
 0x2bb   : > { %v1233_v47 = vpop.trf.xlu0 }
 0x2bc   : > { %3002 = vmatmul.msk.f32.gmra.mxu3 %vm945_vm4, %v1233_v47 }
 0x2bd   : > { %v937_v39 = vpop.trf.xlu1 }
 0x2be   : > { %2985 = vmatmul.msk.f32.gmra.mxu2 %vm945_vm4, %v937_v39 }
 0x2c1   : > { %1390 = vmax.xlane.f32.xlu1 %v1389_v35 }
 0x2c3   : > { %v1234_v50 = vpop.trf.xlu0 }
 0x2c4   : > { %3003 = vmatmul.msk.f32.gmra.mxu3 %vm945_vm4, %v1234_v50  ;;  %v799_v50 = vld [vmem:[#allocation5] sm:$0x1] }
 0x2c5   : > { %v938_v8 = vpop.trf.xlu1 }
 0x2c6   : > { %2986 = vmatmul.msk.f32.gmra.mxu2 %vm945_vm4, %v938_v8 }
 0x2c8   : > { %748 = vadd.xlane.f32.xlu0 %v747_v40 }
 0x2cb   : > { %v1235_v52 = vpop.trf.xlu0 }
 0x2cc   : > { %3004 = vmatmul.msk.f32.gmra.mxu3 %vm945_vm4, %v1235_v52 }
 0x2cd   : > { %v939_v49 = vpop.trf.xlu1 }
 0x2ce   : > { %2987 = vmatmul.msk.f32.gmra.mxu2 %vm945_vm4, %v939_v49 }
 0x2d0   : > { %1683 = vmax.xlane.f32.xlu0 %v1682_v7 }
 0x2d3   : > { %v1236_v54 = vpop.trf.xlu0 }
 0x2d4   : > { %3005 = vmatmul.msk.f32.gmra.mxu3 %vm945_vm4, %v1236_v54 }
 0x2d5   : > { %v940_v51 = vpop.trf.xlu1 }
 0x2d6   : > { %2988 = vmatmul.msk.f32.gmra.mxu2 %vm945_vm4, %v940_v51 }
 0x2da   : > { %1695 = vperm.xlu1 %3180, %v1681_v48  }
 0x2db   : > { %v1237_v56 = vpop.trf.xlu0 }
 0x2dc   : > { %3006 = vmatmul.msk.f32.gmra.mxu3 %vm945_vm4, %v1237_v56  ;;  %v1197_v56 = vld [vmem:[#allocation4 + $0x120] sm:$0xff] }
 0x2dd   : > { %v941_v55 = vpop.trf.xlu1 }
 0x2de   : > { %2989 = vmatmul.msk.f32.gmra.mxu2 %vm945_vm4, %v941_v55 }
 0x2e3   : > { %v1238_v58 = vpop.trf.xlu0 }
 0x2e4   : > { %1109 = vperm.xlu0 %3179, %v1092_v15   ;;  %3007 = vmatmul.msk.f32.gmra.mxu3 %vm945_vm4, %v1238_v58 }
 0x2e5   : > { %v942_v57 = vpop.trf.xlu1 }
 0x2e6   : > { %2990 = vmatmul.msk.f32.gmra.mxu2 %vm945_vm4, %v942_v57 }
 0x2eb   : > { %v1239_v60 = vpop.trf.xlu0 }
 0x2ec   : > { %1402 = vperm.xlu0 %3179, %v1388_v53   ;;  %3008 = vmatmul.msk.f32.gmra.mxu3 %vm945_vm4, %v1239_v60  ;;  %v902_v60 = vld [vmem:[#allocation4 + $0x128] sm:$0xff] }
 0x2ed   : > { %v943_v59 = vpop.trf.xlu1 }
 0x2ee   : > { %2991 = vmatmul.msk.f32.gmra.mxu2 %vm945_vm4, %v943_v59 }
 0x2f3   : > { %v1240_v62 = vpop.trf.xlu0 }
 0x2f4   : > { %3009 = vmatmul.msk.f32.gmra.mxu3 %vm945_vm4, %v1240_v62 }
 0x2f5   : > { %v944_v61 = vpop.trf.xlu1 }
 0x2f6   : > { %2992 = vmatmul.msk.f32.gmra.mxu2 %vm945_vm4, %v944_v61 }
 0x2fb   : > { %v1241_v63 = vpop.trf.xlu0 }
 0x2fc   : > { %3010 = vmatmul.msk.f32.gmra.mxu3 %vm945_vm4, %v1241_v63 }
 0x301   : > { %v1011_v1 = vpop.f32.mrf.mxu2  ;;  %v1307_v13 = vpop.f32.mrf.mxu0 }
 0x302   : > { %v1059_v2 = vadd.f32 %v1011_v1, %v897_v0  ;;  %v1355_v14 = vadd.f32 %v1307_v13, %v1194_v12  ;;  %v1198_v12 = vld [vmem:[#allocation4 + $0xe0] sm:$0xff] }
 0x304   : > { %1075 = vst [vmem:[#allocation4 + $0xb0] sm:$0xff] %v1059_v2 }
 0x305   : > { %1371 = vst [vmem:[#allocation4 + $0x80] sm:$0xff] %v1355_v14 }
 0x309   : > { %v1014_v4 = vpop.f32.mrf.mxu2  ;;  %v1310_v24 = vpop.f32.mrf.mxu0 }
 0x30a   : > { %v1060_v9 = vadd.f32 %v1014_v4, %v898_v3  ;;  %v1356_v27 = vadd.f32 %v1310_v24, %v1195_v23 }
 0x30c   : > { %1076 = vst [vmem:[#allocation4 + $0xd0] sm:$0xff] %v1060_v9 }
 0x30d   : > { %1372 = vst [vmem:[#allocation4 + $0x130] sm:$0xff] %v1356_v27  ;;  %v1199_v27 = vld [vmem:[#allocation4 + $0xa8] sm:$0xff] }
 0x311   : > { %v1017_v20 = vpop.f32.mrf.mxu2  ;;  %v1313_v39 = vpop.f32.mrf.mxu0 }
 0x312   : > { %v1061_v21 = vadd.f32 %v1017_v20, %v899_v19  ;;  %v1357_v41 = vadd.f32 %v1313_v39, %v1196_v37  ;;  %v904_v37 = vld [vmem:[#allocation4 + $0x178] sm:$0xff] }
 0x314   : > { %1077 = vst [vmem:[#allocation4 + $0x10] sm:$0xff] %v1061_v21 }
 0x315   : > { %1373 = vst [vmem:[#allocation4 + $0x138] sm:$0xff] %v1357_v41 }
 0x319   : > { %v1020_v32 = vpop.f32.mrf.mxu2 }
 0x31a   : > { %v1062_v33 = vadd.f32 %v1020_v32, %v900_v31 }
 0x31c   : > { %1078 = vst [vmem:[#allocation4 + $0x48] sm:$0xff] %v1062_v33 }
 0x31f   : > { %v1316_v57 = vpop.f32.mrf.mxu3 }
 0x320   : > { %v1358_v61 = vadd.f32 %v1316_v57, %v1197_v56  ;;  %v905_v56 = vld [vmem:[#allocation4 + $0x108] sm:$0xff] }
 0x321   : > { %v1023_v49 = vpop.f32.mrf.mxu2 }
 0x322   : > { %v1063_v51 = vadd.f32 %v1023_v49, %v901_v46  ;;  %1374 = vst [vmem:[#allocation4 + $0x120] sm:$0xff] %v1358_v61 }
 0x324   : > { %v753_v11 = vpop.xlane.xlu1 %752  ;;  %1079 = vst [vmem:[#allocation4 + $0x160] sm:$0xff] %v1063_v51 }
 0x325   : > { %v758_v17 = vmax.f32 %v753_v11, 1e-16  ;;  %v1106_v11 = vlaneseq }
 0x327   : > { %v783_v18 = vmul.f32 %v782_v5, %v758_v17  ;;  %v1319_v14 = vpop.f32.mrf.mxu3  ;;  %v3965_v20 = vand.u32 127, %v1106_v11 }
 0x329   : > { %3185 = vrsqrt.f32 %v783_v18  ;;  %vm790_vm5 = vweird.f32 %v783_v18  ;;  %v1026_v0 = vpop.f32.mrf.mxu2 }
 0x32a   : > { %v1064_v3 = vadd.f32 %v1026_v0, %v902_v60 }
 0x32c   : > { %v757_v22 = vpop.xlane.xlu1 %756  ;;  %1080 = vst [vmem:[#allocation4 + $0x128] sm:$0xff] %v1064_v3 }
 0x32d   : > { %v759_v26 = vmax.f32 %v757_v22, 1e-16 }
 0x32f   : > { %v3186_v10 = vpop.eup %3185  ;;  %v760_v28 = vmul.f32 %v759_v26, %v758_v17  ;;  %v1322_v33 = vpop.f32.mrf.mxu3 }
 0x330   : > { %v785_v29 = vmul.f32 %v3186_v10, %v783_v18  ;;  %vm791_vm6 = vweird.f32 %v3186_v10  ;;  %v1359_v18 = vadd.f32 %v1319_v14, %v1198_v12  ;;  %v1360_v39 = vadd.f32 %v1322_v33, %v1199_v27  ;;  %v906_v14 = vld [vmem:[#allocation4 + $0x110] sm:$0xff]  ;;  %v1204_v33 = vld [vmem:[#allocation4 + $0x20] sm:$0xff] }
 0x331   : > { %3187 = vrsqrt.f32 %v760_v28  ;;  %vm3953_vm7 = vmor %vm790_vm5, %vm791_vm6  ;;  %vm767_vm8 = vweird.f32 %v760_v28  ;;  %v1029_v21 = vpop.f32.mrf.mxu2 }
 0x332   : > { %v786_v30 = vmul.f32 %v3186_v10, %v785_v29  ;;  %1375 = vst [vmem:[#allocation4 + $0xe0] sm:$0xff] %v1359_v18  ;;  %v1462_v29 = vpop.f32.mrf.mxu0 }
 0x333   : > { %1376 = vst [vmem:[#allocation4 + $0xa8] sm:$0xff] %v1360_v39  ;;  %v909_v39 = vld [vmem:[#allocation4 + $0x148] sm:$0xff] }
 0x334   : > { %v787_v35 = vmul.f32 0.5, %v786_v30  ;;  %v3949_v36 = vpop.xlane.xlu1 %1390 }
 0x335   : > { %v1392_v40 = vsub.f32 %v3897_v34, %v3949_v36 }
 0x336   : > { %v788_v43 = vsub.f32 1.5, %v787_v35  ;;  %v3972_v35 = vadd.f32 %v3848_v25, %v1462_v29  ;;  %v908_v29 = vld [vmem:[#allocation4 + $0x118] sm:$0xff] }
 0x337   : > { %v3188_v7 = vpop.eup %3187  ;;  %v1393_v8 = vmul.f32 1.442695, %v1392_v40 }
 0x338   : > { %v762_v45 = vmul.f32 %v3188_v7, %v760_v28  ;;  %v789_v48 = vmul.f32 %v3186_v10, %v788_v43  ;;  %vm768_vm9 = vweird.f32 %v3188_v7  ;;  %v1467_v41 = vrot.slane %v3972_v35, 4  ;;  %1598 = vmatpush.msra.mxu0 %v3972_v35  ;;  %3086 = vmatpush.msra.mxu1 %v3972_v35 }
 0x339   : > { %3189 = vpow2.f32 %v1393_v8  ;;  %vm769_vm10 = vmor %vm767_vm8, %vm768_vm9  ;;  %v1032_v43 = vpop.f32.mrf.mxu2 }
 0x33a   : > { %v763_v47 = vmul.f32 %v3188_v7, %v762_v45  ;;  %v793_v54 = vsel %vm3953_vm7, %v3186_v10, %v789_v48  ;;  %v1066_v8 = vadd.f32 %v1032_v43, %v904_v37  ;;  %v1468_v25 = vadd.f32 %v1467_v41, %v3972_v35  ;;  %v1205_v43 = vld [vmem:[#allocation4 + $0x88] sm:$0xff] }
 0x33b   : > { %v749_v15 = vpop.xlane.xlu0 %748  ;;  %v794_v62 = vmul.f32 %v793_v54, %v3869_v6  ;;  %v903_v6 = vld [vmem:[#allocation4 + $0x40] sm:$0xff] }
 0x33c   : > { %v764_v52 = vmul.f32 0.5, %v763_v47  ;;  %v1065_v23 = vadd.f32 %v1029_v21, %v903_v6  ;;  %1082 = vst [vmem:[#allocation4 + $0x178] sm:$0xff] %v1066_v8  ;;  %v1200_v47 = vld [vmem:[#allocation4 + $0xb8] sm:$0xff]  ;;  %v1469_v48 = vrot.slane %v1468_v25, 2  ;;  %v910_v8 = vld [vmem:[#allocation4 + $0x100] sm:$0xff] }
 0x33d   : > { %v795_v5 = vsub.f32 1.0, %v794_v62 }
 0x33e   : > { %v765_v53 = vsub.f32 1.5, %v764_v52  ;;  %1081 = vst [vmem:[#allocation4 + $0x40] sm:$0xff] %v1065_v23  ;;  %v1325_v52 = vpop.f32.mrf.mxu3 }
 0x33f   : > { %v3190_v55 = vpop.eup %3189  ;;  %v1361_v57 = vadd.f32 %v1325_v52, %v1200_v47  ;;  %v1206_v47 = vld [vmem:[#allocation4 + $0xa0] sm:$0xff]  ;;  %v1207_v52 = vld [vmem:[#allocation4 + $0x170] sm:$0xff] }
 0x340   : > { %v766_v58 = vmul.f32 %v3188_v7, %v765_v53  ;;  %v1395_v59 = vsel %vm1093_vm3, %v3190_v55, 0.0  ;;  %v1470_v53 = vadd.f32 %v1469_v48, %v1468_v25 }
 0x341   : > { %1396 = vadd.xlane.f32.xlu2 %v1395_v59  ;;  %v1035_v62 = vpop.f32.mrf.mxu2  ;;  %1377 = vst [vmem:[#allocation4 + $0xb8] sm:$0xff] %v1361_v57 }
 0x342   : > { %v770_v63 = vsel %vm769_vm10, %v3188_v7, %v766_v58  ;;  %v1471_v60 = vrot.slane %v1470_v53, 1  ;;  %v1067_v0 = vadd.f32 %v1035_v62, %v905_v56 }
 0x343   : > { %v771_v1 = vmul.f32 %v770_v63, %v749_v15  ;;  %v3961_v2 = vpop.xlane.xlu0 %1683  ;;  %v1466_v63 = vld [vmem:[#allocation2 + $0x2] sm:$0x1] }
 0x344   : > { %v1685_v4 = vsub.f32 %v3908_v42, %v3961_v2  ;;  %1083 = vst [vmem:[#allocation4 + $0x108] sm:$0xff] %v1067_v0  ;;  %v1102_v0 = vpop.xlane.xlu2 %1101 }
 0x345   : > { %v772_v9 = vsub.f32 1.0, %v771_v1  ;;  %v1472_v1 = vadd.f32 %v1471_v60, %v1470_v53 }
 0x346   : > { %v1686_v13 = vmul.f32 1.442695, %v1685_v4  ;;  %v1476_v4 = vld [vmem:[#allocation3 + $0x2] sm:$0x1]  ;;  %v1328_v12 = vpop.f32.mrf.mxu3 }
 0x347   : > { %v796_v17 = vsub.f32 %v772_v9, %v795_v5  ;;  %v1473_v5 = vadd.f32 %v1472_v1, %v1466_v63 }
 0x348   : > { %3191 = vpow2.f32 %v1686_v13 }
 0x349   : > { %v797_v19 = vadd.f32 1.0, %v796_v17  ;;  %1474 = vst [vmem:[#allocation2 + $0x2] sm:$0x1] %v1473_v5  ;;  %3193 = vlog2.f32 %v1102_v0  ;;  %v1489_v0 = vld [vmem:[#allocation4 + $0x28] sm:$0xff] }
 0x34b   : > { %v798_v22 = vmax.f32 %v797_v19, 0.0  ;;  %v1038_v19 = vpop.f32.mrf.mxu2 }
 0x34c   : > { %v1696_v24 = vpop.permute.xlu1 %1695  ;;  %v1068_v21 = vadd.f32 %v1038_v19, %v906_v14 }
 0x34d   : > { %v800_v26 = vrot.slane %v798_v22, 4  ;;  %vm1697_vm11 = vcmp.eq.s32.totalorder %v3965_v20, %v1696_v24  ;;  %v907_v24 = vld [vmem:[#allocation4 + $0x90] sm:$0xff] }
 0x34e   : > { %v3192_v10 = vpop.eup %3191  ;;  %v1698_v28 = vsel %vm1697_vm11, %v3908_v42, 0.0  ;;  %v1477_v42 = vmul.f32 %v3972_v35, %v3972_v35  ;;  %1084 = vst [vmem:[#allocation4 + $0x110] sm:$0xff] %v1068_v21  ;;  %v1331_v23 = vpop.f32.mrf.mxu3 }
 0x34f   : > { %v801_v30 = vadd.f32 %v800_v26, %v798_v22  ;;  %v1688_v31 = vsel %vm1093_vm3, %v3192_v10, 0.0  ;;  %v1699_v32 = vsel %vm1093_vm3, %v1698_v28, 0.0  ;;  %v1202_v22 = vld [vmem:[#allocation4 + $0xe8] sm:$0xff]  ;;  %v1203_v28 = vld [vmem:[#allocation4 + $0xf8] sm:$0xff] }
 0x350   : > { %1689 = vadd.xlane.f32.xlu2 %v1688_v31  ;;  %1700 = vadd.xlane.f32.xlu1 %v1699_v32  ;;  %v1478_v45 = vrot.slane %v1477_v42, 4  ;;  %v1363_v26 = vadd.f32 %v1331_v23, %v1202_v22 }
 0x351   : > { %v802_v40 = vrot.slane %v801_v30, 2 }
 0x352   : > { %v1479_v49 = vadd.f32 %v1478_v45, %v1477_v42  ;;  %1379 = vst [vmem:[#allocation4 + $0xe8] sm:$0xff] %v1363_v26 }
 0x353   : > { %v803_v7 = vadd.f32 %v802_v40, %v801_v30  ;;  %v1041_v27 = vpop.f32.mrf.mxu2 }
 0x354   : > { %v1480_v54 = vrot.slane %v1479_v49, 2  ;;  %v1069_v10 = vadd.f32 %v1041_v27, %v907_v24 }
 0x355   : > { %v804_v46 = vrot.slane %v803_v7, 1 }
 0x356   : > { %v1110_v15 = vpop.permute.xlu0 %1109  ;;  %v1481_v61 = vadd.f32 %v1480_v54, %v1479_v49  ;;  %1085 = vst [vmem:[#allocation4 + $0x90] sm:$0xff] %v1069_v10  ;;  %v911_v49 = vld [vmem:[#allocation4 + $0x58] sm:$0xff] }
 0x357   : > { %v805_v51 = vadd.f32 %v804_v46, %v803_v7  ;;  %vm1111_vm12 = vcmp.eq.s32.totalorder %v3965_v20, %v1110_v15  ;;  %v912_v54 = vld [vmem:[#allocation4 + $0xd8] sm:$0xff] }
 0x358   : > { %v1112_v55 = vsel %vm1111_vm12, %v3855_v38, 0.0  ;;  %v1482_v3 = vrot.slane %v1481_v61, 1  ;;  %v1201_v38 = vld [vmem:[#allocation4 + $0x168] sm:$0xff] }
 0x359   : > { %v806_v58 = vadd.f32 %v805_v51, %v799_v50  ;;  %v1113_v59 = vsel %vm1093_vm3, %v1112_v55, 0.0  ;;  %v1362_v6 = vadd.f32 %v1328_v12, %v1201_v38 }
 0x35a   : > { %1114 = vadd.xlane.f32.xlu0 %v1113_v59  ;;  %v1483_v9 = vadd.f32 %v1482_v3, %v1481_v61  ;;  %v1209_v61 = vld [vmem:[#allocation4 + $0x140] sm:$0xff]  ;;  %v3194_v3 = vpop.eup %3193 }
 0x35b   : > { %808 = vst.msk [vmem:[#allocation5] sm:$0x1] %vm807_vm13, %v806_v58  ;;  %v1044_v31 = vpop.f32.mrf.mxu2  ;;  %v1208_v58 = vld [vmem:[#allocation4 + $0xf0] sm:$0xff] }
 0x35c   : > { %v1484_v13 = vadd.f32 %v1483_v9, %v1476_v4  ;;  %1378 = vst [vmem:[#allocation4 + $0x168] sm:$0xff] %v1362_v6  ;;  %v1070_v32 = vadd.f32 %v1044_v31, %v908_v29  ;;  %v1104_v4 = vmul.f32 0.6931472, %v3194_v3  ;;  %v1490_v3 = vld [vmem:[#allocation4 + $0x38] sm:$0xff] }
 0x35e   : > { %v1403_v11 = vpop.permute.xlu0 %1402  ;;  %1485 = vst [vmem:[#allocation3 + $0x2] sm:$0x1] %v1484_v13  ;;  %v1105_v9 = vadd.f32 %v1104_v4, %v3873_v16 }
 0x35f   : > { %vm1404_vm14 = vcmp.eq.s32.totalorder %v3965_v20, %v1403_v11  ;;  %1086 = vst [vmem:[#allocation4 + $0x118] sm:$0xff] %v1070_v32 }
 0x360   : > { %v1405_v17 = vsel %vm1404_vm14, %v3897_v34, 0.0  ;;  %v1334_v34 = vpop.f32.mrf.mxu3 }
 0x361   : > { %v1406_v18 = vsel %vm1093_vm3, %v1405_v17, 0.0  ;;  %v1364_v30 = vadd.f32 %v1334_v34, %v1203_v28 }
 0x362   : > { %1407 = vadd.xlane.f32.xlu2 %v1406_v18 }
 0x363   : > { %1380 = vst [vmem:[#allocation4 + $0xf8] sm:$0xff] %v1364_v30  ;;  %v1047_v41 = vpop.f32.mrf.mxu2 }
 0x364   : > { %v1071_v42 = vadd.f32 %v1047_v41, %v909_v39 }
 0x366   : > { %1087 = vst [vmem:[#allocation4 + $0x148] sm:$0xff] %v1071_v42 }
 0x368   : > { %v1337_v37 = vpop.f32.mrf.mxu3 }
 0x369   : > { %v1365_v40 = vadd.f32 %v1337_v37, %v1204_v33 }
 0x36b   : > { %1381 = vst [vmem:[#allocation4 + $0x20] sm:$0xff] %v1365_v40  ;;  %v1050_v45 = vpop.f32.mrf.mxu2 }
 0x36c   : > { %v1072_v46 = vadd.f32 %v1050_v45, %v910_v8 }
 0x36e   : > { %1088 = vst [vmem:[#allocation4 + $0x100] sm:$0xff] %v1072_v46 }
 0x370   : > { %v1340_v7 = vpop.f32.mrf.mxu3 }
 0x371   : > { %v1366_v25 = vadd.f32 %v1340_v7, %v1205_v43  ;;  %v1710_v43 = vld [vmem:[#allocation6] sm:$0x1] }
 0x373   : > { %1382 = vst [vmem:[#allocation4 + $0x88] sm:$0xff] %v1366_v25  ;;  %v1053_v15 = vpop.f32.mrf.mxu2 }
 0x374   : > { %v1073_v51 = vadd.f32 %v1053_v15, %v911_v49 }
 0x376   : > { %1089 = vst [vmem:[#allocation4 + $0x58] sm:$0xff] %v1073_v51 }
 0x378   : > { %v1343_v48 = vpop.f32.mrf.mxu3 }
 0x379   : > { %v1367_v50 = vadd.f32 %v1343_v48, %v1206_v47 }
 0x37b   : > { %1383 = vst [vmem:[#allocation4 + $0xa0] sm:$0xff] %v1367_v50  ;;  %v1056_v56 = vpop.f32.mrf.mxu2 }
 0x37c   : > { %v1074_v57 = vadd.f32 %v1056_v56, %v912_v54 }
 0x37e   : > { %1090 = vst [vmem:[#allocation4 + $0xd8] sm:$0xff] %v1074_v57 }
 0x380   : > { %v1346_v53 = vpop.f32.mrf.mxu3 }
 0x381   : > { %v1368_v55 = vadd.f32 %v1346_v53, %v1207_v52  ;;  %v1715_v52 = vmul.f32 %v3860_v44, %v3860_v44  ;;  %v1487_v44 = vld [vmem:[#allocation4 + $0x60] sm:$0xff] }
 0x383   : > { %1384 = vst [vmem:[#allocation4 + $0x170] sm:$0xff] %v1368_v55 }
 0x388   : > { %v1349_v59 = vpop.f32.mrf.mxu3 }
 0x389   : > { %v1369_v60 = vadd.f32 %v1349_v59, %v1208_v58 }
 0x38b   : > { %1503 = vxpose.xlu2.b32.start.end [1/1] (short) %v3972_v35, 128  ;;  %1385 = vst [vmem:[#allocation4 + $0xf0] sm:$0xff] %v1369_v60 }
 0x390   : > { %v1352_v62 = vpop.f32.mrf.mxu3 }
 0x391   : > { %v1370_v63 = vadd.f32 %v1352_v62, %v1209_v61  ;;  %v1488_v61 = vld [vmem:[#allocation4 + $0xc8] sm:$0xff] }
 0x393   : > { %1386 = vst [vmem:[#allocation4 + $0x140] sm:$0xff] %v1370_v63 }
 0x3b4   : > { %v1397_v35 = vpop.xlane.xlu2 %1396 }
 0x3c3   : > { %v1690_v1 = vpop.xlane.xlu2 %1689  ;;  %v1701_v11 = vpop.xlane.xlu1 %1700 }
 0x3c4   : > { %3195 = vlog2.f32 %v1690_v1 }
 0x3c5   : > { %3197 = vlog2.f32 %v1397_v35 }
 0x3ca   : > { %v3196_v38 = vpop.eup %3195 }
 0x3cb   : > { %v1692_v5 = vmul.f32 0.6931472, %v3196_v38  ;;  %v3198_v12 = vpop.eup %3197 }
 0x3cc   : > { %v1399_v18 = vmul.f32 0.6931472, %v3198_v12  ;;  %v1492_v12 = vld [vmem:[#allocation4 + $0x18] sm:$0xff] }
 0x3cd   : > { %v1115_v13 = vpop.xlane.xlu0 %1114  ;;  %v1693_v17 = vadd.f32 %v1692_v5, %v3961_v2  ;;  %v1491_v5 = vld [vmem:[#allocation4 + $0xc0] sm:$0xff] }
 0x3ce   : > { %v1116_v14 = vsub.f32 %v1105_v9, %v1115_v13  ;;  %v1400_v24 = vadd.f32 %v1399_v18, %v3949_v36 }
 0x3cf   : > { %v1702_v6 = vsub.f32 %v1693_v17, %v1701_v11 }
 0x3d0   : > { %v1117_v19 = vrot.slane %v1116_v14, 4 }
 0x3d1   : > { %v1703_v21 = vrot.slane %v1702_v6, 4 }
 0x3d2   : > { %v1118_v22 = vadd.f32 %v1117_v19, %v1116_v14  ;;  %v1493_v14 = vld [vmem:[#allocation4 + $0x98] sm:$0xff]  ;;  %v1494_v19 = vld [vmem:[#allocation4 + $0x8] sm:$0xff] }
 0x3d3   : > { %v1704_v23 = vadd.f32 %v1703_v21, %v1702_v6 }
 0x3d4   : > { %v1119_v27 = vrot.slane %v1118_v22, 2 }
 0x3d5   : > { %v1408_v26 = vpop.xlane.xlu2 %1407  ;;  %v1705_v28 = vrot.slane %v1704_v23, 2 }
 0x3d6   : > { %v1409_v10 = vsub.f32 %v1400_v24, %v1408_v26  ;;  %v1120_v16 = vadd.f32 %v1119_v27, %v1118_v22 }
 0x3d7   : > { %v1706_v30 = vadd.f32 %v1705_v28, %v1704_v23  ;;  %v1495_v23 = vld [vmem:[#allocation4] sm:$0xff]  ;;  %v1496_v28 = vld [vmem:[#allocation4 + $0x78] sm:$0xff] }
 0x3d8   : > { %v1410_v34 = vrot.slane %v1409_v10, 4  ;;  %v1121_v32 = vrot.slane %v1120_v16, 1 }
 0x3d9   : > { %v1707_v33 = vrot.slane %v1706_v30, 1 }
 0x3da   : > { %v1411_v29 = vadd.f32 %v1410_v34, %v1409_v10  ;;  %v1122_v39 = vadd.f32 %v1121_v32, %v1120_v16 }
 0x3db   : > { %v1708_v41 = vadd.f32 %v1707_v33, %v1706_v30  ;;  %v1714_v33 = vld [vmem:[#allocation7] sm:$0x1] }
 0x3dc   : > { %v1412_v31 = vrot.slane %v1411_v29, 2 }
 0x3de   : > { %v1413_v2 = vadd.f32 %v1412_v31, %v1411_v29 }
 0x3e0   : > { %v1414_v37 = vrot.slane %v1413_v2, 1 }
 0x3e2   : > { %v1415_v40 = vadd.f32 %v1414_v37, %v1413_v2  ;;  %v1497_v2 = vld [vmem:[#allocation4 + $0x50] sm:$0xff] }
 0x3e4   : > { %v1416_v42 = vadd.f32 %v1415_v40, %v1122_v39 }
 0x3e6   : > { %v1709_v7 = vadd.f32 %v1708_v41, %v1416_v42  ;;  %v1498_v42 = vld [vmem:[#allocation4 + $0x68] sm:$0xff] }
 0x3e8   : > { %v1711_v36 = vadd.f32 %v1710_v43, %v1709_v7 }
 0x3ea   : > { %1712 = vst.msk [vmem:[#allocation6] sm:$0x1] %vm807_vm13, %v1711_v36  ;;  %v1499_v36 = vld [vmem:[#allocation4 + $0x70] sm:$0xff] }
 0x424   : > { %v1519_v8 = vpop.trf.xlu2 }
 0x425   : > { %3013 = vmatmul.msk.f32.vlgmr.msra.gmra.mxu0 %vm945_vm4, %v1519_v8 }
 0x42c   : > { %v1520_v25 = vpop.trf.xlu2 }
 0x42d   : > { %3014 = vmatmul.msk.f32.gmra.mxu0 %vm945_vm4, %v1520_v25 }
 0x434   : > { %v1521_v45 = vpop.trf.xlu2 }
 0x435   : > { %3015 = vmatmul.msk.f32.gmra.mxu0 %vm945_vm4, %v1521_v45  ;;  %v1500_v45 = vld [vmem:[#allocation4 + $0x30] sm:$0xff] }
 0x43c   : > { %v1522_v46 = vpop.trf.xlu2 }
 0x43d   : > { %3016 = vmatmul.msk.f32.gmra.mxu0 %vm945_vm4, %v1522_v46 }
 0x444   : > { %v1523_v47 = vpop.trf.xlu2 }
 0x445   : > { %3017 = vmatmul.msk.f32.gmra.mxu0 %vm945_vm4, %v1523_v47 }
 0x44c   : > { %v1524_v48 = vpop.trf.xlu2 }
 0x44d   : > { %3018 = vmatmul.msk.f32.vlgmr.msra.gmra.mxu1 %vm945_vm4, %v1524_v48  ;;  %v1501_v48 = vld [vmem:[#allocation4 + $0x158] sm:$0xff] }
 0x454   : > { %v1525_v49 = vpop.trf.xlu2 }
 0x455   : > { %3019 = vmatmul.msk.f32.gmra.mxu1 %vm945_vm4, %v1525_v49 }
 0x45c   : > { %v1526_v50 = vpop.trf.xlu2 }
 0x45d   : > { %3020 = vmatmul.msk.f32.gmra.mxu1 %vm945_vm4, %v1526_v50 }
 0x464   : > { %v1527_v15 = vpop.trf.xlu2 }
 0x465   : > { %3021 = vmatmul.msk.f32.gmra.mxu1 %vm945_vm4, %v1527_v15  ;;  %v1502_v15 = vld [vmem:[#allocation4 + $0x150] sm:$0xff] }
 0x46c   : > { %v1528_v51 = vpop.trf.xlu2 }
 0x46d   : > { %3022 = vmatmul.msk.f32.gmra.mxu1 %vm945_vm4, %v1528_v51 }
 0x474   : > { %1716 = vadd.xlane.f32.xlu2 %v1715_v52  ;;  %v1529_v53 = vpop.trf.xlu2 }
 0x475   : > { %3023 = vmatmul.msk.f32.gmra.mxu1 %vm945_vm4, %v1529_v53 }
 0x47c   : > { %v1530_v54 = vpop.trf.xlu2 }
 0x47d   : > { %3024 = vmatmul.msk.f32.gmra.mxu1 %vm945_vm4, %v1530_v54 }
 0x484   : > { %v1531_v55 = vpop.trf.xlu2 }
 0x485   : > { %3025 = vmatmul.msk.f32.gmra.mxu1 %vm945_vm4, %v1531_v55 }
 0x48c   : > { %v1532_v56 = vpop.trf.xlu2 }
 0x48d   : > { %3026 = vmatmul.msk.f32.gmra.mxu1 %vm945_vm4, %v1532_v56 }
 0x494   : > { %v1533_v57 = vpop.trf.xlu2 }
 0x495   : > { %3027 = vmatmul.msk.f32.gmra.mxu1 %vm945_vm4, %v1533_v57 }
 0x49c   : > { %v1534_v58 = vpop.trf.xlu2 }
 0x49d   : > { %3028 = vmatmul.msk.f32.gmra.mxu1 %vm945_vm4, %v1534_v58 }
 0x4a2   : > { %v1600_v59 = vpop.f32.mrf.mxu0 }
 0x4a3   : > { %v1648_v60 = vadd.f32 %v1600_v59, %v1487_v44 }
 0x4a5   : > { %1664 = vst [vmem:[#allocation4 + $0x60] sm:$0xff] %v1648_v60 }
 0x4aa   : > { %v1603_v62 = vpop.f32.mrf.mxu0 }
 0x4ab   : > { %v1649_v63 = vadd.f32 %v1603_v62, %v1488_v61 }
 0x4ad   : > { %1665 = vst [vmem:[#allocation4 + $0xc8] sm:$0xff] %v1649_v63 }
 0x4b2   : > { %v1606_v35 = vpop.f32.mrf.mxu0 }
 0x4b3   : > { %v1650_v1 = vadd.f32 %v1606_v35, %v1489_v0 }
 0x4b5   : > { %1666 = vst [vmem:[#allocation4 + $0x28] sm:$0xff] %v1650_v1 }
 0x4ba   : > { %v1609_v4 = vpop.f32.mrf.mxu0 }
 0x4bb   : > { %v1651_v38 = vadd.f32 %v1609_v4, %v1490_v3 }
 0x4bd   : > { %1667 = vst [vmem:[#allocation4 + $0x38] sm:$0xff] %v1651_v38 }
 0x4c2   : > { %v1612_v9 = vpop.f32.mrf.mxu0 }
 0x4c3   : > { %v1652_v11 = vadd.f32 %v1612_v9, %v1491_v5 }
 0x4c5   : > { %1668 = vst [vmem:[#allocation4 + $0xc0] sm:$0xff] %v1652_v11 }
 0x4ca   : > { %v1615_v13 = vpop.f32.mrf.mxu1 }
 0x4cb   : > { %v1653_v17 = vadd.f32 %v1615_v13, %v1492_v12 }
 0x4cd   : > { %1669 = vst [vmem:[#allocation4 + $0x18] sm:$0xff] %v1653_v17 }
 0x4d2   : > { %v1618_v6 = vpop.f32.mrf.mxu1 }
 0x4d3   : > { %v1654_v18 = vadd.f32 %v1618_v6, %v1493_v14 }
 0x4d5   : > { %1670 = vst [vmem:[#allocation4 + $0x98] sm:$0xff] %v1654_v18 }
 0x4da   : > { %v1621_v21 = vpop.f32.mrf.mxu1 }
 0x4db   : > { %v1655_v22 = vadd.f32 %v1621_v21, %v1494_v19 }
 0x4dd   : > { %1671 = vst [vmem:[#allocation4 + $0x8] sm:$0xff] %v1655_v22 }
 0x4e2   : > { %v1624_v24 = vpop.f32.mrf.mxu1 }
 0x4e3   : > { %v1656_v26 = vadd.f32 %v1624_v24, %v1495_v23 }
 0x4e5   : > { %1672 = vst [vmem:[#allocation4] sm:$0xff] %v1656_v26 }
 0x4e7   : > { %v1717_v27 = vpop.xlane.xlu2 %1716 }
 0x4e8   : > { %v1718_v10 = vrot.slane %v1717_v27, 4 }
 0x4ea   : > { %v1719_v34 = vadd.f32 %v1718_v10, %v1717_v27  ;;  %v1627_v16 = vpop.f32.mrf.mxu1 }
 0x4eb   : > { %v1657_v29 = vadd.f32 %v1627_v16, %v1496_v28 }
 0x4ec   : > { %v1720_v30 = vrot.slane %v1719_v34, 2 }
 0x4ed   : > { %1673 = vst [vmem:[#allocation4 + $0x78] sm:$0xff] %v1657_v29 }
 0x4ee   : > { %v1721_v31 = vadd.f32 %v1720_v30, %v1719_v34 }
 0x4f0   : > { %v1722_v32 = vrot.slane %v1721_v31, 1 }
 0x4f2   : > { %v1723_v37 = vadd.f32 %v1722_v32, %v1721_v31  ;;  %v1630_v39 = vpop.f32.mrf.mxu1 }
 0x4f3   : > { %v1658_v40 = vadd.f32 %v1630_v39, %v1497_v2 }
 0x4f4   : > { %v1724_v41 = vadd.f32 %v1723_v37, %v1714_v33 }
 0x4f5   : > { %1674 = vst [vmem:[#allocation4 + $0x50] sm:$0xff] %v1658_v40 }
 0x4f6   : > { %1725 = vst.msk [vmem:[#allocation7] sm:$0x1] %vm807_vm13, %v1724_v41 }
 0x4fa   : > { %v1633_v43 = vpop.f32.mrf.mxu1 }
 0x4fb   : > { %v1659_v7 = vadd.f32 %v1633_v43, %v1498_v42 }
 0x4fd   : > { %1675 = vst [vmem:[#allocation4 + $0x68] sm:$0xff] %v1659_v7 }
 0x502   : > { %v1636_v8 = vpop.f32.mrf.mxu1 }
 0x503   : > { %v1660_v25 = vadd.f32 %v1636_v8, %v1499_v36 }
 0x505   : > { %1676 = vst [vmem:[#allocation4 + $0x70] sm:$0xff] %v1660_v25 }
 0x50a   : > { %v1639_v46 = vpop.f32.mrf.mxu1 }
 0x50b   : > { %v1661_v47 = vadd.f32 %v1639_v46, %v1500_v45 }
 0x50d   : > { %1677 = vst [vmem:[#allocation4 + $0x30] sm:$0xff] %v1661_v47 }
 0x512   : > { %v1642_v49 = vpop.f32.mrf.mxu1 }
 0x513   : > { %v1662_v50 = vadd.f32 %v1642_v49, %v1501_v48 }
 0x515   : > { %1678 = vst [vmem:[#allocation4 + $0x158] sm:$0xff] %v1662_v50 }
 0x519   : > { %1729 = sbr.rel (%p3029_p7) target bundleno = 2000 (0x7d0), region = 104 }
 0x51a   : > { %v1645_v51 = vpop.f32.mrf.mxu1 }
 0x51b   : > { %v1663_v52 = vadd.f32 %v1645_v51, %v1502_v15 }
 0x51d   : > { %1679 = vst [vmem:[#allocation4 + $0x150] sm:$0xff] %v1663_v52 }
 0x51e   : > { %v4012_v53 = vld [vmem:[#allocation2] sm:$0x1]  ;;  %v4015_v54 = vld [vmem:[#allocation2 + $0x1] sm:$0x1]  ;;  %v4017_v55 = vld [vmem:[#allocation2 + $0x2] sm:$0x1] }
 0x51f   : > { %1787 = vxpose.xlu0.b32.start.end [1/1] (short) %v4012_v53, 128  ;;  %2102 = vxpose.xlu1.b32.start.end [1/1] (short) %v4015_v54, 128  ;;  %vm1774_vm15 = vcmask 1040384   ;;  %vm1819_vm0 = vcmask 7168   ;;  %v3483_v24 = vmov 16.0   ;;  %v1732_v40 = vld [vmem:[#allocation4 + $0xb0] sm:$0xff]  ;;  %vm2717_vm12 = vcmp.eq.s32.totalorder %v3965_v20, 0 }
 0x520   : > { %2416 = vxpose.xlu2.b32.start.end [1/1] (short) %v4017_v55, 128  ;;  %3030 = vmatpush.msk.msra.mxu0 %vm1774_vm15, %v4012_v53  ;;  %3202 = vrcp.f32 %v3483_v24  ;;  %v1733_v45 = vld [vmem:[#allocation4 + $0xd0] sm:$0xff]  ;;  %vm2725_vm13 = vcmp.eq.s32.totalorder %v3965_v20, 1  ;;  %vm2733_vm14 = vcmp.eq.s32.totalorder %v3965_v20, 2 }
 0x521   : > { %3047 = vmatpush.msk.msra.mxu1 %vm1774_vm15, %v4015_v54  ;;  %3087 = vmatpush.msk.msra.mxu3 %vm1774_vm15, %v4012_v53  ;;  %v1734_v52 = vld [vmem:[#allocation4 + $0x10] sm:$0xff] }
 0x522   : > { %3064 = vmatpush.msk.msra.mxu2 %vm1774_vm15, %v4017_v55 }
 0x523   : > { %3088 = vmatpush.msk.msrb.mxu3 %vm1774_vm15, %v4015_v54 }
 0x526   : > { %v3203_v27 = vpop.eup %3202 }
 0x527   : > { %v1750_v28 = vmul.f32 16.0, %v3203_v27  ;;  %vm1754_vm1 = vweird.f32 %v3203_v27 }
 0x529   : > { %v1751_v34 = vsub.f32 1.0, %v1750_v28 }
 0x52b   : > { %v1752_v30 = vmul.f32 %v3203_v27, %v1751_v34 }
 0x52d   : > { %v1753_v32 = vadd.f32 %v3203_v27, %v1752_v30 }
 0x52f   : > { %v4067_v37 = vsel %vm1754_vm1, %v3203_v27, %v1753_v32 }
 0x5b9   : > { %v2432_v6 = vpop.trf.xlu2 }
 0x5ba   : > { %3065 = vmatmul.msk.f32.vlgmr.msra.gmra.mxu2 %vm1819_vm0, %v2432_v6 }
 0x5c1   : > { %v2433_v21 = vpop.trf.xlu2 }
 0x5c2   : > { %3066 = vmatmul.msk.f32.gmra.mxu2 %vm1819_vm0, %v2433_v21 }
 0x5c3   : > { %v1803_v56 = vpop.trf.xlu0  ;;  %v2118_v57 = vpop.trf.xlu1 }
 0x5c4   : > { %3031 = vmatmul.msk.f32.vlgmr.msra.gmra.mxu0 %vm1819_vm0, %v1803_v56  ;;  %3048 = vmatmul.msk.f32.vlgmr.msra.gmra.mxu1 %vm1819_vm0, %v2118_v57 }
 0x5c9   : > { %v2434_v23 = vpop.trf.xlu2 }
 0x5ca   : > { %3067 = vmatmul.msk.f32.gmra.mxu2 %vm1819_vm0, %v2434_v23 }
 0x5cb   : > { %v1804_v58 = vpop.trf.xlu0  ;;  %v2119_v44 = vpop.trf.xlu1 }
 0x5cc   : > { %3032 = vmatmul.msk.f32.gmra.mxu0 %vm1819_vm0, %v1804_v58  ;;  %3049 = vmatmul.msk.f32.gmra.mxu1 %vm1819_vm0, %v2119_v44 }
 0x5d1   : > { %v2435_v10 = vpop.trf.xlu2 }
 0x5d2   : > { %3068 = vmatmul.msk.f32.gmra.mxu2 %vm1819_vm0, %v2435_v10  ;;  %v1731_v10 = vld [vmem:[#allocation3] sm:$0x1] }
 0x5d3   : > { %v1805_v59 = vpop.trf.xlu0  ;;  %v2120_v60 = vpop.trf.xlu1 }
 0x5d4   : > { %3033 = vmatmul.msk.f32.gmra.mxu0 %vm1819_vm0, %v1805_v59  ;;  %3050 = vmatmul.msk.f32.gmra.mxu1 %vm1819_vm0, %v2120_v60 }
 0x5d9   : > { %v2436_v29 = vpop.trf.xlu2 }
 0x5da   : > { %3069 = vmatmul.msk.f32.gmra.mxu2 %vm1819_vm0, %v2436_v29 }
 0x5db   : > { %v1806_v61 = vpop.trf.xlu0  ;;  %v2121_v62 = vpop.trf.xlu1 }
 0x5dc   : > { %3034 = vmatmul.msk.f32.gmra.mxu0 %vm1819_vm0, %v1806_v61  ;;  %3051 = vmatmul.msk.f32.gmra.mxu1 %vm1819_vm0, %v2121_v62  ;;  %v1735_v62 = vld [vmem:[#allocation4 + $0x48] sm:$0xff] }
 0x5e1   : > { %v2437_v33 = vpop.trf.xlu2 }
 0x5e2   : > { %3070 = vmatmul.msk.f32.gmra.mxu2 %vm1819_vm0, %v2437_v33 }
 0x5e3   : > { %v1807_v63 = vpop.trf.xlu0  ;;  %v2122_v0 = vpop.trf.xlu1 }
 0x5e4   : > { %3035 = vmatmul.msk.f32.gmra.mxu0 %vm1819_vm0, %v1807_v63  ;;  %3052 = vmatmul.msk.f32.gmra.mxu1 %vm1819_vm0, %v2122_v0 }
 0x5e9   : > { %v2438_v7 = vpop.trf.xlu2 }
 0x5ea   : > { %3071 = vmatmul.msk.f32.gmra.mxu2 %vm1819_vm0, %v2438_v7 }
 0x5eb   : > { %v1808_v35 = vpop.trf.xlu0  ;;  %v2123_v1 = vpop.trf.xlu1 }
 0x5ec   : > { %3036 = vmatmul.msk.f32.gmra.mxu0 %vm1819_vm0, %v1808_v35  ;;  %3053 = vmatmul.msk.f32.gmra.mxu1 %vm1819_vm0, %v2123_v1 }
 0x5f1   : > { %v2439_v48 = vpop.trf.xlu2 }
 0x5f2   : > { %3072 = vmatmul.msk.f32.gmra.mxu2 %vm1819_vm0, %v2439_v48 }
 0x5f3   : > { %v1809_v3 = vpop.trf.xlu0  ;;  %v2124_v4 = vpop.trf.xlu1 }
 0x5f4   : > { %3037 = vmatmul.msk.f32.gmra.mxu0 %vm1819_vm0, %v1809_v3  ;;  %3054 = vmatmul.msk.f32.gmra.mxu1 %vm1819_vm0, %v2124_v4 }
 0x5f9   : > { %v2440_v58 = vpop.trf.xlu2 }
 0x5fa   : > { %3073 = vmatmul.msk.f32.gmra.mxu2 %vm1819_vm0, %v2440_v58 }
 0x5fb   : > { %v1810_v38 = vpop.trf.xlu0  ;;  %v2125_v5 = vpop.trf.xlu1 }
 0x5fc   : > { %3038 = vmatmul.msk.f32.gmra.mxu0 %vm1819_vm0, %v1810_v38  ;;  %3055 = vmatmul.msk.f32.gmra.mxu1 %vm1819_vm0, %v2125_v5  ;;  %v1736_v5 = vld [vmem:[#allocation4 + $0x160] sm:$0xff] }
 0x601   : > { %v2441_v1 = vpop.trf.xlu2 }
 0x602   : > { %3074 = vmatmul.msk.f32.gmra.mxu2 %vm1819_vm0, %v2441_v1 }
 0x603   : > { %v1811_v9 = vpop.trf.xlu0  ;;  %v2126_v11 = vpop.trf.xlu1 }
 0x604   : > { %3039 = vmatmul.msk.f32.gmra.mxu0 %vm1819_vm0, %v1811_v9  ;;  %3056 = vmatmul.msk.f32.gmra.mxu1 %vm1819_vm0, %v2126_v11 }
 0x60b   : > { %v1812_v12 = vpop.trf.xlu0  ;;  %v2127_v13 = vpop.trf.xlu1 }
 0x60c   : > { %3040 = vmatmul.msk.f32.gmra.mxu0 %vm1819_vm0, %v1812_v12  ;;  %3057 = vmatmul.msk.f32.gmra.mxu1 %vm1819_vm0, %v2127_v13  ;;  %v2442_v13 = vpop.trf.xlu2 }
 0x60d   : > { %3075 = vmatmul.msk.f32.gmra.mxu2 %vm1819_vm0, %v2442_v13 }
 0x613   : > { %v1813_v17 = vpop.trf.xlu0  ;;  %v2128_v14 = vpop.trf.xlu1 }
 0x614   : > { %3041 = vmatmul.msk.f32.gmra.mxu0 %vm1819_vm0, %v1813_v17  ;;  %3058 = vmatmul.msk.f32.gmra.mxu1 %vm1819_vm0, %v2128_v14  ;;  %v2443_v23 = vpop.trf.xlu2 }
 0x615   : > { %3076 = vmatmul.msk.f32.gmra.mxu2 %vm1819_vm0, %v2443_v23 }
 0x61b   : > { %v1814_v18 = vpop.trf.xlu0  ;;  %v2129_v19 = vpop.trf.xlu1 }
 0x61c   : > { %3042 = vmatmul.msk.f32.gmra.mxu0 %vm1819_vm0, %v1814_v18  ;;  %3059 = vmatmul.msk.f32.gmra.mxu1 %vm1819_vm0, %v2129_v19  ;;  %v1737_v18 = vld [vmem:[#allocation4 + $0x128] sm:$0xff]  ;;  %v1748_v19 = vmul.f32 %v4012_v53, %v4012_v53 }
 0x623   : > { %v1815_v22 = vpop.trf.xlu0  ;;  %v2130_v31 = vpop.trf.xlu1 }
 0x624   : > { %3043 = vmatmul.msk.f32.vlgmr.msra.gmra.mxu3 %vm1819_vm0, %v1815_v22 }
 0x625   : > { %3089 = vmatpush.msk.msra.mxu3 %vm1774_vm15, %v4017_v55 }
 0x62b   : > { %v1816_v26 = vpop.trf.xlu0  ;;  %v2131_v43 = vpop.trf.xlu1 }
 0x62c   : > { %3044 = vmatmul.msk.f32.gmra.mxu3 %vm1819_vm0, %v1816_v26  ;;  %v1756_v26 = vmul.f32 %v4067_v37, %v1748_v19 }
 0x62e   : > { %v1757_v29 = vsub.f32 %v1731_v10, %v1756_v26 }
 0x630   : > { %v1758_v32 = vmul.f32 0.06666667, %v1757_v29 }
 0x633   : > { %v1817_v16 = vpop.trf.xlu0  ;;  %v2132_v50 = vpop.trf.xlu1 }
 0x634   : > { %3045 = vmatmul.msk.f32.gmra.mxu3 %vm1819_vm0, %v1817_v16  ;;  %v1738_v16 = vld [vmem:[#allocation4 + $0x40] sm:$0xff] }
 0x63b   : > { %v1818_v2 = vpop.trf.xlu0  ;;  %v2133_v60 = vpop.trf.xlu1 }
 0x63c   : > { %3046 = vmatmul.msk.f32.gmra.mxu3 %vm1819_vm0, %v1818_v2 }
 0x641   : > { %v1888_v39 = vpop.f32.mrf.mxu0  ;;  %v4078_v63 = vpop.f32.mrf.mxu1 }
 0x642   : > { %v1936_v41 = vmul.f32 %v1888_v39, %v4067_v37 }
 0x644   : > { %3060 = vmatmul.msk.f32.vlgmr.msrb.gmra.mxu3 %vm1819_vm0, %v2130_v31  ;;  %v1952_v42 = vsub.f32 %v1732_v40, %v1936_v41  ;;  %v2444_v31 = vpop.trf.xlu2  ;;  %v1739_v41 = vld [vmem:[#allocation4 + $0x178] sm:$0xff] }
 0x646   : > { %v1968_v36 = vmul.f32 0.06666667, %v1952_v42  ;;  %v4098_v42 = vmax.f32 %v1758_v32, 0.0 }
 0x648   : > { %v1984_v8 = vmul.f32 %v1968_v36, %v1968_v36  ;;  %3204 = vrsqrt.f32 %v4098_v42  ;;  %vm1767_vm2 = vcmp.eq.f32.partialorder %v4098_v42, inf  ;;  %vm1769_vm3 = vcmp.eq.f32.partialorder %v4098_v42, 0.0 }
 0x649   : > { %v1891_v25 = vpop.f32.mrf.mxu0  ;;  %v4084_v11 = vpop.f32.mrf.mxu1 }
 0x64a   : > { %v1937_v46 = vmul.f32 %v1891_v25, %v4067_v37  ;;  %2000 = vadd.xlane.f32.xlu1 %v1984_v8 }
 0x64c   : > { %3061 = vmatmul.msk.f32.gmra.mxu3 %vm1819_vm0, %v2131_v43  ;;  %v1953_v47 = vsub.f32 %v1733_v45, %v1937_v46  ;;  %v2445_v36 = vpop.trf.xlu2  ;;  %v1740_v46 = vld [vmem:[#allocation4 + $0x108] sm:$0xff] }
 0x64e   : > { %v1969_v49 = vmul.f32 0.06666667, %v1953_v47 }
 0x650   : > { %v1985_v15 = vmul.f32 %v1969_v49, %v1969_v49  ;;  %v3205_v49 = vpop.eup %3204 }
 0x651   : > { %v1894_v51 = vpop.f32.mrf.mxu0  ;;  %v4090_v24 = vpop.f32.mrf.mxu1 }
 0x652   : > { %v1938_v56 = vmul.f32 %v1894_v51, %v4067_v37  ;;  %2002 = vadd.xlane.f32.xlu1 %v1985_v15  ;;  %v1761_v51 = vmul.f32 %v3205_v49, %v4098_v42 }
 0x654   : > { %3062 = vmatmul.msk.f32.gmra.mxu3 %vm1819_vm0, %v2132_v50  ;;  %v1954_v57 = vsub.f32 %v1734_v52, %v1938_v56  ;;  %v2446_v15 = vpop.trf.xlu2  ;;  %v1762_v56 = vmul.f32 %v3205_v49, %v1761_v51 }
 0x656   : > { %v1970_v44 = vmul.f32 0.06666667, %v1954_v57 }
 0x658   : > { %v1986_v59 = vmul.f32 %v1970_v44, %v1970_v44  ;;  %v1741_v44 = vld [vmem:[#allocation4 + $0x110] sm:$0xff] }
 0x659   : > { %v1897_v61 = vpop.f32.mrf.mxu0  ;;  %v4096_v33 = vpop.f32.mrf.mxu1 }
 0x65a   : > { %v1939_v0 = vmul.f32 %v1897_v61, %v4067_v37  ;;  %2004 = vadd.xlane.f32.xlu2 %v1986_v59  ;;  %v1763_v59 = vmul.f32 0.5, %v1762_v56 }
 0x65c   : > { %3063 = vmatmul.msk.f32.gmra.mxu3 %vm1819_vm0, %v2133_v60  ;;  %v1955_v35 = vsub.f32 %v1735_v62, %v1939_v0  ;;  %v2078_v60 = vmul.f32 %v4015_v54, %v4015_v54  ;;  %v1764_v0 = vsub.f32 1.5, %v1763_v59  ;;  %v2447_v1 = vpop.trf.xlu2  ;;  %v1770_v54 = vand.u32 2147483648, %v4098_v42 }
 0x65e   : > { %v1971_v3 = vmul.f32 0.06666667, %v1955_v35 }
 0x660   : > { %v1987_v4 = vmul.f32 %v1971_v3, %v1971_v3  ;;  %v1765_v3 = vmul.f32 %v3205_v49, %v1764_v0 }
 0x661   : > { %v1900_v38 = vpop.f32.mrf.mxu0  ;;  %v4103_v47 = vpop.f32.mrf.mxu1 }
 0x662   : > { %v1940_v9 = vmul.f32 %v1900_v38, %v4067_v37  ;;  %2006 = vadd.xlane.f32.xlu2 %v1987_v4  ;;  %v2079_v4 = vmul.f32 %v2078_v60, %v4067_v37 }
 0x664   : > { %v1956_v12 = vsub.f32 %v1736_v5, %v1940_v9  ;;  %3077 = vmatmul.msk.f32.vlgmr.msra.gmra.mxu3 %vm1819_vm0, %v2444_v31  ;;  %v2061_v5 = vld [vmem:[#allocation3 + $0x1] sm:$0x1]  ;;  %v1766_v9 = vmul.f32 %v1765_v3, %v4098_v42 }
 0x666   : > { %v1972_v17 = vmul.f32 0.06666667, %v1956_v12 }
 0x668   : > { %v1988_v14 = vmul.f32 %v1972_v17, %v1972_v17  ;;  %v1742_v17 = vld [vmem:[#allocation4 + $0x90] sm:$0xff] }
 0x669   : > { %v1903_v6 = vpop.f32.mrf.mxu0  ;;  %v4111_v62 = vpop.f32.mrf.mxu1 }
 0x66a   : > { %v1941_v21 = vmul.f32 %v1903_v6, %v4067_v37  ;;  %2008 = vadd.xlane.f32.xlu1 %v1988_v14  ;;  %v1768_v14 = vsel %vm1767_vm2, %v4098_v42, %v1766_v9  ;;  %v2080_v6 = vsub.f32 %v2061_v5, %v2079_v4 }
 0x66b   : > { %v1771_v19 = vsel %vm1769_vm3, %v1770_v54, %v1768_v14  ;;  %v2250_v54 = vmul.f32 %v4078_v63, %v4067_v37 }
 0x66c   : > { %v1957_v22 = vsub.f32 %v1737_v18, %v1941_v21  ;;  %3078 = vmatmul.msk.f32.gmra.mxu3 %vm1819_vm0, %v2445_v36  ;;  %v1772_v21 = vsub.f32 1.0, %v1771_v19  ;;  %v1744_v36 = vld [vmem:[#allocation4 + $0x148] sm:$0xff] }
 0x66e   : > { %v1973_v27 = vmul.f32 0.06666667, %v1957_v22  ;;  %v1773_v26 = vmax.f32 %v1772_v21, 0.0 }
 0x670   : > { %v1989_v28 = vmul.f32 %v1973_v27, %v1973_v27  ;;  %v2081_v27 = vmul.f32 0.06666667, %v2080_v6  ;;  %v2062_v6 = vld [vmem:[#allocation4 + $0x80] sm:$0xff] }
 0x671   : > { %v1906_v34 = vpop.f32.mrf.mxu0  ;;  %v4121_v23 = vpop.f32.mrf.mxu1 }
 0x672   : > { %v1942_v30 = vmul.f32 %v1906_v34, %v4067_v37  ;;  %2010 = vadd.xlane.f32.xlu2 %v1989_v28  ;;  %v1775_v28 = vsel %vm1774_vm15, %v1773_v26, 0.0 }
 0x673   : > { %1776 = vadd.xlane.f32.xlu0 %v1775_v28  ;;  %v2266_v28 = vsub.f32 %v2062_v6, %v2250_v54 }
 0x674   : > { %v1958_v53 = vsub.f32 %v1738_v16, %v1942_v30  ;;  %3079 = vmatmul.msk.f32.gmra.mxu3 %vm1819_vm0, %v2446_v15  ;;  %v4124_v16 = vpop.f32.mrf.mxu2  ;;  %v1743_v30 = vld [vmem:[#allocation4 + $0x118] sm:$0xff] }
 0x676   : > { %v1974_v2 = vmul.f32 0.06666667, %v1958_v53  ;;  %v4126_v53 = vmax.f32 %v2081_v27, 0.0 }
 0x678   : > { %v1990_v39 = vmul.f32 %v1974_v2, %v1974_v2  ;;  %3206 = vrsqrt.f32 %v4126_v53  ;;  %vm2090_vm4 = vcmp.eq.f32.partialorder %v4126_v53, inf  ;;  %v2093_v26 = vand.u32 2147483648, %v4126_v53 }
 0x679   : > { %v1909_v40 = vpop.f32.mrf.mxu0  ;;  %vm2092_vm5 = vcmp.eq.f32.partialorder %v4126_v53, 0.0 }
 0x67a   : > { %v1943_v43 = vmul.f32 %v1909_v40, %v4067_v37  ;;  %2012 = vadd.xlane.f32.xlu1 %v1990_v39  ;;  %v2223_v39 = vpop.f32.mrf.mxu1 }
 0x67b   : > { %v2257_v9 = vmul.f32 %v2223_v39, %v4067_v37 }
 0x67c   : > { %v1959_v7 = vsub.f32 %v1739_v41, %v1943_v43  ;;  %3080 = vmatmul.msk.f32.gmra.mxu3 %vm1819_vm0, %v2447_v1  ;;  %v4130_v41 = vpop.f32.mrf.mxu2  ;;  %v1746_v1 = vld [vmem:[#allocation4 + $0x58] sm:$0xff]  ;;  %vm2743_vm0 = vcmp.eq.s32.totalorder %v3965_v20, 4 }
 0x67e   : > { %v1975_v8 = vmul.f32 0.06666667, %v1959_v7  ;;  %v3207_v43 = vpop.eup %3206 }
 0x680   : > { %v1991_v25 = vmul.f32 %v1975_v8, %v1975_v8  ;;  %v2084_v8 = vmul.f32 %v3207_v43, %v4126_v53 }
 0x681   : > { %v1912_v45 = vpop.f32.mrf.mxu0 }
 0x682   : > { %v1944_v48 = vmul.f32 %v1912_v45, %v4067_v37  ;;  %2014 = vadd.xlane.f32.xlu2 %v1991_v25  ;;  %v4134_v45 = vpop.f32.mrf.mxu1  ;;  %v2085_v49 = vmul.f32 %v3207_v43, %v2084_v8  ;;  %v2063_v8 = vld [vmem:[#allocation4 + $0x130] sm:$0xff] }
 0x684   : > { %v1960_v50 = vsub.f32 %v1740_v46, %v1944_v48  ;;  %v4136_v46 = vpop.f32.mrf.mxu2  ;;  %v2086_v56 = vmul.f32 0.5, %v2085_v49 }
 0x686   : > { %v1976_v52 = vmul.f32 0.06666667, %v1960_v50  ;;  %v2087_v60 = vsub.f32 1.5, %v2086_v56 }
 0x688   : > { %v1992_v57 = vmul.f32 %v1976_v52, %v1976_v52  ;;  %v1745_v52 = vld [vmem:[#allocation4 + $0x100] sm:$0xff]  ;;  %v2088_v3 = vmul.f32 %v3207_v43, %v2087_v60  ;;  %v2282_v43 = vmul.f32 0.06666667, %v2266_v28 }
 0x689   : > { %v1915_v58 = vpop.f32.mrf.mxu0  ;;  %v2065_v28 = vld [vmem:[#allocation4 + $0x120] sm:$0xff] }
 0x68a   : > { %v1945_v61 = vmul.f32 %v1915_v58, %v4067_v37  ;;  %2016 = vadd.xlane.f32.xlu1 %v1992_v57  ;;  %v2229_v59 = vpop.f32.mrf.mxu1 }
 0x68c   : > { %v1961_v35 = vsub.f32 %v1741_v44, %v1945_v61  ;;  %v4139_v58 = vpop.f32.mrf.mxu2 }
 0x68e   : > { %v1977_v38 = vmul.f32 0.06666667, %v1961_v35 }
 0x690   : > { %v1993_v12 = vmul.f32 %v1977_v38, %v1977_v38  ;;  %v2053_v38 = vmul.f32 %v4098_v42, %v4098_v42 }
 0x691   : > { %v1918_v13 = vpop.f32.mrf.mxu0 }
 0x692   : > { %v1946_v18 = vmul.f32 %v1918_v13, %v4067_v37  ;;  %2018 = vadd.xlane.f32.xlu2 %v1993_v12  ;;  %v2069_v13 = vld [vmem:[#allocation4 + $0x168] sm:$0xff]  ;;  %v2054_v19 = vsel %vm1774_vm15, %v2053_v38, 0.0  ;;  %v2232_v21 = vpop.f32.mrf.mxu1 }
 0x694   : > { %v1962_v22 = vsub.f32 %v1742_v17, %v1946_v18  ;;  %v4144_v5 = vpop.f32.mrf.mxu2  ;;  %v2089_v17 = vmul.f32 %v2088_v3, %v4126_v53  ;;  %v2064_v3 = vld [vmem:[#allocation4 + $0x138] sm:$0xff] }
 0x696   : > { %v1978_v10 = vmul.f32 0.06666667, %v1962_v22  ;;  %v2273_v22 = vsub.f32 %v2069_v13, %v2257_v9  ;;  %v2091_v63 = vsel %vm2090_vm4, %v4126_v53, %v2089_v17  ;;  %v2075_v17 = vld [vmem:[#allocation4 + $0x170] sm:$0xff] }
 0x697   : > { %v2094_v39 = vsel %vm2092_vm5, %v2093_v26, %v2091_v63 }
 0x698   : > { %v1994_v34 = vmul.f32 %v1978_v10, %v1978_v10  ;;  %v1747_v10 = vld [vmem:[#allocation4 + $0xd8] sm:$0xff] }
 0x699   : > { %v1921_v29 = vpop.f32.mrf.mxu0 }
 0x69a   : > { %v1947_v31 = vmul.f32 %v1921_v29, %v4067_v37  ;;  %2020 = vadd.xlane.f32.xlu1 %v1994_v34  ;;  %v2260_v29 = vmul.f32 %v2232_v21, %v4067_v37 }
 0x69c   : > { %v1963_v32 = vsub.f32 %v1743_v30, %v1947_v31  ;;  %v2072_v30 = vld [vmem:[#allocation4 + $0x20] sm:$0xff]  ;;  %v4157_v31 = vpop.f32.mrf.mxu2 }
 0x69e   : > { %v1979_v2 = vmul.f32 0.06666667, %v1963_v32 }
 0x6a0   : > { %v1995_v40 = vmul.f32 %v1979_v2, %v1979_v2  ;;  %v2289_v2 = vmul.f32 0.06666667, %v2273_v22  ;;  %v2253_v22 = vmul.f32 %v4096_v33, %v4067_v37  ;;  %v2367_v33 = vmul.f32 %v4126_v53, %v4126_v53 }
 0x6a2   : > { %2022 = vadd.xlane.f32.xlu2 %v1995_v40  ;;  %v2251_v40 = vmul.f32 %v4084_v11, %v4067_v37  ;;  %v2259_v11 = vmul.f32 %v2229_v59, %v4067_v37 }
 0x6a4   : > { %v2267_v56 = vsub.f32 %v2063_v8, %v2251_v40  ;;  %v4161_v60 = vpop.f32.mrf.mxu2  ;;  %v2269_v40 = vsub.f32 %v2065_v28, %v2253_v22  ;;  %v2383_v22 = vld [vmem:[#allocation4 + $0x8] sm:$0xff]  ;;  %v2256_v28 = vmul.f32 %v4121_v23, %v4067_v37 }
 0x6a7   : > { %v1924_v7 = vpop.f32.mrf.mxu3 }
 0x6a8   : > { %v1948_v25 = vmul.f32 %v1924_v7, %v4067_v37 }
 0x6aa   : > { %v1964_v48 = vsub.f32 %v1744_v36, %v1948_v25  ;;  %v2276_v36 = vsub.f32 %v2072_v30, %v2260_v29 }
 0x6ac   : > { %v1980_v50 = vmul.f32 0.06666667, %v1964_v48  ;;  %v2095_v48 = vsub.f32 1.0, %v2094_v39 }
 0x6ae   : > { %v1996_v15 = vmul.f32 %v1980_v50, %v1980_v50 }
 0x6af   : > { %v1927_v51 = vpop.f32.mrf.mxu3 }
 0x6b0   : > { %v1949_v57 = vmul.f32 %v1927_v51, %v4067_v37  ;;  %2024 = vadd.xlane.f32.xlu1 %v1996_v15  ;;  %v2305_v15 = vmul.f32 %v2289_v2, %v2289_v2 }
 0x6b2   : > { %v1965_v44 = vsub.f32 %v1745_v52, %v1949_v57  ;;  %v2298_v52 = vmul.f32 %v2282_v43, %v2282_v43  ;;  %v2292_v57 = vmul.f32 0.06666667, %v2276_v36  ;;  %v2375_v43 = vld [vmem:[#allocation3 + $0x2] sm:$0x1]  ;;  %v2565_v36 = vmul.f32 %v4130_v41, %v4067_v37 }
 0x6b4   : > { %v1981_v61 = vmul.f32 0.06666667, %v1965_v44  ;;  %v2096_v44 = vmax.f32 %v2095_v48, 0.0  ;;  %v2285_v48 = vmul.f32 0.06666667, %v2269_v40 }
 0x6b6   : > { %v1997_v0 = vmul.f32 %v1981_v61, %v1981_v61  ;;  %v2252_v61 = vmul.f32 %v4090_v24, %v4067_v37  ;;  %v2097_v38 = vsel %vm1774_vm15, %v2096_v44, 0.0  ;;  %v2074_v24 = vld [vmem:[#allocation4 + $0xa0] sm:$0xff] }
 0x6b7   : > { %v1930_v35 = vpop.f32.mrf.mxu3 }
 0x6b8   : > { %v1950_v4 = vmul.f32 %v1930_v35, %v4067_v37  ;;  %2026 = vadd.xlane.f32.xlu2 %v1997_v0  ;;  %v2283_v0 = vmul.f32 0.06666667, %v2267_v56  ;;  %v2071_v35 = vld [vmem:[#allocation4 + $0xf8] sm:$0xff] }
 0x6ba   : > { %v1966_v12 = vsub.f32 %v1746_v1, %v1950_v4  ;;  %v2308_v1 = vmul.f32 %v2292_v57, %v2292_v57  ;;  %v2299_v13 = vmul.f32 %v2283_v0, %v2283_v0 }
 0x6bc   : > { %v1982_v14 = vmul.f32 0.06666667, %v1966_v12  ;;  %v2275_v12 = vsub.f32 %v2071_v35, %v2259_v11  ;;  %v2301_v11 = vmul.f32 %v2285_v48, %v2285_v48  ;;  %v2568_v35 = vmul.f32 %v4144_v5, %v4067_v37  ;;  %v2386_v48 = vld [vmem:[#allocation4 + $0x50] sm:$0xff] }
 0x6bd   : > { %v2001_v18 = vpop.xlane.xlu1 %2000 }
 0x6be   : > { %v1998_v42 = vmul.f32 %v1982_v14, %v1982_v14  ;;  %v2268_v14 = vsub.f32 %v2064_v3, %v2252_v61  ;;  %v2077_v61 = vld [vmem:[#allocation4 + $0x140] sm:$0xff] }
 0x6bf   : > { %v1933_v27 = vpop.f32.mrf.mxu3 }
 0x6c0   : > { %v1951_v34 = vmul.f32 %v1933_v27, %v4067_v37  ;;  %2055 = vadd.xlane.f32.xlu2 %v2054_v19  ;;  %2028 = vadd.xlane.f32.xlu0 %v1998_v42  ;;  %v2291_v19 = vmul.f32 0.06666667, %v2275_v12  ;;  %v2392_v42 = vmul.f32 %v4017_v55, %v4017_v55  ;;  %v2284_v26 = vmul.f32 0.06666667, %v2268_v14  ;;  %v2067_v14 = vld [vmem:[#allocation4 + $0xa8] sm:$0xff] }
 0x6c2   : > { %v1967_v32 = vsub.f32 %v1747_v10, %v1951_v34  ;;  %v2307_v29 = vmul.f32 %v2291_v19, %v2291_v19  ;;  %v2300_v39 = vmul.f32 %v2284_v26, %v2284_v26  ;;  %v2567_v26 = vmul.f32 %v4139_v58, %v4067_v37 }
 0x6c4   : > { %v1983_v7 = vmul.f32 0.06666667, %v1967_v32  ;;  %v2393_v32 = vmul.f32 %v2392_v42, %v4067_v37 }
 0x6c5   : > { %v2003_v25 = vpop.xlane.xlu1 %2002 }
 0x6c6   : > { %v2032_v49 = vadd.f32 %v2003_v25, %v2001_v18  ;;  %v1999_v50 = vmul.f32 %v1983_v7, %v1983_v7  ;;  %v4169_v18 = vpop.f32.mrf.mxu2  ;;  %v2394_v8 = vsub.f32 %v2375_v43, %v2393_v32  ;;  %v2254_v25 = vmul.f32 %v4103_v47, %v4067_v37 }
 0x6c7   : > { %v2238_v51 = vpop.f32.mrf.mxu3  ;;  %v2564_v47 = vmul.f32 %v4124_v16, %v4067_v37 }
 0x6c8   : > { %2030 = vadd.xlane.f32.xlu1 %v1999_v50  ;;  %2328 = vadd.xlane.f32.xlu2 %v2305_v15  ;;  %v2262_v6 = vmul.f32 %v2238_v51, %v4067_v37  ;;  %v2066_v15 = vld [vmem:[#allocation4 + $0xe0] sm:$0xff]  ;;  %v2395_v44 = vmul.f32 0.06666667, %v2394_v8 }
 0x6c9   : > { %2314 = vadd.xlane.f32.xlu0 %v2298_v52  ;;  %v2368_v52 = vsel %vm1774_vm15, %v2367_v33, 0.0  ;;  %v2270_v0 = vsub.f32 %v2066_v15, %v2254_v25  ;;  %v2258_v15 = vmul.f32 %v4134_v45, %v4067_v37  ;;  %v2385_v45 = vld [vmem:[#allocation4 + $0x78] sm:$0xff] }
 0x6ca   : > { %v2278_v10 = vsub.f32 %v2074_v24, %v2262_v6 }
 0x6cb   : > { %v2286_v12 = vmul.f32 0.06666667, %v2270_v0 }
 0x6cc   : > { %v2294_v55 = vmul.f32 0.06666667, %v2278_v10 }
 0x6cd   : > { %v2005_v4 = vpop.xlane.xlu2 %2004  ;;  %v2302_v5 = vmul.f32 %v2286_v12, %v2286_v12 }
 0x6ce   : > { %v2033_v9 = vadd.f32 %v2032_v49, %v2005_v4  ;;  %v4180_v7 = vpop.f32.mrf.mxu2  ;;  %v2377_v49 = vld [vmem:[#allocation4 + $0xc8] sm:$0xff]  ;;  %v2310_v50 = vmul.f32 %v2294_v55, %v2294_v55  ;;  %v2376_v4 = vld [vmem:[#allocation4 + $0x60] sm:$0xff] }
 0x6cf   : > { %v2241_v54 = vpop.f32.mrf.mxu3  ;;  %v2581_v57 = vsub.f32 %v2377_v49, %v2565_v36  ;;  %v2570_v49 = vmul.f32 %v4161_v60, %v4067_v37 }
 0x6d0   : > { %v2263_v59 = vmul.f32 %v2241_v54, %v4067_v37  ;;  %2098 = vadd.xlane.f32.xlu1 %v2097_v38  ;;  %2334 = vadd.xlane.f32.xlu2 %v2308_v1  ;;  %v4192_v38 = vmax.f32 %v2395_v44, 0.0  ;;  %v2380_v54 = vld [vmem:[#allocation4 + $0xc0] sm:$0xff] }
 0x6d1   : > { %2316 = vadd.xlane.f32.xlu0 %v2299_v13  ;;  %v2597_v3 = vmul.f32 0.06666667, %v2581_v57  ;;  %v2070_v57 = vld [vmem:[#allocation4 + $0xe8] sm:$0xff] }
 0x6d2   : > { %v2279_v21 = vsub.f32 %v2075_v17, %v2263_v59  ;;  %v2580_v59 = vsub.f32 %v2376_v4, %v2564_v47  ;;  %3208 = vrsqrt.f32 %v4192_v38  ;;  %vm2404_vm6 = vcmp.eq.f32.partialorder %v4192_v38, inf }
 0x6d3   : > { %v2613_v19 = vmul.f32 %v2597_v3, %v2597_v3  ;;  %vm2406_vm7 = vcmp.eq.f32.partialorder %v4192_v38, 0.0 }
 0x6d4   : > { %v2295_v27 = vmul.f32 0.06666667, %v2279_v21  ;;  %v2584_v21 = vsub.f32 %v2380_v54, %v2568_v35  ;;  %v2274_v35 = vsub.f32 %v2070_v57, %v2258_v15 }
 0x6d5   : > { %v2007_v63 = vpop.xlane.xlu2 %2006 }
 0x6d6   : > { %v2034_v34 = vadd.f32 %v2033_v9, %v2007_v63  ;;  %v2311_v30 = vmul.f32 %v2295_v27, %v2295_v27  ;;  %v2255_v9 = vmul.f32 %v4111_v62, %v4067_v37  ;;  %v2543_v13 = vpop.f32.mrf.mxu2  ;;  %v2571_v62 = vmul.f32 %v4169_v18, %v4067_v37 }
 0x6d7   : > { %v4176_v2 = vpop.f32.mrf.mxu3  ;;  %v2596_v27 = vmul.f32 0.06666667, %v2580_v59  ;;  %v2600_v10 = vmul.f32 0.06666667, %v2584_v21  ;;  %v2573_v60 = vmul.f32 %v2543_v13, %v4067_v37 }
 0x6d8   : > { %2332 = vadd.xlane.f32.xlu1 %v2307_v29  ;;  %2340 = vadd.xlane.f32.xlu2 %v2311_v30  ;;  %v2271_v42 = vsub.f32 %v2067_v14, %v2255_v9  ;;  %v2068_v29 = vld [vmem:[#allocation4 + $0xb8] sm:$0xff]  ;;  %v2587_v30 = vsub.f32 %v2383_v22, %v2571_v62  ;;  %v3209_v32 = vpop.eup %3208  ;;  %v2073_v14 = vld [vmem:[#allocation4 + $0x88] sm:$0xff] }
 0x6d9   : > { %2318 = vadd.xlane.f32.xlu0 %v2300_v39  ;;  %v2612_v55 = vmul.f32 %v2596_v27, %v2596_v27  ;;  %v2616_v18 = vmul.f32 %v2600_v10, %v2600_v10  ;;  %v2272_v8 = vsub.f32 %v2068_v29, %v2256_v28  ;;  %v2398_v23 = vmul.f32 %v3209_v32, %v4192_v38  ;;  %v2388_v27 = vld [vmem:[#allocation4 + $0x70] sm:$0xff] }
 0x6da   : > { %v2287_v63 = vmul.f32 0.06666667, %v2271_v42  ;;  %v2603_v58 = vmul.f32 0.06666667, %v2587_v30  ;;  %v2264_v10 = vmul.f32 %v4176_v2, %v4067_v37  ;;  %v2076_v29 = vld [vmem:[#allocation4 + $0xf0] sm:$0xff] }
 0x6dc   : > { %v2303_v36 = vmul.f32 %v2287_v63, %v2287_v63 }
 0x6dd   : > { %v2009_v51 = vpop.xlane.xlu1 %2008 }
 0x6de   : > { %v2035_v56 = vadd.f32 %v2034_v34, %v2009_v51  ;;  %v2379_v34 = vld [vmem:[#allocation4 + $0x38] sm:$0xff]  ;;  %v2546_v40 = vpop.f32.mrf.mxu2  ;;  %v2288_v51 = vmul.f32 0.06666667, %v2272_v8 }
 0x6df   : > { %v2247_v53 = vpop.f32.mrf.mxu3  ;;  %v2583_v33 = vsub.f32 %v2379_v34, %v2567_v26  ;;  %v2574_v25 = vmul.f32 %v2546_v40, %v4067_v37 }
 0x6e0   : > { %v2265_v41 = vmul.f32 %v2247_v53, %v4067_v37  ;;  %2338 = vadd.xlane.f32.xlu1 %v2310_v50  ;;  %2369 = vadd.xlane.f32.xlu2 %v2368_v52  ;;  %v2382_v52 = vld [vmem:[#allocation4 + $0x98] sm:$0xff]  ;;  %v2399_v53 = vmul.f32 %v3209_v32, %v2398_v23  ;;  %v2304_v47 = vmul.f32 %v2288_v51, %v2288_v51 }
 0x6e1   : > { %2320 = vadd.xlane.f32.xlu0 %v2301_v11  ;;  %v2599_v50 = vmul.f32 0.06666667, %v2583_v33  ;;  %v2590_v44 = vsub.f32 %v2386_v48, %v2574_v25  ;;  %v2407_v33 = vand.u32 2147483648, %v4192_v38 }
 0x6e2   : > { %v2281_v1 = vsub.f32 %v2077_v61, %v2265_v41  ;;  %v2586_v41 = vsub.f32 %v2382_v52, %v2570_v49  ;;  %v2400_v4 = vmul.f32 0.5, %v2399_v53  ;;  %v2566_v53 = vmul.f32 %v4136_v46, %v4067_v37 }
 0x6e3   : > { %v2615_v0 = vmul.f32 %v2599_v50, %v2599_v50  ;;  %v2606_v3 = vmul.f32 0.06666667, %v2590_v44 }
 0x6e4   : > { %v2297_v17 = vmul.f32 0.06666667, %v2281_v1  ;;  %v2235_v1 = vpop.f32.mrf.mxu1  ;;  %v2602_v12 = vmul.f32 0.06666667, %v2586_v41 }
 0x6e5   : > { %v2011_v6 = vpop.xlane.xlu2 %2010  ;;  %v2261_v54 = vmul.f32 %v2235_v1, %v4067_v37  ;;  %v2622_v59 = vmul.f32 %v2606_v3, %v2606_v3 }
 0x6e6   : > { %v2036_v16 = vadd.f32 %v2035_v56, %v2011_v6  ;;  %v2313_v24 = vmul.f32 %v2297_v17, %v2297_v17  ;;  %v2619_v56 = vmul.f32 %v2603_v58, %v2603_v58  ;;  %v2290_v17 = vmul.f32 0.06666667, %v2274_v35  ;;  %v2391_v35 = vld [vmem:[#allocation4 + $0x150] sm:$0xff] }
 0x6e7   : > { %v2552_v9 = vpop.f32.mrf.mxu3  ;;  %v2589_v6 = vsub.f32 %v2385_v45, %v2573_v60  ;;  %v2618_v21 = vmul.f32 %v2602_v12, %v2602_v12  ;;  %v2277_v42 = vsub.f32 %v2073_v14, %v2261_v54  ;;  %v2381_v12 = vld [vmem:[#allocation4 + $0x18] sm:$0xff] }
 0x6e8   : > { %2344 = vadd.xlane.f32.xlu1 %v2313_v24  ;;  %2630 = vadd.xlane.f32.xlu2 %v2613_v19  ;;  %v2576_v22 = vmul.f32 %v2552_v9, %v4067_v37 }
 0x6e9   : > { %2322 = vadd.xlane.f32.xlu0 %v2302_v5  ;;  %v2306_v5 = vmul.f32 %v2290_v17, %v2290_v17  ;;  %v2605_v13 = vmul.f32 0.06666667, %v2589_v6  ;;  %v2293_v28 = vmul.f32 0.06666667, %v2277_v42  ;;  %v2572_v17 = vmul.f32 %v4180_v7, %v4067_v37  ;;  %v1777_v42 = vpop.xlane.xlu0 %1776 }
 0x6eb   : > { %v2621_v34 = vmul.f32 %v2605_v13, %v2605_v13 }
 0x6ed   : > { %v2013_v39 = vpop.xlane.xlu1 %2012 }
 0x6ee   : > { %v2037_v43 = vadd.f32 %v2036_v16, %v2013_v39  ;;  %v2401_v16 = vsub.f32 1.5, %v2400_v4  ;;  %v2592_v39 = vsub.f32 %v2388_v27, %v2576_v22  ;;  %v2569_v4 = vmul.f32 %v4157_v31, %v4067_v37 }
 0x6ef   : > { %v2555_v26 = vpop.f32.mrf.mxu3  ;;  %v3485_v31 = vmov 128.0  }
 0x6f0   : > { %2628 = vadd.xlane.f32.xlu1 %v2612_v55  ;;  %2636 = vadd.xlane.f32.xlu2 %v2616_v18  ;;  %v2402_v62 = vmul.f32 %v3209_v32, %v2401_v16  ;;  %v2577_v63 = vmul.f32 %v2555_v26, %v4067_v37  ;;  %v2309_v55 = vmul.f32 %v2293_v28, %v2293_v28  ;;  %v2608_v8 = vmul.f32 0.06666667, %v2592_v39  ;;  %v2384_v16 = vld [vmem:[#allocation4] sm:$0xff] }
 0x6f1   : > { %2324 = vadd.xlane.f32.xlu0 %v2303_v36  ;;  %v2280_v18 = vsub.f32 %v2076_v29, %v2264_v10  ;;  %v2585_v54 = vsub.f32 %v2381_v12, %v2569_v4  ;;  %v2387_v10 = vld [vmem:[#allocation4 + $0x68] sm:$0xff]  ;;  %v2681_v28 = vmul.f32 %v4192_v38, %v4192_v38 }
 0x6f2   : > { %v2403_v30 = vmul.f32 %v2402_v62, %v4192_v38  ;;  %v2624_v50 = vmul.f32 %v2608_v8, %v2608_v8 }
 0x6f3   : > { %v2296_v23 = vmul.f32 0.06666667, %v2280_v18  ;;  %v2601_v6 = vmul.f32 0.06666667, %v2585_v54  ;;  %v2682_v29 = vsel %vm1774_vm15, %v2681_v28, 0.0 }
 0x6f4   : > { %v2405_v2 = vsel %vm2404_vm6, %v4192_v38, %v2403_v30  ;;  %v3486_v30 = vmov 0  }
 0x6f5   : > { %v2015_v11 = vpop.xlane.xlu2 %2014  ;;  %v2408_v48 = vsel %vm2406_vm7, %v2407_v33, %v2405_v2  ;;  %3199 = vset.pattern.permute.xlu0 %v3486_v30  ;;  %3200 = vset.pattern.permute.xlu1 %v3486_v30 }
 0x6f6   : > { %v2038_v61 = vadd.f32 %v2037_v43, %v2015_v11  ;;  %v2389_v43 = vld [vmem:[#allocation4 + $0x30] sm:$0xff]  ;;  %v2409_v52 = vsub.f32 1.0, %v2408_v48  ;;  %3201 = vset.pattern.permute.xlu2 %v3486_v30 }
 0x6f7   : > { %v2593_v36 = vsub.f32 %v2389_v43, %v2577_v63  ;;  %v4220_v58 = vpop.f32.mrf.mxu3 }
 0x6f8   : > { %2634 = vadd.xlane.f32.xlu1 %v2615_v0  ;;  %2642 = vadd.xlane.f32.xlu2 %v2619_v56  ;;  %v2312_v56 = vmul.f32 %v2296_v23, %v2296_v23  ;;  %v2410_v44 = vmax.f32 %v2409_v52, 0.0  ;;  %v2578_v18 = vmul.f32 %v4220_v58, %v4067_v37 }
 0x6f9   : > { %2326 = vadd.xlane.f32.xlu0 %v2304_v47  ;;  %v2609_v25 = vmul.f32 0.06666667, %v2593_v36  ;;  %v2699_v36 = vld [vmem:[#allocation6] sm:$0x1] }
 0x6fa   : > { %v2411_v47 = vsel %vm1774_vm15, %v2410_v44, 0.0  ;;  %vm2735_vm15 = vcmp.eq.s32.totalorder %v3965_v20, 3 }
 0x6fb   : > { %v2625_v49 = vmul.f32 %v2609_v25, %v2609_v25  ;;  %v2390_v25 = vld [vmem:[#allocation4 + $0x158] sm:$0xff] }
 0x6fd   : > { %v2017_v24 = vpop.xlane.xlu1 %2016 }
 0x6fe   : > { %v2039_v19 = vadd.f32 %v2038_v61, %v2017_v24  ;;  %v2378_v61 = vld [vmem:[#allocation4 + $0x28] sm:$0xff]  ;;  %v3484_v24 = vmov 48.0  }
 0x6ff   : > { %v2561_v57 = vpop.f32.mrf.mxu3  ;;  %v2582_v1 = vsub.f32 %v2378_v61, %v2566_v53  ;;  %3210 = vrcp.f32 %v3484_v24  ;;  %v3487_v53 = vmov 2048.0  }
 0x700   : > { %2640 = vadd.xlane.f32.xlu1 %v2618_v21  ;;  %2648 = vadd.xlane.f32.xlu2 %v2622_v59  ;;  %v2579_v11 = vmul.f32 %v2561_v57, %v4067_v37  ;;  %v2588_v21 = vsub.f32 %v2384_v16, %v2572_v17  ;;  %3212 = vrcp.f32 %v3485_v31  ;;  %v2697_v31 = vld [vmem:[#allocation5] sm:$0x1] }
 0x701   : > { %2330 = vadd.xlane.f32.xlu0 %v2306_v5  ;;  %v2598_v45 = vmul.f32 0.06666667, %v2582_v1  ;;  %v2549_v5 = vpop.f32.mrf.mxu2  ;;  %3214 = vrcp.f32 %v3487_v53 }
 0x702   : > { %v2595_v60 = vsub.f32 %v2391_v35, %v2579_v11  ;;  %v2575_v62 = vmul.f32 %v2549_v5, %v4067_v37  ;;  %v2604_v26 = vmul.f32 0.06666667, %v2588_v21  ;;  %v2708_v21 = vld [vmem:[#allocation7] sm:$0x1] }
 0x703   : > { %v2614_v46 = vmul.f32 %v2598_v45, %v2598_v45 }
 0x704   : > { %v2611_v3 = vmul.f32 0.06666667, %v2595_v60  ;;  %v2620_v39 = vmul.f32 %v2604_v26, %v2604_v26 }
 0x705   : > { %v2019_v40 = vpop.xlane.xlu2 %2018  ;;  %v3211_v13 = vpop.eup %3210 }
 0x706   : > { %v2040_v32 = vadd.f32 %v2039_v19, %v2019_v40  ;;  %v2627_v9 = vmul.f32 %v2611_v3, %v2611_v3  ;;  %v2617_v19 = vmul.f32 %v2601_v6, %v2601_v6  ;;  %v2701_v27 = vmul.f32 48.0, %v3211_v13 }
 0x707   : > { %v2591_v40 = vsub.f32 %v2387_v10, %v2575_v62  ;;  %vm2705_vm8 = vweird.f32 %v3211_v13 }
 0x708   : > { %2646 = vadd.xlane.f32.xlu1 %v2621_v34  ;;  %2654 = vadd.xlane.f32.xlu2 %v2625_v49  ;;  %v2702_v63 = vsub.f32 1.0, %v2701_v27  ;;  %v3213_v34 = vpop.eup %3212 }
 0x709   : > { %2336 = vadd.xlane.f32.xlu0 %v2309_v55  ;;  %v1779_v43 = vmul.f32 128.0, %v3213_v34  ;;  %v2607_v33 = vmul.f32 0.06666667, %v2591_v40  ;;  %vm1783_vm9 = vweird.f32 %v3213_v34  ;;  %v3215_v35 = vpop.eup %3214 }
 0x70a   : > { %vm2714_vm10 = vweird.f32 %v3215_v35 }
 0x70b   : > { %v1780_v48 = vsub.f32 1.0, %v1779_v43  ;;  %v2623_v49 = vmul.f32 %v2607_v33, %v2607_v33 }
 0x70d   : > { %v2021_v15 = vpop.xlane.xlu1 %2020 }
 0x70e   : > { %v2041_v51 = vadd.f32 %v2040_v32, %v2021_v15  ;;  %v2703_v32 = vmul.f32 %v3211_v13, %v2702_v63  ;;  %v1781_v15 = vmul.f32 %v3213_v34, %v1780_v48 }
 0x710   : > { %2652 = vadd.xlane.f32.xlu1 %v2624_v50  ;;  %2683 = vadd.xlane.f32.xlu2 %v2682_v29  ;;  %v2704_v55 = vadd.f32 %v3211_v13, %v2703_v32  ;;  %v2594_v50 = vsub.f32 %v2390_v25, %v2578_v18  ;;  %v1782_v44 = vadd.f32 %v3213_v34, %v1781_v15 }
 0x711   : > { %2342 = vadd.xlane.f32.xlu0 %v2312_v56 }
 0x712   : > { %v2706_v2 = vsel %vm2705_vm8, %v3211_v13, %v2704_v55  ;;  %v2610_v52 = vmul.f32 0.06666667, %v2594_v50  ;;  %v2698_v13 = vmul.f32 %v2697_v31, %v4067_v37 }
 0x713   : > { %v2707_v23 = vmul.f32 %v2706_v2, %v2699_v36 }
 0x714   : > { %v2626_v11 = vmul.f32 %v2610_v52, %v2610_v52 }
 0x715   : > { %v2023_v0 = vpop.xlane.xlu2 %2022 }
 0x716   : > { %v2042_v41 = vadd.f32 %v2041_v51, %v2023_v0  ;;  %v4236_v0 = vsel %vm1783_vm9, %v3213_v34, %v1782_v44 }
 0x717   : > { %v1785_v1 = vmul.f32 %v4236_v0, %v1777_v42 }
 0x718   : > { %2658 = vadd.xlane.f32.xlu1 %v2627_v9  ;;  %v2710_v9 = vmul.f32 2048.0, %v3215_v35 }
 0x719   : > { %2412 = vadd.xlane.f32.xlu0 %v2411_v47 }
 0x71a   : > { %v2711_v54 = vsub.f32 1.0, %v2710_v9 }
 0x71c   : > { %v2712_v6 = vmul.f32 %v3215_v35, %v2711_v54 }
 0x71e   : > { %v2713_v16 = vadd.f32 %v3215_v35, %v2712_v6 }
 0x720   : > { %v2715_v5 = vsel %vm2714_vm10, %v3215_v35, %v2713_v16 }
 0x721   : > { %2632 = vadd.xlane.f32.xlu0 %v2614_v46  ;;  %v2716_v42 = vmul.f32 %v2715_v5, %v2708_v21 }
 0x723   : > { %v2025_v14 = vpop.xlane.xlu1 %2024 }
 0x724   : > { %v2043_v59 = vadd.f32 %v2042_v41, %v2025_v14 }
 0x728   : > { %2738 = vperm.xlu2 %3201, %v2716_v42  }
 0x729   : > { %2638 = vadd.xlane.f32.xlu0 %v2617_v19 }
 0x72b   : > { %v2027_v22 = vpop.xlane.xlu2 %2026 }
 0x72c   : > { %v2044_v7 = vadd.f32 %v2043_v59, %v2027_v22 }
 0x731   : > { %2644 = vadd.xlane.f32.xlu0 %v2620_v39  ;;  %2728 = vperm.xlu1 %3200, %v2707_v23  }
 0x733   : > { %v2029_v38 = vpop.xlane.xlu0 %2028  ;;  %v2056_v14 = vpop.xlane.xlu2 %2055 }
 0x734   : > { %v2045_v8 = vadd.f32 %v2044_v7, %v2029_v38 }
 0x739   : > { %2650 = vadd.xlane.f32.xlu0 %v2623_v49 }
 0x73b   : > { %v2031_v51 = vpop.xlane.xlu1 %2030  ;;  %v2329_v10 = vpop.xlane.xlu2 %2328 }
 0x73c   : > { %v2046_v56 = vadd.f32 %v2045_v8, %v2031_v51  ;;  %v2315_v57 = vpop.xlane.xlu0 %2314 }
 0x73e   : > { %v2047_v58 = vrot.slane %v2046_v56, 4 }
 0x740   : > { %v2048_v61 = vadd.f32 %v2047_v58, %v2046_v56 }
 0x741   : > { %2656 = vadd.xlane.f32.xlu0 %v2626_v11 }
 0x742   : > { %v2049_v41 = vrot.slane %v2048_v61, 2 }
 0x743   : > { %v2099_v47 = vpop.xlane.xlu1 %2098  ;;  %v2335_v30 = vpop.xlane.xlu2 %2334 }
 0x744   : > { %v2050_v60 = vadd.f32 %v2049_v41, %v2048_v61  ;;  %v2100_v3 = vmul.f32 %v2099_v47, %v4236_v0  ;;  %v2317_v4 = vpop.xlane.xlu0 %2316 }
 0x745   : > { %v2346_v45 = vadd.f32 %v2317_v4, %v2315_v57 }
 0x746   : > { %v2051_v12 = vrot.slane %v2050_v60, 1  ;;  %v4240_v46 = vadd.f32 %v2100_v3, %v1785_v1 }
 0x748   : > { %v2052_v17 = vadd.f32 %v2051_v12, %v2050_v60 }
 0x74a   : > { %v2057_v59 = vsub.f32 %v2052_v17, %v2056_v14 }
 0x74b   : > { %v2333_v28 = vpop.xlane.xlu1 %2332  ;;  %v2341_v38 = vpop.xlane.xlu2 %2340 }
 0x74c   : > { %v2319_v24 = vpop.xlane.xlu0 %2318  ;;  %v2058_v60 = vmul.f32 %v2057_v59, %v4236_v0  ;;  %v3488_v59 = vmov 3.0  }
 0x74d   : > { %v2347_v19 = vadd.f32 %v2346_v45, %v2319_v24  ;;  %3216 = vrcp.f32 %v3488_v59 }
 0x753   : > { %v2339_v43 = vpop.xlane.xlu1 %2338  ;;  %v2370_v48 = vpop.xlane.xlu2 %2369 }
 0x754   : > { %v2321_v62 = vpop.xlane.xlu0 %2320 }
 0x755   : > { %v2348_v22 = vadd.f32 %v2347_v19, %v2321_v62  ;;  %2720 = vperm.xlu0 %3199, %v2698_v13  }
 0x75b   : > { %v2345_v2 = vpop.xlane.xlu1 %2344  ;;  %v2631_v44 = vpop.xlane.xlu2 %2630 }
 0x75c   : > { %v2323_v26 = vpop.xlane.xlu0 %2322 }
 0x75d   : > { %v2349_v27 = vadd.f32 %v2348_v22, %v2323_v26 }
 0x763   : > { %v2629_v15 = vpop.xlane.xlu1 %2628  ;;  %v2637_v45 = vpop.xlane.xlu2 %2636 }
 0x764   : > { %v2325_v7 = vpop.xlane.xlu0 %2324  ;;  %v2660_v53 = vadd.f32 %v2631_v44, %v2629_v15 }
 0x765   : > { %v2350_v34 = vadd.f32 %v2349_v27, %v2325_v7 }
 0x76b   : > { %v2635_v61 = vpop.xlane.xlu1 %2634  ;;  %v2643_v6 = vpop.xlane.xlu2 %2642 }
 0x76c   : > { %v2327_v63 = vpop.xlane.xlu0 %2326 }
 0x76d   : > { %v2351_v29 = vadd.f32 %v2350_v34, %v2327_v63 }
 0x76f   : > { %v2352_v39 = vadd.f32 %v2351_v29, %v2329_v10  ;;  %v3217_v10 = vpop.eup %3216 }
 0x770   : > { %v2689_v29 = vmul.f32 3.0, %v3217_v10  ;;  %vm2693_vm11 = vweird.f32 %v3217_v10 }
 0x773   : > { %v2641_v17 = vpop.xlane.xlu1 %2640  ;;  %v2649_v31 = vpop.xlane.xlu2 %2648 }
 0x774   : > { %v2331_v40 = vpop.xlane.xlu0 %2330 }
 0x775   : > { %v2353_v32 = vadd.f32 %v2352_v39, %v2331_v40  ;;  %v2690_v40 = vsub.f32 1.0, %v2689_v29 }
 0x777   : > { %v2354_v55 = vadd.f32 %v2353_v32, %v2333_v28 }
 0x779   : > { %v2355_v18 = vadd.f32 %v2354_v55, %v2335_v30 }
 0x77b   : > { %v2647_v21 = vpop.xlane.xlu1 %2646  ;;  %v2655_v27 = vpop.xlane.xlu2 %2654 }
 0x77c   : > { %v2337_v37 = vpop.xlane.xlu0 %2336 }
 0x77d   : > { %v2356_v33 = vadd.f32 %v2355_v18, %v2337_v37  ;;  %v2691_v18 = vmul.f32 %v3217_v10, %v2690_v40 }
 0x77f   : > { %v2357_v36 = vadd.f32 %v2356_v33, %v2339_v43 }
 0x781   : > { %v2358_v8 = vadd.f32 %v2357_v36, %v2341_v38  ;;  %v2692_v36 = vadd.f32 %v3217_v10, %v2691_v18 }
 0x783   : > { %v2653_v22 = vpop.xlane.xlu1 %2652  ;;  %v2684_v43 = vpop.xlane.xlu2 %2683 }
 0x784   : > { %v2343_v25 = vpop.xlane.xlu0 %2342 }
 0x785   : > { %v2359_v23 = vadd.f32 %v2358_v8, %v2343_v25 }
 0x787   : > { %v2360_v49 = vadd.f32 %v2359_v23, %v2345_v2 }
 0x789   : > { %v2361_v50 = vrot.slane %v2360_v49, 4 }
 0x78b   : > { %v2362_v51 = vadd.f32 %v2361_v50, %v2360_v49  ;;  %v2659_v34 = vpop.xlane.xlu1 %2658  ;;  %v2694_v49 = vsel %vm2693_vm11, %v3217_v10, %v2692_v36 }
 0x78c   : > { %v2413_v52 = vpop.xlane.xlu0 %2412 }
 0x78d   : > { %v2363_v56 = vrot.slane %v2362_v51, 2  ;;  %v2414_v33 = vmul.f32 %v2413_v52, %v4236_v0 }
 0x78f   : > { %v2364_v57 = vadd.f32 %v2363_v56, %v2362_v51  ;;  %v2415_v23 = vadd.f32 %v2414_v33, %v4240_v46 }
 0x791   : > { %v2365_v58 = vrot.slane %v2364_v57, 1  ;;  %v2695_v44 = vmul.f32 %v2694_v49, %v2415_v23 }
 0x793   : > { %v2366_v11 = vadd.f32 %v2365_v58, %v2364_v57 }
 0x794   : > { %v2633_v41 = vpop.xlane.xlu0 %2632 }
 0x795   : > { %v2661_v47 = vadd.f32 %v2660_v53, %v2633_v41  ;;  %v2371_v35 = vsub.f32 %v2366_v11, %v2370_v48  ;;  %v2739_v48 = vpop.permute.xlu2 %2738 }
 0x796   : > { %v2741_v52 = vperm.slane %v2739_v48, 0 }
 0x797   : > { %v2662_v1 = vadd.f32 %v2661_v47, %v2635_v61  ;;  %v2372_v3 = vmul.f32 %v2371_v35, %v4236_v0 }
 0x799   : > { %v2373_v4 = vadd.f32 %v2372_v3, %v2058_v60  ;;  %v2663_v9 = vadd.f32 %v2662_v1, %v2637_v45 }
 0x79c   : > { %v2639_v12 = vpop.xlane.xlu0 %2638 }
 0x79d   : > { %v2664_v54 = vadd.f32 %v2663_v9, %v2639_v12 }
 0x79f   : > { %v2665_v14 = vadd.f32 %v2664_v54, %v2641_v17 }
 0x7a1   : > { %v2666_v16 = vadd.f32 %v2665_v14, %v2643_v6 }
 0x7a3   : > { %v2729_v8 = vpop.permute.xlu1 %2728 }
 0x7a4   : > { %v2645_v24 = vpop.xlane.xlu0 %2644  ;;  %v2731_v51 = vperm.slane %v2729_v8, 0 }
 0x7a5   : > { %v2667_v19 = vadd.f32 %v2666_v16, %v2645_v24 }
 0x7a7   : > { %v2668_v5 = vadd.f32 %v2667_v19, %v2647_v21 }
 0x7a9   : > { %v2669_v42 = vadd.f32 %v2668_v5, %v2649_v31 }
 0x7ac   : > { %v2651_v13 = vpop.xlane.xlu0 %2650 }
 0x7ad   : > { %v2670_v62 = vadd.f32 %v2669_v42, %v2651_v13 }
 0x7af   : > { %v2671_v26 = vadd.f32 %v2670_v62, %v2653_v22 }
 0x7b1   : > { %v2672_v7 = vadd.f32 %v2671_v26, %v2655_v27 }
 0x7b4   : > { %v2657_v28 = vpop.xlane.xlu0 %2656 }
 0x7b5   : > { %v2673_v63 = vadd.f32 %v2672_v7, %v2657_v28 }
 0x7b7   : > { %v2674_v30 = vadd.f32 %v2673_v63, %v2659_v34 }
 0x7b9   : > { %v2675_v39 = vrot.slane %v2674_v30, 4 }
 0x7bb   : > { %v2676_v32 = vadd.f32 %v2675_v39, %v2674_v30 }
 0x7bd   : > { %v2677_v55 = vrot.slane %v2676_v32, 2 }
 0x7bf   : > { %v2678_v38 = vadd.f32 %v2677_v55, %v2676_v32 }
 0x7c1   : > { %v2679_v37 = vrot.slane %v2678_v38, 1 }
 0x7c3   : > { %v2680_v2 = vadd.f32 %v2679_v37, %v2678_v38 }
 0x7c5   : > { %v2685_v25 = vsub.f32 %v2680_v2, %v2684_v43 }
 0x7c7   : > { %v2686_v50 = vmul.f32 %v2685_v25, %v4236_v0  ;;  %v2721_v15 = vpop.permute.xlu0 %2720 }
 0x7c8   : > { %v2723_v56 = vperm.slane %v2721_v15, 0 }
 0x7c9   : > { %v2687_v57 = vadd.f32 %v2686_v50, %v2373_v4 }
 0x7ca   : > { %v2724_v58 = vsel %vm2717_vm12, %v2723_v56, 0.0 }
 0x7cb   : > { %v2696_v46 = vmul.f32 %v2694_v49, %v2687_v57  ;;  %v2732_v53 = vsel %vm2725_vm13, %v2731_v51, %v2724_v58 }
 0x7cc   : > { %v2734_v0 = vsel %vm2733_vm14, %v2695_v44, %v2732_v53 }
 0x7cd   : > { %v2742_v11 = vsel %vm2735_vm15, %v2741_v52, %v2734_v0 }
 0x7ce   : > { %v2744_v61 = vsel %vm2743_vm0, %v2696_v46, %v2742_v11 }
 0x7cf   : > { %2745 = vst [vmem:[#allocation19] sm:$0x1] %v2744_v61 }
 0x7d0 PF: > { %p3131_p10 = scmp.eq.s32.totalorder %s3649_s20, 1  ;;  %s3489_s22 = smov [#allocation19]  }
 0x7d1   : > { %s2752_s6 = sshll.u32 %s3489_s22, 4  ;;  %s4320_s16 = sld [smem:[#allocation36_spill]]  ;;  %s2753_s6 = int_to_ptr.vmem [resolvable:$true] %s2752_s6 }
 0x7d7   : > { %s2754_s11 = sshll.u32 %s4320_s16, 4  ;;  %s2755_s11 = int_to_ptr.hbm [resolvable:$true] %s2754_s11 }
 0x7d8   : > { %3105 = dma.vmem_to_hbm [thread:$0]  (%p3131_p10), %s2753_s6, 16, %s2755_s11, [#allocation10]  }
 0x7d9   : > { %3459 = dma.done.wait (%p3131_p10), [#allocation10], 16  }
 0x7da   : > { %3461 = vsyncadd (%p3131_p10), [#allocation10], 4294967280 }
 0x7db PF: > { %s4321_s28 = sld [smem:[#allocation25_spill]]  ;;  %s4323_s25 = smov %s3468_s26 }
 0x7dc   : > { %s4322_s13 = sld [smem:[#allocation26_spill]]  ;;  %s4324_s26 = smov %s3472_s27 }
 0x7e1   : > { %p31_p13 = scmp.ge.s32.totalorder %s4321_s28, 4  }
 0x7e2   : > { %s4325_s27 = smov %s4322_s13 }
 0x7e3   :  { %33 = sbr.rel (!%p31_p13) target bundleno = 20 (0x14), region = 187 }
 0x7e8   :  { %2768 = vsyncpa [#allocation9], 1 }
 0x7e9   :  { %2770 = vsyncpa [#allocation9 + $0x1], 1 }
 0x7ea   :  { %2771 = vsyncpa [#allocation12], 1 }
 0x7eb   :  { %2773 = vsyncpa [#allocation12 + $0x1], 1 }
 0x7ec   :  { %2774 = vsyncpa [#allocation15], 1 }
 0x7ed   :  { %2776 = vsyncpa [#allocation15 + $0x1], 1 }
 0x7ee   :  { %2777 = vsyncpa [#allocation18], 1 }
 0x7ef   :  { %2778 = vsyncpa [#allocation10], 1 }
 0x7f0   :  { %2780 = vsyncpa [#allocation10 + $0x1], 1 }

</bundles_post_ra>
